<compile_context>
chip_gen: v6e
topology: v6e:2x2x1
jax: 0.10.0
libtpu: 0.0.40
codegen_flags: <defaults>
</compile_context>

<pallas_src>
import functools

import jax
import jax.numpy as jnp
from jax.experimental import pallas as pl
from jax.experimental.pallas import tpu as pltpu

FP_ITERS = 24  # fixed-point (Picard) iterations standing in for scipy fsolve


def gru_kernel(u_ref, wihT_ref, whhT_ref, bg_ref, bhn_ref, wlinT_ref,
               blin_ref, out_ref, hall_ref, *, fp_iters):
    # u_ref    : (T, B, nin)   time-major input slice u[:, :, :ninput]
    # wihT_ref : (nin, 3H)     = weight_ih_l0.T          (gate order r, z, n)
    # whhT_ref : (H, 3H)       = weight_hh_l0.T
    # bg_ref   : (1, 3H)       = [b_ir+b_hr, b_iz+b_hz, b_in]
    # bhn_ref  : (1, H)        = b_hn  (stays inside the r * (...) term)
    # wlinT_ref: (H, no)       = linear.weight.T
    # blin_ref : (1, no)       = linear.bias
    # out_ref  : (T*B, no)     time-major output slab
    # hall_ref : (T*B, H)      VMEM scratch holding every hidden state
    T, B, nin = u_ref.shape
    H = whhT_ref.shape[0]

    wihT = wihT_ref[...]
    whhT = whhT_ref[...]
    b_gates = bg_ref[...]
    b_hn = bhn_ref[...]

    # ---- (1) hoisted input projection: one MXU call for all timesteps ----
    u_all = u_ref[...].reshape(T * B, nin)
    drive = jnp.dot(u_all, wihT,
                    preferred_element_type=jnp.float32) + b_gates   # (T*B, 3H)

    def gru_cell(h, d):
        # d already contains x@W_ih^T + input biases (+ r/z hidden biases)
        hh = jnp.dot(h, whhT, preferred_element_type=jnp.float32)   # (B, 3H)
        r = jax.nn.sigmoid(d[:, :H] + hh[:, :H])
        z = jax.nn.sigmoid(d[:, H:2 * H] + hh[:, H:2 * H])
        n = jnp.tanh(d[:, 2 * H:] + r * (hh[:, 2 * H:] + b_hn))
        return (1.0 - z) * n + z * h

    # ---- (2) gruzero: equilibrium of the cell driven by u[:, 0, :] -------
    # TODO(synk): PyTorch uses scipy.optimize.fsolve per batch element; here
    #             the same root x = GRUCell(u0, x) is found by fixed-point
    #             iteration (fp_iters is the accuracy knob).
    d0 = drive[0:B]
    h = jnp.zeros((B, H), jnp.float32)
    for _ in range(fp_iters):              # fully unrolled serial chain
        h = gru_cell(h, d0)

    # ---- (3) GRU recurrence: only the truly serial work stays here -------
    for t in range(T):                     # fully unrolled, static indices
        h = gru_cell(h, drive[t * B:(t + 1) * B])
        hall_ref[t * B:(t + 1) * B, :] = h

    # ---- (4) deferred readout: one matmul + one full-slab store ----------
    y = jnp.dot(hall_ref[...], wlinT_ref[...],
                preferred_element_type=jnp.float32) + blin_ref[...]
    out_ref[...] = y.astype(out_ref.dtype)


def gru_forward(u, params, fp_iters=FP_ITERS):
    """u: (B, T, F) with F >= ninput (extra features sliced off, matching the
    PyTorch forward's u[:, :, :ninput]).  Returns (B, T, noutput)."""
    w_ih = jnp.asarray(params["weight_ih_l0"], jnp.float32)    # (3H, nin)
    w_hh = jnp.asarray(params["weight_hh_l0"], jnp.float32)    # (3H, H)
    b_ih = jnp.asarray(params["bias_ih_l0"], jnp.float32)      # (3H,)
    b_hh = jnp.asarray(params["bias_hh_l0"], jnp.float32)      # (3H,)
    w_lin = jnp.asarray(params["linear_weight"], jnp.float32)  # (no, H)
    b_lin = jnp.asarray(params["linear_bias"], jnp.float32)    # (no,)

    H = w_hh.shape[1]
    nin = w_ih.shape[1]
    no = w_lin.shape[0]
    B, T, _ = u.shape

    # tiny glue: slice input channels, go time-major, pre-transpose weights,
    # fold the r/z hidden biases into the input-side bias (b_hn cannot merge).
    u_tm = jnp.transpose(u[:, :, :nin].astype(jnp.float32), (1, 0, 2))  # (T,B,nin)
    wihT = w_ih.T                                                       # (nin,3H)
    whhT = w_hh.T                                                       # (H,3H)
    b_gates = jnp.concatenate(
        [b_ih[:2 * H] + b_hh[:2 * H], b_ih[2 * H:]]).reshape(1, 3 * H)  # (1,3H)
    b_hn = b_hh[2 * H:].reshape(1, H)                                   # (1,H)
    wlinT = w_lin.T                                                     # (H,no)
    blin = b_lin.reshape(1, no)                                         # (1,no)

    vmem = pl.BlockSpec(memory_space=pltpu.MemorySpace.VMEM)
    out_flat = pl.pallas_call(
        functools.partial(gru_kernel, fp_iters=fp_iters),
        out_shape=jax.ShapeDtypeStruct((T * B, no), jnp.float32),
        in_specs=[vmem] * 7,
        out_specs=vmem,
        scratch_shapes=[pltpu.VMEM((T * B, H), jnp.float32)],
    )(u_tm, wihT, whhT, b_gates, b_hn, wlinT, blin)

    # (T*B, no) time-major -> (B, T, no) batch-first (free reshape + tiny transpose)
    return jnp.transpose(out_flat.reshape(T, B, no), (1, 0, 2))


def reference_forward(u, params, fp_iters=FP_ITERS):
    """Pure-JAX reference: PyTorch GRU semantics + the same fixed-point h0."""
    w_ih = jnp.asarray(params["weight_ih_l0"], jnp.float32)
    w_hh = jnp.asarray(params["weight_hh_l0"], jnp.float32)
    b_ih = jnp.asarray(params["bias_ih_l0"], jnp.float32)
    b_hh = jnp.asarray(params["bias_hh_l0"], jnp.float32)
    w_lin = jnp.asarray(params["linear_weight"], jnp.float32)
    b_lin = jnp.asarray(params["linear_bias"], jnp.float32)

    H = w_hh.shape[1]
    nin = w_ih.shape[1]
    u_in = u[:, :, :nin].astype(jnp.float32)
    B, T, _ = u_in.shape

    def cell(h, x):
        gi = x @ w_ih.T + b_ih
        gh = h @ w_hh.T + b_hh
        r = jax.nn.sigmoid(gi[:, :H] + gh[:, :H])
        z = jax.nn.sigmoid(gi[:, H:2 * H] + gh[:, H:2 * H])
        n = jnp.tanh(gi[:, 2 * H:] + r * gh[:, 2 * H:])
        return (1.0 - z) * n + z * h

    h = jnp.zeros((B, H), jnp.float32)
    x0 = u_in[:, 0, :]
    for _ in range(fp_iters):
        h = cell(h, x0)

    outs = []
    for t in range(T):
        h = cell(h, u_in[:, t, :])
        outs.append(h @ w_lin.T + b_lin)
    return jnp.stack(outs, axis=1)


if __name__ == "__main__":
    batch, seq = 2, 8
    ninput, nhidden, noutput = 4, 32, 8
    nfeat = ninput + 2   # extra channels, sliced off by u[:, :, :ninput]

    key = jax.random.PRNGKey(0)
    keys = jax.random.split(key, 7)
    params = {
        "weight_ih_l0": 0.30 * jax.random.normal(keys[0], (3 * nhidden, ninput), jnp.float32),
        "weight_hh_l0": 0.15 * jax.random.normal(keys[1], (3 * nhidden, nhidden), jnp.float32),
        "bias_ih_l0":   0.05 * jax.random.normal(keys[2], (3 * nhidden,), jnp.float32),
        "bias_hh_l0":   0.05 * jax.random.normal(keys[3], (3 * nhidden,), jnp.float32),
        "linear_weight": 0.30 * jax.random.normal(keys[4], (noutput, nhidden), jnp.float32),
        "linear_bias":   0.05 * jax.random.normal(keys[5], (noutput,), jnp.float32),
    }
    u = jax.random.normal(keys[6], (batch, seq, nfeat), jnp.float32)

    out = jax.block_until_ready(gru_forward(u, params))
    ref = jax.block_until_ready(reference_forward(u, params))

    assert out.shape == (batch, seq, noutput)
    assert bool(jnp.all(jnp.isfinite(out)))
    err = float(jnp.max(jnp.abs(out - ref)))
    assert jnp.allclose(out, ref, rtol=2e-3, atol=2e-3), \
        f"mismatch vs JAX reference (max err {err})"
    print("KERNEL_OK")
</pallas_src>

<mosaic_0001>
module attributes {stable_mosaic.version = 11 : i64} {
  func.func @gru_kernel(%arg0: memref<8x2x4xf32, #tpu.memory_space<vmem>>, %arg1: memref<4x96xf32, #tpu.memory_space<vmem>>, %arg2: memref<32x96xf32, #tpu.memory_space<vmem>>, %arg3: memref<1x96xf32, #tpu.memory_space<vmem>>, %arg4: memref<1x32xf32, #tpu.memory_space<vmem>>, %arg5: memref<32x8xf32, #tpu.memory_space<vmem>>, %arg6: memref<1x8xf32, #tpu.memory_space<vmem>>, %arg7: memref<16x8xf32, #tpu.memory_space<vmem>>, %arg8: memref<16x32xf32, #tpu.memory_space<vmem>>) attributes {dimension_semantics = [], scalar_prefetch = 0 : i64, scratch_operands = 1 : i64, tpu.core_type = #tpu.core_type<tc>} {
    %c0 = arith.constant 0 : index
    %c0_0 = arith.constant 0 : index
    %0 = vector.load %arg1[%c0, %c0_0] : memref<4x96xf32, #tpu.memory_space<vmem>>, vector<4x96xf32>
    %c0_1 = arith.constant 0 : index
    %c0_2 = arith.constant 0 : index
    %1 = vector.load %arg2[%c0_1, %c0_2] : memref<32x96xf32, #tpu.memory_space<vmem>>, vector<32x96xf32>
    %c0_3 = arith.constant 0 : index
    %c0_4 = arith.constant 0 : index
    %2 = vector.load %arg3[%c0_3, %c0_4] : memref<1x96xf32, #tpu.memory_space<vmem>>, vector<1x96xf32>
    %c0_5 = arith.constant 0 : index
    %c0_6 = arith.constant 0 : index
    %3 = vector.load %arg4[%c0_5, %c0_6] : memref<1x32xf32, #tpu.memory_space<vmem>>, vector<1x32xf32>
    %c0_7 = arith.constant 0 : index
    %c0_8 = arith.constant 0 : index
    %c0_9 = arith.constant 0 : index
    %4 = vector.load %arg0[%c0_7, %c0_8, %c0_9] : memref<8x2x4xf32, #tpu.memory_space<vmem>>, vector<8x2x4xf32>
    %5 = vector.shape_cast %4 : vector<8x2x4xf32> to vector<16x4xf32>
    %cst = arith.constant dense<0.000000e+00> : vector<16x96xf32>
    %6 = tpu.matmul %5, %0, %cst {dimension_numbers = #tpu.dot_dimension_numbers<[1], [0], [0], [1], [0, 0, 1, 1], [], []>} : vector<16x4xf32>, vector<4x96xf32>, vector<16x96xf32> -> vector<16x96xf32>
    %7 = vector.broadcast %2 : vector<1x96xf32> to vector<16x96xf32>
    %8 = arith.addf %6, %7 : vector<16x96xf32>
    %9 = vector.extract_strided_slice %8 {offsets = [0, 0], sizes = [2, 96], strides = [1, 1]} : vector<16x96xf32> to vector<2x96xf32>
    %cst_10 = arith.constant 0.000000e+00 : f32
    %10 = vector.broadcast %cst_10 : f32 to vector<2x32xf32>
    %cst_11 = arith.constant dense<0.000000e+00> : vector<2x96xf32>
    %11 = tpu.matmul %10, %1, %cst_11 {dimension_numbers = #tpu.dot_dimension_numbers<[1], [0], [0], [1], [0, 0, 1, 1], [], []>} : vector<2x32xf32>, vector<32x96xf32>, vector<2x96xf32> -> vector<2x96xf32>
    %12 = vector.extract_strided_slice %9 {offsets = [0, 0], sizes = [2, 32], strides = [1, 1]} : vector<2x96xf32> to vector<2x32xf32>
    %13 = vector.extract_strided_slice %11 {offsets = [0, 0], sizes = [2, 32], strides = [1, 1]} : vector<2x96xf32> to vector<2x32xf32>
    %14 = arith.addf %12, %13 : vector<2x32xf32>
    %15 = arith.negf %14 : vector<2x32xf32>
    %16 = math.exp %15 : vector<2x32xf32>
    %cst_12 = arith.constant 1.000000e+00 : f32
    %17 = vector.broadcast %cst_12 : f32 to vector<2x32xf32>
    %18 = arith.addf %17, %16 : vector<2x32xf32>
    %19 = arith.divf %17, %18 : vector<2x32xf32>
    %20 = vector.extract_strided_slice %9 {offsets = [0, 32], sizes = [2, 32], strides = [1, 1]} : vector<2x96xf32> to vector<2x32xf32>
    %21 = vector.extract_strided_slice %11 {offsets = [0, 32], sizes = [2, 32], strides = [1, 1]} : vector<2x96xf32> to vector<2x32xf32>
    %22 = arith.addf %20, %21 : vector<2x32xf32>
    %23 = arith.negf %22 : vector<2x32xf32>
    %24 = math.exp %23 : vector<2x32xf32>
    %cst_13 = arith.constant 1.000000e+00 : f32
    %25 = vector.broadcast %cst_13 : f32 to vector<2x32xf32>
    %26 = arith.addf %25, %24 : vector<2x32xf32>
    %27 = arith.divf %25, %26 : vector<2x32xf32>
    %28 = vector.extract_strided_slice %9 {offsets = [0, 64], sizes = [2, 32], strides = [1, 1]} : vector<2x96xf32> to vector<2x32xf32>
    %29 = vector.extract_strided_slice %11 {offsets = [0, 64], sizes = [2, 32], strides = [1, 1]} : vector<2x96xf32> to vector<2x32xf32>
    %30 = vector.broadcast %3 : vector<1x32xf32> to vector<2x32xf32>
    %31 = arith.addf %29, %30 : vector<2x32xf32>
    %32 = arith.mulf %19, %31 : vector<2x32xf32>
    %33 = arith.addf %28, %32 : vector<2x32xf32>
    %34 = math.tanh %33 : vector<2x32xf32>
    %cst_14 = arith.constant 1.000000e+00 : f32
    %35 = vector.broadcast %cst_14 : f32 to vector<2x32xf32>
    %36 = arith.subf %35, %27 : vector<2x32xf32>
    %37 = arith.mulf %36, %34 : vector<2x32xf32>
    %38 = arith.mulf %27, %10 : vector<2x32xf32>
    %39 = arith.addf %37, %38 : vector<2x32xf32>
    %cst_15 = arith.constant dense<0.000000e+00> : vector<2x96xf32>
    %40 = tpu.matmul %39, %1, %cst_15 {dimension_numbers = #tpu.dot_dimension_numbers<[1], [0], [0], [1], [0, 0, 1, 1], [], []>} : vector<2x32xf32>, vector<32x96xf32>, vector<2x96xf32> -> vector<2x96xf32>
    %41 = vector.extract_strided_slice %9 {offsets = [0, 0], sizes = [2, 32], strides = [1, 1]} : vector<2x96xf32> to vector<2x32xf32>
    %42 = vector.extract_strided_slice %40 {offsets = [0, 0], sizes = [2, 32], strides = [1, 1]} : vector<2x96xf32> to vector<2x32xf32>
    %43 = arith.addf %41, %42 : vector<2x32xf32>
    %44 = arith.negf %43 : vector<2x32xf32>
    %45 = math.exp %44 : vector<2x32xf32>
    %cst_16 = arith.constant 1.000000e+00 : f32
    %46 = vector.broadcast %cst_16 : f32 to vector<2x32xf32>
    %47 = arith.addf %46, %45 : vector<2x32xf32>
    %48 = arith.divf %46, %47 : vector<2x32xf32>
    %49 = vector.extract_strided_slice %9 {offsets = [0, 32], sizes = [2, 32], strides = [1, 1]} : vector<2x96xf32> to vector<2x32xf32>
    %50 = vector.extract_strided_slice %40 {offsets = [0, 32], sizes = [2, 32], strides = [1, 1]} : vector<2x96xf32> to vector<2x32xf32>
    %51 = arith.addf %49, %50 : vector<2x32xf32>
    %52 = arith.negf %51 : vector<2x32xf32>
    %53 = math.exp %52 : vector<2x32xf32>
    %cst_17 = arith.constant 1.000000e+00 : f32
    %54 = vector.broadcast %cst_17 : f32 to vector<2x32xf32>
    %55 = arith.addf %54, %53 : vector<2x32xf32>
    %56 = arith.divf %54, %55 : vector<2x32xf32>
    %57 = vector.extract_strided_slice %9 {offsets = [0, 64], sizes = [2, 32], strides = [1, 1]} : vector<2x96xf32> to vector<2x32xf32>
    %58 = vector.extract_strided_slice %40 {offsets = [0, 64], sizes = [2, 32], strides = [1, 1]} : vector<2x96xf32> to vector<2x32xf32>
    %59 = vector.broadcast %3 : vector<1x32xf32> to vector<2x32xf32>
    %60 = arith.addf %58, %59 : vector<2x32xf32>
    %61 = arith.mulf %48, %60 : vector<2x32xf32>
    %62 = arith.addf %57, %61 : vector<2x32xf32>
    %63 = math.tanh %62 : vector<2x32xf32>
    %cst_18 = arith.constant 1.000000e+00 : f32
    %64 = vector.broadcast %cst_18 : f32 to vector<2x32xf32>
    %65 = arith.subf %64, %56 : vector<2x32xf32>
    %66 = arith.mulf %65, %63 : vector<2x32xf32>
    %67 = arith.mulf %56, %39 : vector<2x32xf32>
    %68 = arith.addf %66, %67 : vector<2x32xf32>
    %cst_19 = arith.constant dense<0.000000e+00> : vector<2x96xf32>
    %69 = tpu.matmul %68, %1, %cst_19 {dimension_numbers = #tpu.dot_dimension_numbers<[1], [0], [0], [1], [0, 0, 1, 1], [], []>} : vector<2x32xf32>, vector<32x96xf32>, vector<2x96xf32> -> vector<2x96xf32>
    %70 = vector.extract_strided_slice %9 {offsets = [0, 0], sizes = [2, 32], strides = [1, 1]} : vector<2x96xf32> to vector<2x32xf32>
    %71 = vector.extract_strided_slice %69 {offsets = [0, 0], sizes = [2, 32], strides = [1, 1]} : vector<2x96xf32> to vector<2x32xf32>
    %72 = arith.addf %70, %71 : vector<2x32xf32>
    %73 = arith.negf %72 : vector<2x32xf32>
    %74 = math.exp %73 : vector<2x32xf32>
    %cst_20 = arith.constant 1.000000e+00 : f32
    %75 = vector.broadcast %cst_20 : f32 to vector<2x32xf32>
    %76 = arith.addf %75, %74 : vector<2x32xf32>
    %77 = arith.divf %75, %76 : vector<2x32xf32>
    %78 = vector.extract_strided_slice %9 {offsets = [0, 32], sizes = [2, 32], strides = [1, 1]} : vector<2x96xf32> to vector<2x32xf32>
    %79 = vector.extract_strided_slice %69 {offsets = [0, 32], sizes = [2, 32], strides = [1, 1]} : vector<2x96xf32> to vector<2x32xf32>
    %80 = arith.addf %78, %79 : vector<2x32xf32>
    %81 = arith.negf %80 : vector<2x32xf32>
    %82 = math.exp %81 : vector<2x32xf32>
    %cst_21 = arith.constant 1.000000e+00 : f32
    %83 = vector.broadcast %cst_21 : f32 to vector<2x32xf32>
    %84 = arith.addf %83, %82 : vector<2x32xf32>
    %85 = arith.divf %83, %84 : vector<2x32xf32>
    %86 = vector.extract_strided_slice %9 {offsets = [0, 64], sizes = [2, 32], strides = [1, 1]} : vector<2x96xf32> to vector<2x32xf32>
    %87 = vector.extract_strided_slice %69 {offsets = [0, 64], sizes = [2, 32], strides = [1, 1]} : vector<2x96xf32> to vector<2x32xf32>
    %88 = vector.broadcast %3 : vector<1x32xf32> to vector<2x32xf32>
    %89 = arith.addf %87, %88 : vector<2x32xf32>
    %90 = arith.mulf %77, %89 : vector<2x32xf32>
    %91 = arith.addf %86, %90 : vector<2x32xf32>
    %92 = math.tanh %91 : vector<2x32xf32>
    %cst_22 = arith.constant 1.000000e+00 : f32
    %93 = vector.broadcast %cst_22 : f32 to vector<2x32xf32>
    %94 = arith.subf %93, %85 : vector<2x32xf32>
    %95 = arith.mulf %94, %92 : vector<2x32xf32>
    %96 = arith.mulf %85, %68 : vector<2x32xf32>
    %97 = arith.addf %95, %96 : vector<2x32xf32>
    %cst_23 = arith.constant dense<0.000000e+00> : vector<2x96xf32>
    %98 = tpu.matmul %97, %1, %cst_23 {dimension_numbers = #tpu.dot_dimension_numbers<[1], [0], [0], [1], [0, 0, 1, 1], [], []>} : vector<2x32xf32>, vector<32x96xf32>, vector<2x96xf32> -> vector<2x96xf32>
    %99 = vector.extract_strided_slice %9 {offsets = [0, 0], sizes = [2, 32], strides = [1, 1]} : vector<2x96xf32> to vector<2x32xf32>
    %100 = vector.extract_strided_slice %98 {offsets = [0, 0], sizes = [2, 32], strides = [1, 1]} : vector<2x96xf32> to vector<2x32xf32>
    %101 = arith.addf %99, %100 : vector<2x32xf32>
    %102 = arith.negf %101 : vector<2x32xf32>
    %103 = math.exp %102 : vector<2x32xf32>
    %cst_24 = arith.constant 1.000000e+00 : f32
    %104 = vector.broadcast %cst_24 : f32 to vector<2x32xf32>
    %105 = arith.addf %104, %103 : vector<2x32xf32>
    %106 = arith.divf %104, %105 : vector<2x32xf32>
    %107 = vector.extract_strided_slice %9 {offsets = [0, 32], sizes = [2, 32], strides = [1, 1]} : vector<2x96xf32> to vector<2x32xf32>
    %108 = vector.extract_strided_slice %98 {offsets = [0, 32], sizes = [2, 32], strides = [1, 1]} : vector<2x96xf32> to vector<2x32xf32>
    %109 = arith.addf %107, %108 : vector<2x32xf32>
    %110 = arith.negf %109 : vector<2x32xf32>
    %111 = math.exp %110 : vector<2x32xf32>
    %cst_25 = arith.constant 1.000000e+00 : f32
    %112 = vector.broadcast %cst_25 : f32 to vector<2x32xf32>
    %113 = arith.addf %112, %111 : vector<2x32xf32>
    %114 = arith.divf %112, %113 : vector<2x32xf32>
    %115 = vector.extract_strided_slice %9 {offsets = [0, 64], sizes = [2, 32], strides = [1, 1]} : vector<2x96xf32> to vector<2x32xf32>
    %116 = vector.extract_strided_slice %98 {offsets = [0, 64], sizes = [2, 32], strides = [1, 1]} : vector<2x96xf32> to vector<2x32xf32>
    %117 = vector.broadcast %3 : vector<1x32xf32> to vector<2x32xf32>
    %118 = arith.addf %116, %117 : vector<2x32xf32>
    %119 = arith.mulf %106, %118 : vector<2x32xf32>
    %120 = arith.addf %115, %119 : vector<2x32xf32>
    %121 = math.tanh %120 : vector<2x32xf32>
    %cst_26 = arith.constant 1.000000e+00 : f32
    %122 = vector.broadcast %cst_26 : f32 to vector<2x32xf32>
    %123 = arith.subf %122, %114 : vector<2x32xf32>
    %124 = arith.mulf %123, %121 : vector<2x32xf32>
    %125 = arith.mulf %114, %97 : vector<2x32xf32>
    %126 = arith.addf %124, %125 : vector<2x32xf32>
    %cst_27 = arith.constant dense<0.000000e+00> : vector<2x96xf32>
    %127 = tpu.matmul %126, %1, %cst_27 {dimension_numbers = #tpu.dot_dimension_numbers<[1], [0], [0], [1], [0, 0, 1, 1], [], []>} : vector<2x32xf32>, vector<32x96xf32>, vector<2x96xf32> -> vector<2x96xf32>
    %128 = vector.extract_strided_slice %9 {offsets = [0, 0], sizes = [2, 32], strides = [1, 1]} : vector<2x96xf32> to vector<2x32xf32>
    %129 = vector.extract_strided_slice %127 {offsets = [0, 0], sizes = [2, 32], strides = [1, 1]} : vector<2x96xf32> to vector<2x32xf32>
    %130 = arith.addf %128, %129 : vector<2x32xf32>
    %131 = arith.negf %130 : vector<2x32xf32>
    %132 = math.exp %131 : vector<2x32xf32>
    %cst_28 = arith.constant 1.000000e+00 : f32
    %133 = vector.broadcast %cst_28 : f32 to vector<2x32xf32>
    %134 = arith.addf %133, %132 : vector<2x32xf32>
    %135 = arith.divf %133, %134 : vector<2x32xf32>
    %136 = vector.extract_strided_slice %9 {offsets = [0, 32], sizes = [2, 32], strides = [1, 1]} : vector<2x96xf32> to vector<2x32xf32>
    %137 = vector.extract_strided_slice %127 {offsets = [0, 32], sizes = [2, 32], strides = [1, 1]} : vector<2x96xf32> to vector<2x32xf32>
    %138 = arith.addf %136, %137 : vector<2x32xf32>
    %139 = arith.negf %138 : vector<2x32xf32>
    %140 = math.exp %139 : vector<2x32xf32>
    %cst_29 = arith.constant 1.000000e+00 : f32
    %141 = vector.broadcast %cst_29 : f32 to vector<2x32xf32>
    %142 = arith.addf %141, %140 : vector<2x32xf32>
    %143 = arith.divf %141, %142 : vector<2x32xf32>
    %144 = vector.extract_strided_slice %9 {offsets = [0, 64], sizes = [2, 32], strides = [1, 1]} : vector<2x96xf32> to vector<2x32xf32>
    %145 = vector.extract_strided_slice %127 {offsets = [0, 64], sizes = [2, 32], strides = [1, 1]} : vector<2x96xf32> to vector<2x32xf32>
    %146 = vector.broadcast %3 : vector<1x32xf32> to vector<2x32xf32>
    %147 = arith.addf %145, %146 : vector<2x32xf32>
    %148 = arith.mulf %135, %147 : vector<2x32xf32>
    %149 = arith.addf %144, %148 : vector<2x32xf32>
    %150 = math.tanh %149 : vector<2x32xf32>
    %cst_30 = arith.constant 1.000000e+00 : f32
    %151 = vector.broadcast %cst_30 : f32 to vector<2x32xf32>
    %152 = arith.subf %151, %143 : vector<2x32xf32>
    %153 = arith.mulf %152, %150 : vector<2x32xf32>
    %154 = arith.mulf %143, %126 : vector<2x32xf32>
    %155 = arith.addf %153, %154 : vector<2x32xf32>
    %cst_31 = arith.constant dense<0.000000e+00> : vector<2x96xf32>
    %156 = tpu.matmul %155, %1, %cst_31 {dimension_numbers = #tpu.dot_dimension_numbers<[1], [0], [0], [1], [0, 0, 1, 1], [], []>} : vector<2x32xf32>, vector<32x96xf32>, vector<2x96xf32> -> vector<2x96xf32>
    %157 = vector.extract_strided_slice %9 {offsets = [0, 0], sizes = [2, 32], strides = [1, 1]} : vector<2x96xf32> to vector<2x32xf32>
    %158 = vector.extract_strided_slice %156 {offsets = [0, 0], sizes = [2, 32], strides = [1, 1]} : vector<2x96xf32> to vector<2x32xf32>
    %159 = arith.addf %157, %158 : vector<2x32xf32>
    %160 = arith.negf %159 : vector<2x32xf32>
    %161 = math.exp %160 : vector<2x32xf32>
    %cst_32 = arith.constant 1.000000e+00 : f32
    %162 = vector.broadcast %cst_32 : f32 to vector<2x32xf32>
    %163 = arith.addf %162, %161 : vector<2x32xf32>
    %164 = arith.divf %162, %163 : vector<2x32xf32>
    %165 = vector.extract_strided_slice %9 {offsets = [0, 32], sizes = [2, 32], strides = [1, 1]} : vector<2x96xf32> to vector<2x32xf32>
    %166 = vector.extract_strided_slice %156 {offsets = [0, 32], sizes = [2, 32], strides = [1, 1]} : vector<2x96xf32> to vector<2x32xf32>
    %167 = arith.addf %165, %166 : vector<2x32xf32>
    %168 = arith.negf %167 : vector<2x32xf32>
    %169 = math.exp %168 : vector<2x32xf32>
    %cst_33 = arith.constant 1.000000e+00 : f32
    %170 = vector.broadcast %cst_33 : f32 to vector<2x32xf32>
    %171 = arith.addf %170, %169 : vector<2x32xf32>
    %172 = arith.divf %170, %171 : vector<2x32xf32>
    %173 = vector.extract_strided_slice %9 {offsets = [0, 64], sizes = [2, 32], strides = [1, 1]} : vector<2x96xf32> to vector<2x32xf32>
    %174 = vector.extract_strided_slice %156 {offsets = [0, 64], sizes = [2, 32], strides = [1, 1]} : vector<2x96xf32> to vector<2x32xf32>
    %175 = vector.broadcast %3 : vector<1x32xf32> to vector<2x32xf32>
    %176 = arith.addf %174, %175 : vector<2x32xf32>
    %177 = arith.mulf %164, %176 : vector<2x32xf32>
    %178 = arith.addf %173, %177 : vector<2x32xf32>
    %179 = math.tanh %178 : vector<2x32xf32>
    %cst_34 = arith.constant 1.000000e+00 : f32
    %180 = vector.broadcast %cst_34 : f32 to vector<2x32xf32>
    %181 = arith.subf %180, %172 : vector<2x32xf32>
    %182 = arith.mulf %181, %179 : vector<2x32xf32>
    %183 = arith.mulf %172, %155 : vector<2x32xf32>
    %184 = arith.addf %182, %183 : vector<2x32xf32>
    %cst_35 = arith.constant dense<0.000000e+00> : vector<2x96xf32>
    %185 = tpu.matmul %184, %1, %cst_35 {dimension_numbers = #tpu.dot_dimension_numbers<[1], [0], [0], [1], [0, 0, 1, 1], [], []>} : vector<2x32xf32>, vector<32x96xf32>, vector<2x96xf32> -> vector<2x96xf32>
    %186 = vector.extract_strided_slice %9 {offsets = [0, 0], sizes = [2, 32], strides = [1, 1]} : vector<2x96xf32> to vector<2x32xf32>
    %187 = vector.extract_strided_slice %185 {offsets = [0, 0], sizes = [2, 32], strides = [1, 1]} : vector<2x96xf32> to vector<2x32xf32>
    %188 = arith.addf %186, %187 : vector<2x32xf32>
    %189 = arith.negf %188 : vector<2x32xf32>
    %190 = math.exp %189 : vector<2x32xf32>
    %cst_36 = arith.constant 1.000000e+00 : f32
    %191 = vector.broadcast %cst_36 : f32 to vector<2x32xf32>
    %192 = arith.addf %191, %190 : vector<2x32xf32>
    %193 = arith.divf %191, %192 : vector<2x32xf32>
    %194 = vector.extract_strided_slice %9 {offsets = [0, 32], sizes = [2, 32], strides = [1, 1]} : vector<2x96xf32> to vector<2x32xf32>
    %195 = vector.extract_strided_slice %185 {offsets = [0, 32], sizes = [2, 32], strides = [1, 1]} : vector<2x96xf32> to vector<2x32xf32>
    %196 = arith.addf %194, %195 : vector<2x32xf32>
    %197 = arith.negf %196 : vector<2x32xf32>
    %198 = math.exp %197 : vector<2x32xf32>
    %cst_37 = arith.constant 1.000000e+00 : f32
    %199 = vector.broadcast %cst_37 : f32 to vector<2x32xf32>
    %200 = arith.addf %199, %198 : vector<2x32xf32>
    %201 = arith.divf %199, %200 : vector<2x32xf32>
    %202 = vector.extract_strided_slice %9 {offsets = [0, 64], sizes = [2, 32], strides = [1, 1]} : vector<2x96xf32> to vector<2x32xf32>
    %203 = vector.extract_strided_slice %185 {offsets = [0, 64], sizes = [2, 32], strides = [1, 1]} : vector<2x96xf32> to vector<2x32xf32>
    %204 = vector.broadcast %3 : vector<1x32xf32> to vector<2x32xf32>
    %205 = arith.addf %203, %204 : vector<2x32xf32>
    %206 = arith.mulf %193, %205 : vector<2x32xf32>
    %207 = arith.addf %202, %206 : vector<2x32xf32>
    %208 = math.tanh %207 : vector<2x32xf32>
    %cst_38 = arith.constant 1.000000e+00 : f32
    %209 = vector.broadcast %cst_38 : f32 to vector<2x32xf32>
    %210 = arith.subf %209, %201 : vector<2x32xf32>
    %211 = arith.mulf %210, %208 : vector<2x32xf32>
    %212 = arith.mulf %201, %184 : vector<2x32xf32>
    %213 = arith.addf %211, %212 : vector<2x32xf32>
    %cst_39 = arith.constant dense<0.000000e+00> : vector<2x96xf32>
    %214 = tpu.matmul %213, %1, %cst_39 {dimension_numbers = #tpu.dot_dimension_numbers<[1], [0], [0], [1], [0, 0, 1, 1], [], []>} : vector<2x32xf32>, vector<32x96xf32>, vector<2x96xf32> -> vector<2x96xf32>
    %215 = vector.extract_strided_slice %9 {offsets = [0, 0], sizes = [2, 32], strides = [1, 1]} : vector<2x96xf32> to vector<2x32xf32>
    %216 = vector.extract_strided_slice %214 {offsets = [0, 0], sizes = [2, 32], strides = [1, 1]} : vector<2x96xf32> to vector<2x32xf32>
    %217 = arith.addf %215, %216 : vector<2x32xf32>
    %218 = arith.negf %217 : vector<2x32xf32>
    %219 = math.exp %218 : vector<2x32xf32>
    %cst_40 = arith.constant 1.000000e+00 : f32
    %220 = vector.broadcast %cst_40 : f32 to vector<2x32xf32>
    %221 = arith.addf %220, %219 : vector<2x32xf32>
    %222 = arith.divf %220, %221 : vector<2x32xf32>
    %223 = vector.extract_strided_slice %9 {offsets = [0, 32], sizes = [2, 32], strides = [1, 1]} : vector<2x96xf32> to vector<2x32xf32>
    %224 = vector.extract_strided_slice %214 {offsets = [0, 32], sizes = [2, 32], strides = [1, 1]} : vector<2x96xf32> to vector<2x32xf32>
    %225 = arith.addf %223, %224 : vector<2x32xf32>
    %226 = arith.negf %225 : vector<2x32xf32>
    %227 = math.exp %226 : vector<2x32xf32>
    %cst_41 = arith.constant 1.000000e+00 : f32
    %228 = vector.broadcast %cst_41 : f32 to vector<2x32xf32>
    %229 = arith.addf %228, %227 : vector<2x32xf32>
    %230 = arith.divf %228, %229 : vector<2x32xf32>
    %231 = vector.extract_strided_slice %9 {offsets = [0, 64], sizes = [2, 32], strides = [1, 1]} : vector<2x96xf32> to vector<2x32xf32>
    %232 = vector.extract_strided_slice %214 {offsets = [0, 64], sizes = [2, 32], strides = [1, 1]} : vector<2x96xf32> to vector<2x32xf32>
    %233 = vector.broadcast %3 : vector<1x32xf32> to vector<2x32xf32>
    %234 = arith.addf %232, %233 : vector<2x32xf32>
    %235 = arith.mulf %222, %234 : vector<2x32xf32>
    %236 = arith.addf %231, %235 : vector<2x32xf32>
    %237 = math.tanh %236 : vector<2x32xf32>
    %cst_42 = arith.constant 1.000000e+00 : f32
    %238 = vector.broadcast %cst_42 : f32 to vector<2x32xf32>
    %239 = arith.subf %238, %230 : vector<2x32xf32>
    %240 = arith.mulf %239, %237 : vector<2x32xf32>
    %241 = arith.mulf %230, %213 : vector<2x32xf32>
    %242 = arith.addf %240, %241 : vector<2x32xf32>
    %cst_43 = arith.constant dense<0.000000e+00> : vector<2x96xf32>
    %243 = tpu.matmul %242, %1, %cst_43 {dimension_numbers = #tpu.dot_dimension_numbers<[1], [0], [0], [1], [0, 0, 1, 1], [], []>} : vector<2x32xf32>, vector<32x96xf32>, vector<2x96xf32> -> vector<2x96xf32>
    %244 = vector.extract_strided_slice %9 {offsets = [0, 0], sizes = [2, 32], strides = [1, 1]} : vector<2x96xf32> to vector<2x32xf32>
    %245 = vector.extract_strided_slice %243 {offsets = [0, 0], sizes = [2, 32], strides = [1, 1]} : vector<2x96xf32> to vector<2x32xf32>
    %246 = arith.addf %244, %245 : vector<2x32xf32>
    %247 = arith.negf %246 : vector<2x32xf32>
    %248 = math.exp %247 : vector<2x32xf32>
    %cst_44 = arith.constant 1.000000e+00 : f32
    %249 = vector.broadcast %cst_44 : f32 to vector<2x32xf32>
    %250 = arith.addf %249, %248 : vector<2x32xf32>
    %251 = arith.divf %249, %250 : vector<2x32xf32>
    %252 = vector.extract_strided_slice %9 {offsets = [0, 32], sizes = [2, 32], strides = [1, 1]} : vector<2x96xf32> to vector<2x32xf32>
    %253 = vector.extract_strided_slice %243 {offsets = [0, 32], sizes = [2, 32], strides = [1, 1]} : vector<2x96xf32> to vector<2x32xf32>
    %254 = arith.addf %252, %253 : vector<2x32xf32>
    %255 = arith.negf %254 : vector<2x32xf32>
    %256 = math.exp %255 : vector<2x32xf32>
    %cst_45 = arith.constant 1.000000e+00 : f32
    %257 = vector.broadcast %cst_45 : f32 to vector<2x32xf32>
    %258 = arith.addf %257, %256 : vector<2x32xf32>
    %259 = arith.divf %257, %258 : vector<2x32xf32>
    %260 = vector.extract_strided_slice %9 {offsets = [0, 64], sizes = [2, 32], strides = [1, 1]} : vector<2x96xf32> to vector<2x32xf32>
    %261 = vector.extract_strided_slice %243 {offsets = [0, 64], sizes = [2, 32], strides = [1, 1]} : vector<2x96xf32> to vector<2x32xf32>
    %262 = vector.broadcast %3 : vector<1x32xf32> to vector<2x32xf32>
    %263 = arith.addf %261, %262 : vector<2x32xf32>
    %264 = arith.mulf %251, %263 : vector<2x32xf32>
    %265 = arith.addf %260, %264 : vector<2x32xf32>
    %266 = math.tanh %265 : vector<2x32xf32>
    %cst_46 = arith.constant 1.000000e+00 : f32
    %267 = vector.broadcast %cst_46 : f32 to vector<2x32xf32>
    %268 = arith.subf %267, %259 : vector<2x32xf32>
    %269 = arith.mulf %268, %266 : vector<2x32xf32>
    %270 = arith.mulf %259, %242 : vector<2x32xf32>
    %271 = arith.addf %269, %270 : vector<2x32xf32>
    %cst_47 = arith.constant dense<0.000000e+00> : vector<2x96xf32>
    %272 = tpu.matmul %271, %1, %cst_47 {dimension_numbers = #tpu.dot_dimension_numbers<[1], [0], [0], [1], [0, 0, 1, 1], [], []>} : vector<2x32xf32>, vector<32x96xf32>, vector<2x96xf32> -> vector<2x96xf32>
    %273 = vector.extract_strided_slice %9 {offsets = [0, 0], sizes = [2, 32], strides = [1, 1]} : vector<2x96xf32> to vector<2x32xf32>
    %274 = vector.extract_strided_slice %272 {offsets = [0, 0], sizes = [2, 32], strides = [1, 1]} : vector<2x96xf32> to vector<2x32xf32>
    %275 = arith.addf %273, %274 : vector<2x32xf32>
    %276 = arith.negf %275 : vector<2x32xf32>
    %277 = math.exp %276 : vector<2x32xf32>
    %cst_48 = arith.constant 1.000000e+00 : f32
    %278 = vector.broadcast %cst_48 : f32 to vector<2x32xf32>
    %279 = arith.addf %278, %277 : vector<2x32xf32>
    %280 = arith.divf %278, %279 : vector<2x32xf32>
    %281 = vector.extract_strided_slice %9 {offsets = [0, 32], sizes = [2, 32], strides = [1, 1]} : vector<2x96xf32> to vector<2x32xf32>
    %282 = vector.extract_strided_slice %272 {offsets = [0, 32], sizes = [2, 32], strides = [1, 1]} : vector<2x96xf32> to vector<2x32xf32>
    %283 = arith.addf %281, %282 : vector<2x32xf32>
    %284 = arith.negf %283 : vector<2x32xf32>
    %285 = math.exp %284 : vector<2x32xf32>
    %cst_49 = arith.constant 1.000000e+00 : f32
    %286 = vector.broadcast %cst_49 : f32 to vector<2x32xf32>
    %287 = arith.addf %286, %285 : vector<2x32xf32>
    %288 = arith.divf %286, %287 : vector<2x32xf32>
    %289 = vector.extract_strided_slice %9 {offsets = [0, 64], sizes = [2, 32], strides = [1, 1]} : vector<2x96xf32> to vector<2x32xf32>
    %290 = vector.extract_strided_slice %272 {offsets = [0, 64], sizes = [2, 32], strides = [1, 1]} : vector<2x96xf32> to vector<2x32xf32>
    %291 = vector.broadcast %3 : vector<1x32xf32> to vector<2x32xf32>
    %292 = arith.addf %290, %291 : vector<2x32xf32>
    %293 = arith.mulf %280, %292 : vector<2x32xf32>
    %294 = arith.addf %289, %293 : vector<2x32xf32>
    %295 = math.tanh %294 : vector<2x32xf32>
    %cst_50 = arith.constant 1.000000e+00 : f32
    %296 = vector.broadcast %cst_50 : f32 to vector<2x32xf32>
    %297 = arith.subf %296, %288 : vector<2x32xf32>
    %298 = arith.mulf %297, %295 : vector<2x32xf32>
    %299 = arith.mulf %288, %271 : vector<2x32xf32>
    %300 = arith.addf %298, %299 : vector<2x32xf32>
    %cst_51 = arith.constant dense<0.000000e+00> : vector<2x96xf32>
    %301 = tpu.matmul %300, %1, %cst_51 {dimension_numbers = #tpu.dot_dimension_numbers<[1], [0], [0], [1], [0, 0, 1, 1], [], []>} : vector<2x32xf32>, vector<32x96xf32>, vector<2x96xf32> -> vector<2x96xf32>
    %302 = vector.extract_strided_slice %9 {offsets = [0, 0], sizes = [2, 32], strides = [1, 1]} : vector<2x96xf32> to vector<2x32xf32>
    %303 = vector.extract_strided_slice %301 {offsets = [0, 0], sizes = [2, 32], strides = [1, 1]} : vector<2x96xf32> to vector<2x32xf32>
    %304 = arith.addf %302, %303 : vector<2x32xf32>
    %305 = arith.negf %304 : vector<2x32xf32>
    %306 = math.exp %305 : vector<2x32xf32>
    %cst_52 = arith.constant 1.000000e+00 : f32
    %307 = vector.broadcast %cst_52 : f32 to vector<2x32xf32>
    %308 = arith.addf %307, %306 : vector<2x32xf32>
    %309 = arith.divf %307, %308 : vector<2x32xf32>
    %310 = vector.extract_strided_slice %9 {offsets = [0, 32], sizes = [2, 32], strides = [1, 1]} : vector<2x96xf32> to vector<2x32xf32>
    %311 = vector.extract_strided_slice %301 {offsets = [0, 32], sizes = [2, 32], strides = [1, 1]} : vector<2x96xf32> to vector<2x32xf32>
    %312 = arith.addf %310, %311 : vector<2x32xf32>
    %313 = arith.negf %312 : vector<2x32xf32>
    %314 = math.exp %313 : vector<2x32xf32>
    %cst_53 = arith.constant 1.000000e+00 : f32
    %315 = vector.broadcast %cst_53 : f32 to vector<2x32xf32>
    %316 = arith.addf %315, %314 : vector<2x32xf32>
    %317 = arith.divf %315, %316 : vector<2x32xf32>
    %318 = vector.extract_strided_slice %9 {offsets = [0, 64], sizes = [2, 32], strides = [1, 1]} : vector<2x96xf32> to vector<2x32xf32>
    %319 = vector.extract_strided_slice %301 {offsets = [0, 64], sizes = [2, 32], strides = [1, 1]} : vector<2x96xf32> to vector<2x32xf32>
    %320 = vector.broadcast %3 : vector<1x32xf32> to vector<2x32xf32>
    %321 = arith.addf %319, %320 : vector<2x32xf32>
    %322 = arith.mulf %309, %321 : vector<2x32xf32>
    %323 = arith.addf %318, %322 : vector<2x32xf32>
    %324 = math.tanh %323 : vector<2x32xf32>
    %cst_54 = arith.constant 1.000000e+00 : f32
    %325 = vector.broadcast %cst_54 : f32 to vector<2x32xf32>
    %326 = arith.subf %325, %317 : vector<2x32xf32>
    %327 = arith.mulf %326, %324 : vector<2x32xf32>
    %328 = arith.mulf %317, %300 : vector<2x32xf32>
    %329 = arith.addf %327, %328 : vector<2x32xf32>
    %cst_55 = arith.constant dense<0.000000e+00> : vector<2x96xf32>
    %330 = tpu.matmul %329, %1, %cst_55 {dimension_numbers = #tpu.dot_dimension_numbers<[1], [0], [0], [1], [0, 0, 1, 1], [], []>} : vector<2x32xf32>, vector<32x96xf32>, vector<2x96xf32> -> vector<2x96xf32>
    %331 = vector.extract_strided_slice %9 {offsets = [0, 0], sizes = [2, 32], strides = [1, 1]} : vector<2x96xf32> to vector<2x32xf32>
    %332 = vector.extract_strided_slice %330 {offsets = [0, 0], sizes = [2, 32], strides = [1, 1]} : vector<2x96xf32> to vector<2x32xf32>
    %333 = arith.addf %331, %332 : vector<2x32xf32>
    %334 = arith.negf %333 : vector<2x32xf32>
    %335 = math.exp %334 : vector<2x32xf32>
    %cst_56 = arith.constant 1.000000e+00 : f32
    %336 = vector.broadcast %cst_56 : f32 to vector<2x32xf32>
    %337 = arith.addf %336, %335 : vector<2x32xf32>
    %338 = arith.divf %336, %337 : vector<2x32xf32>
    %339 = vector.extract_strided_slice %9 {offsets = [0, 32], sizes = [2, 32], strides = [1, 1]} : vector<2x96xf32> to vector<2x32xf32>
    %340 = vector.extract_strided_slice %330 {offsets = [0, 32], sizes = [2, 32], strides = [1, 1]} : vector<2x96xf32> to vector<2x32xf32>
    %341 = arith.addf %339, %340 : vector<2x32xf32>
    %342 = arith.negf %341 : vector<2x32xf32>
    %343 = math.exp %342 : vector<2x32xf32>
    %cst_57 = arith.constant 1.000000e+00 : f32
    %344 = vector.broadcast %cst_57 : f32 to vector<2x32xf32>
    %345 = arith.addf %344, %343 : vector<2x32xf32>
    %346 = arith.divf %344, %345 : vector<2x32xf32>
    %347 = vector.extract_strided_slice %9 {offsets = [0, 64], sizes = [2, 32], strides = [1, 1]} : vector<2x96xf32> to vector<2x32xf32>
    %348 = vector.extract_strided_slice %330 {offsets = [0, 64], sizes = [2, 32], strides = [1, 1]} : vector<2x96xf32> to vector<2x32xf32>
    %349 = vector.broadcast %3 : vector<1x32xf32> to vector<2x32xf32>
    %350 = arith.addf %348, %349 : vector<2x32xf32>
    %351 = arith.mulf %338, %350 : vector<2x32xf32>
    %352 = arith.addf %347, %351 : vector<2x32xf32>
    %353 = math.tanh %352 : vector<2x32xf32>
    %cst_58 = arith.constant 1.000000e+00 : f32
    %354 = vector.broadcast %cst_58 : f32 to vector<2x32xf32>
    %355 = arith.subf %354, %346 : vector<2x32xf32>
    %356 = arith.mulf %355, %353 : vector<2x32xf32>
    %357 = arith.mulf %346, %329 : vector<2x32xf32>
    %358 = arith.addf %356, %357 : vector<2x32xf32>
    %cst_59 = arith.constant dense<0.000000e+00> : vector<2x96xf32>
    %359 = tpu.matmul %358, %1, %cst_59 {dimension_numbers = #tpu.dot_dimension_numbers<[1], [0], [0], [1], [0, 0, 1, 1], [], []>} : vector<2x32xf32>, vector<32x96xf32>, vector<2x96xf32> -> vector<2x96xf32>
    %360 = vector.extract_strided_slice %9 {offsets = [0, 0], sizes = [2, 32], strides = [1, 1]} : vector<2x96xf32> to vector<2x32xf32>
    %361 = vector.extract_strided_slice %359 {offsets = [0, 0], sizes = [2, 32], strides = [1, 1]} : vector<2x96xf32> to vector<2x32xf32>
    %362 = arith.addf %360, %361 : vector<2x32xf32>
    %363 = arith.negf %362 : vector<2x32xf32>
    %364 = math.exp %363 : vector<2x32xf32>
    %cst_60 = arith.constant 1.000000e+00 : f32
    %365 = vector.broadcast %cst_60 : f32 to vector<2x32xf32>
    %366 = arith.addf %365, %364 : vector<2x32xf32>
    %367 = arith.divf %365, %366 : vector<2x32xf32>
    %368 = vector.extract_strided_slice %9 {offsets = [0, 32], sizes = [2, 32], strides = [1, 1]} : vector<2x96xf32> to vector<2x32xf32>
    %369 = vector.extract_strided_slice %359 {offsets = [0, 32], sizes = [2, 32], strides = [1, 1]} : vector<2x96xf32> to vector<2x32xf32>
    %370 = arith.addf %368, %369 : vector<2x32xf32>
    %371 = arith.negf %370 : vector<2x32xf32>
    %372 = math.exp %371 : vector<2x32xf32>
    %cst_61 = arith.constant 1.000000e+00 : f32
    %373 = vector.broadcast %cst_61 : f32 to vector<2x32xf32>
    %374 = arith.addf %373, %372 : vector<2x32xf32>
    %375 = arith.divf %373, %374 : vector<2x32xf32>
    %376 = vector.extract_strided_slice %9 {offsets = [0, 64], sizes = [2, 32], strides = [1, 1]} : vector<2x96xf32> to vector<2x32xf32>
    %377 = vector.extract_strided_slice %359 {offsets = [0, 64], sizes = [2, 32], strides = [1, 1]} : vector<2x96xf32> to vector<2x32xf32>
    %378 = vector.broadcast %3 : vector<1x32xf32> to vector<2x32xf32>
    %379 = arith.addf %377, %378 : vector<2x32xf32>
    %380 = arith.mulf %367, %379 : vector<2x32xf32>
    %381 = arith.addf %376, %380 : vector<2x32xf32>
    %382 = math.tanh %381 : vector<2x32xf32>
    %cst_62 = arith.constant 1.000000e+00 : f32
    %383 = vector.broadcast %cst_62 : f32 to vector<2x32xf32>
    %384 = arith.subf %383, %375 : vector<2x32xf32>
    %385 = arith.mulf %384, %382 : vector<2x32xf32>
    %386 = arith.mulf %375, %358 : vector<2x32xf32>
    %387 = arith.addf %385, %386 : vector<2x32xf32>
    %cst_63 = arith.constant dense<0.000000e+00> : vector<2x96xf32>
    %388 = tpu.matmul %387, %1, %cst_63 {dimension_numbers = #tpu.dot_dimension_numbers<[1], [0], [0], [1], [0, 0, 1, 1], [], []>} : vector<2x32xf32>, vector<32x96xf32>, vector<2x96xf32> -> vector<2x96xf32>
    %389 = vector.extract_strided_slice %9 {offsets = [0, 0], sizes = [2, 32], strides = [1, 1]} : vector<2x96xf32> to vector<2x32xf32>
    %390 = vector.extract_strided_slice %388 {offsets = [0, 0], sizes = [2, 32], strides = [1, 1]} : vector<2x96xf32> to vector<2x32xf32>
    %391 = arith.addf %389, %390 : vector<2x32xf32>
    %392 = arith.negf %391 : vector<2x32xf32>
    %393 = math.exp %392 : vector<2x32xf32>
    %cst_64 = arith.constant 1.000000e+00 : f32
    %394 = vector.broadcast %cst_64 : f32 to vector<2x32xf32>
    %395 = arith.addf %394, %393 : vector<2x32xf32>
    %396 = arith.divf %394, %395 : vector<2x32xf32>
    %397 = vector.extract_strided_slice %9 {offsets = [0, 32], sizes = [2, 32], strides = [1, 1]} : vector<2x96xf32> to vector<2x32xf32>
    %398 = vector.extract_strided_slice %388 {offsets = [0, 32], sizes = [2, 32], strides = [1, 1]} : vector<2x96xf32> to vector<2x32xf32>
    %399 = arith.addf %397, %398 : vector<2x32xf32>
    %400 = arith.negf %399 : vector<2x32xf32>
    %401 = math.exp %400 : vector<2x32xf32>
    %cst_65 = arith.constant 1.000000e+00 : f32
    %402 = vector.broadcast %cst_65 : f32 to vector<2x32xf32>
    %403 = arith.addf %402, %401 : vector<2x32xf32>
    %404 = arith.divf %402, %403 : vector<2x32xf32>
    %405 = vector.extract_strided_slice %9 {offsets = [0, 64], sizes = [2, 32], strides = [1, 1]} : vector<2x96xf32> to vector<2x32xf32>
    %406 = vector.extract_strided_slice %388 {offsets = [0, 64], sizes = [2, 32], strides = [1, 1]} : vector<2x96xf32> to vector<2x32xf32>
    %407 = vector.broadcast %3 : vector<1x32xf32> to vector<2x32xf32>
    %408 = arith.addf %406, %407 : vector<2x32xf32>
    %409 = arith.mulf %396, %408 : vector<2x32xf32>
    %410 = arith.addf %405, %409 : vector<2x32xf32>
    %411 = math.tanh %410 : vector<2x32xf32>
    %cst_66 = arith.constant 1.000000e+00 : f32
    %412 = vector.broadcast %cst_66 : f32 to vector<2x32xf32>
    %413 = arith.subf %412, %404 : vector<2x32xf32>
    %414 = arith.mulf %413, %411 : vector<2x32xf32>
    %415 = arith.mulf %404, %387 : vector<2x32xf32>
    %416 = arith.addf %414, %415 : vector<2x32xf32>
    %cst_67 = arith.constant dense<0.000000e+00> : vector<2x96xf32>
    %417 = tpu.matmul %416, %1, %cst_67 {dimension_numbers = #tpu.dot_dimension_numbers<[1], [0], [0], [1], [0, 0, 1, 1], [], []>} : vector<2x32xf32>, vector<32x96xf32>, vector<2x96xf32> -> vector<2x96xf32>
    %418 = vector.extract_strided_slice %9 {offsets = [0, 0], sizes = [2, 32], strides = [1, 1]} : vector<2x96xf32> to vector<2x32xf32>
    %419 = vector.extract_strided_slice %417 {offsets = [0, 0], sizes = [2, 32], strides = [1, 1]} : vector<2x96xf32> to vector<2x32xf32>
    %420 = arith.addf %418, %419 : vector<2x32xf32>
    %421 = arith.negf %420 : vector<2x32xf32>
    %422 = math.exp %421 : vector<2x32xf32>
    %cst_68 = arith.constant 1.000000e+00 : f32
    %423 = vector.broadcast %cst_68 : f32 to vector<2x32xf32>
    %424 = arith.addf %423, %422 : vector<2x32xf32>
    %425 = arith.divf %423, %424 : vector<2x32xf32>
    %426 = vector.extract_strided_slice %9 {offsets = [0, 32], sizes = [2, 32], strides = [1, 1]} : vector<2x96xf32> to vector<2x32xf32>
    %427 = vector.extract_strided_slice %417 {offsets = [0, 32], sizes = [2, 32], strides = [1, 1]} : vector<2x96xf32> to vector<2x32xf32>
    %428 = arith.addf %426, %427 : vector<2x32xf32>
    %429 = arith.negf %428 : vector<2x32xf32>
    %430 = math.exp %429 : vector<2x32xf32>
    %cst_69 = arith.constant 1.000000e+00 : f32
    %431 = vector.broadcast %cst_69 : f32 to vector<2x32xf32>
    %432 = arith.addf %431, %430 : vector<2x32xf32>
    %433 = arith.divf %431, %432 : vector<2x32xf32>
    %434 = vector.extract_strided_slice %9 {offsets = [0, 64], sizes = [2, 32], strides = [1, 1]} : vector<2x96xf32> to vector<2x32xf32>
    %435 = vector.extract_strided_slice %417 {offsets = [0, 64], sizes = [2, 32], strides = [1, 1]} : vector<2x96xf32> to vector<2x32xf32>
    %436 = vector.broadcast %3 : vector<1x32xf32> to vector<2x32xf32>
    %437 = arith.addf %435, %436 : vector<2x32xf32>
    %438 = arith.mulf %425, %437 : vector<2x32xf32>
    %439 = arith.addf %434, %438 : vector<2x32xf32>
    %440 = math.tanh %439 : vector<2x32xf32>
    %cst_70 = arith.constant 1.000000e+00 : f32
    %441 = vector.broadcast %cst_70 : f32 to vector<2x32xf32>
    %442 = arith.subf %441, %433 : vector<2x32xf32>
    %443 = arith.mulf %442, %440 : vector<2x32xf32>
    %444 = arith.mulf %433, %416 : vector<2x32xf32>
    %445 = arith.addf %443, %444 : vector<2x32xf32>
    %cst_71 = arith.constant dense<0.000000e+00> : vector<2x96xf32>
    %446 = tpu.matmul %445, %1, %cst_71 {dimension_numbers = #tpu.dot_dimension_numbers<[1], [0], [0], [1], [0, 0, 1, 1], [], []>} : vector<2x32xf32>, vector<32x96xf32>, vector<2x96xf32> -> vector<2x96xf32>
    %447 = vector.extract_strided_slice %9 {offsets = [0, 0], sizes = [2, 32], strides = [1, 1]} : vector<2x96xf32> to vector<2x32xf32>
    %448 = vector.extract_strided_slice %446 {offsets = [0, 0], sizes = [2, 32], strides = [1, 1]} : vector<2x96xf32> to vector<2x32xf32>
    %449 = arith.addf %447, %448 : vector<2x32xf32>
    %450 = arith.negf %449 : vector<2x32xf32>
    %451 = math.exp %450 : vector<2x32xf32>
    %cst_72 = arith.constant 1.000000e+00 : f32
    %452 = vector.broadcast %cst_72 : f32 to vector<2x32xf32>
    %453 = arith.addf %452, %451 : vector<2x32xf32>
    %454 = arith.divf %452, %453 : vector<2x32xf32>
    %455 = vector.extract_strided_slice %9 {offsets = [0, 32], sizes = [2, 32], strides = [1, 1]} : vector<2x96xf32> to vector<2x32xf32>
    %456 = vector.extract_strided_slice %446 {offsets = [0, 32], sizes = [2, 32], strides = [1, 1]} : vector<2x96xf32> to vector<2x32xf32>
    %457 = arith.addf %455, %456 : vector<2x32xf32>
    %458 = arith.negf %457 : vector<2x32xf32>
    %459 = math.exp %458 : vector<2x32xf32>
    %cst_73 = arith.constant 1.000000e+00 : f32
    %460 = vector.broadcast %cst_73 : f32 to vector<2x32xf32>
    %461 = arith.addf %460, %459 : vector<2x32xf32>
    %462 = arith.divf %460, %461 : vector<2x32xf32>
    %463 = vector.extract_strided_slice %9 {offsets = [0, 64], sizes = [2, 32], strides = [1, 1]} : vector<2x96xf32> to vector<2x32xf32>
    %464 = vector.extract_strided_slice %446 {offsets = [0, 64], sizes = [2, 32], strides = [1, 1]} : vector<2x96xf32> to vector<2x32xf32>
    %465 = vector.broadcast %3 : vector<1x32xf32> to vector<2x32xf32>
    %466 = arith.addf %464, %465 : vector<2x32xf32>
    %467 = arith.mulf %454, %466 : vector<2x32xf32>
    %468 = arith.addf %463, %467 : vector<2x32xf32>
    %469 = math.tanh %468 : vector<2x32xf32>
    %cst_74 = arith.constant 1.000000e+00 : f32
    %470 = vector.broadcast %cst_74 : f32 to vector<2x32xf32>
    %471 = arith.subf %470, %462 : vector<2x32xf32>
    %472 = arith.mulf %471, %469 : vector<2x32xf32>
    %473 = arith.mulf %462, %445 : vector<2x32xf32>
    %474 = arith.addf %472, %473 : vector<2x32xf32>
    %cst_75 = arith.constant dense<0.000000e+00> : vector<2x96xf32>
    %475 = tpu.matmul %474, %1, %cst_75 {dimension_numbers = #tpu.dot_dimension_numbers<[1], [0], [0], [1], [0, 0, 1, 1], [], []>} : vector<2x32xf32>, vector<32x96xf32>, vector<2x96xf32> -> vector<2x96xf32>
    %476 = vector.extract_strided_slice %9 {offsets = [0, 0], sizes = [2, 32], strides = [1, 1]} : vector<2x96xf32> to vector<2x32xf32>
    %477 = vector.extract_strided_slice %475 {offsets = [0, 0], sizes = [2, 32], strides = [1, 1]} : vector<2x96xf32> to vector<2x32xf32>
    %478 = arith.addf %476, %477 : vector<2x32xf32>
    %479 = arith.negf %478 : vector<2x32xf32>
    %480 = math.exp %479 : vector<2x32xf32>
    %cst_76 = arith.constant 1.000000e+00 : f32
    %481 = vector.broadcast %cst_76 : f32 to vector<2x32xf32>
    %482 = arith.addf %481, %480 : vector<2x32xf32>
    %483 = arith.divf %481, %482 : vector<2x32xf32>
    %484 = vector.extract_strided_slice %9 {offsets = [0, 32], sizes = [2, 32], strides = [1, 1]} : vector<2x96xf32> to vector<2x32xf32>
    %485 = vector.extract_strided_slice %475 {offsets = [0, 32], sizes = [2, 32], strides = [1, 1]} : vector<2x96xf32> to vector<2x32xf32>
    %486 = arith.addf %484, %485 : vector<2x32xf32>
    %487 = arith.negf %486 : vector<2x32xf32>
    %488 = math.exp %487 : vector<2x32xf32>
    %cst_77 = arith.constant 1.000000e+00 : f32
    %489 = vector.broadcast %cst_77 : f32 to vector<2x32xf32>
    %490 = arith.addf %489, %488 : vector<2x32xf32>
    %491 = arith.divf %489, %490 : vector<2x32xf32>
    %492 = vector.extract_strided_slice %9 {offsets = [0, 64], sizes = [2, 32], strides = [1, 1]} : vector<2x96xf32> to vector<2x32xf32>
    %493 = vector.extract_strided_slice %475 {offsets = [0, 64], sizes = [2, 32], strides = [1, 1]} : vector<2x96xf32> to vector<2x32xf32>
    %494 = vector.broadcast %3 : vector<1x32xf32> to vector<2x32xf32>
    %495 = arith.addf %493, %494 : vector<2x32xf32>
    %496 = arith.mulf %483, %495 : vector<2x32xf32>
    %497 = arith.addf %492, %496 : vector<2x32xf32>
    %498 = math.tanh %497 : vector<2x32xf32>
    %cst_78 = arith.constant 1.000000e+00 : f32
    %499 = vector.broadcast %cst_78 : f32 to vector<2x32xf32>
    %500 = arith.subf %499, %491 : vector<2x32xf32>
    %501 = arith.mulf %500, %498 : vector<2x32xf32>
    %502 = arith.mulf %491, %474 : vector<2x32xf32>
    %503 = arith.addf %501, %502 : vector<2x32xf32>
    %cst_79 = arith.constant dense<0.000000e+00> : vector<2x96xf32>
    %504 = tpu.matmul %503, %1, %cst_79 {dimension_numbers = #tpu.dot_dimension_numbers<[1], [0], [0], [1], [0, 0, 1, 1], [], []>} : vector<2x32xf32>, vector<32x96xf32>, vector<2x96xf32> -> vector<2x96xf32>
    %505 = vector.extract_strided_slice %9 {offsets = [0, 0], sizes = [2, 32], strides = [1, 1]} : vector<2x96xf32> to vector<2x32xf32>
    %506 = vector.extract_strided_slice %504 {offsets = [0, 0], sizes = [2, 32], strides = [1, 1]} : vector<2x96xf32> to vector<2x32xf32>
    %507 = arith.addf %505, %506 : vector<2x32xf32>
    %508 = arith.negf %507 : vector<2x32xf32>
    %509 = math.exp %508 : vector<2x32xf32>
    %cst_80 = arith.constant 1.000000e+00 : f32
    %510 = vector.broadcast %cst_80 : f32 to vector<2x32xf32>
    %511 = arith.addf %510, %509 : vector<2x32xf32>
    %512 = arith.divf %510, %511 : vector<2x32xf32>
    %513 = vector.extract_strided_slice %9 {offsets = [0, 32], sizes = [2, 32], strides = [1, 1]} : vector<2x96xf32> to vector<2x32xf32>
    %514 = vector.extract_strided_slice %504 {offsets = [0, 32], sizes = [2, 32], strides = [1, 1]} : vector<2x96xf32> to vector<2x32xf32>
    %515 = arith.addf %513, %514 : vector<2x32xf32>
    %516 = arith.negf %515 : vector<2x32xf32>
    %517 = math.exp %516 : vector<2x32xf32>
    %cst_81 = arith.constant 1.000000e+00 : f32
    %518 = vector.broadcast %cst_81 : f32 to vector<2x32xf32>
    %519 = arith.addf %518, %517 : vector<2x32xf32>
    %520 = arith.divf %518, %519 : vector<2x32xf32>
    %521 = vector.extract_strided_slice %9 {offsets = [0, 64], sizes = [2, 32], strides = [1, 1]} : vector<2x96xf32> to vector<2x32xf32>
    %522 = vector.extract_strided_slice %504 {offsets = [0, 64], sizes = [2, 32], strides = [1, 1]} : vector<2x96xf32> to vector<2x32xf32>
    %523 = vector.broadcast %3 : vector<1x32xf32> to vector<2x32xf32>
    %524 = arith.addf %522, %523 : vector<2x32xf32>
    %525 = arith.mulf %512, %524 : vector<2x32xf32>
    %526 = arith.addf %521, %525 : vector<2x32xf32>
    %527 = math.tanh %526 : vector<2x32xf32>
    %cst_82 = arith.constant 1.000000e+00 : f32
    %528 = vector.broadcast %cst_82 : f32 to vector<2x32xf32>
    %529 = arith.subf %528, %520 : vector<2x32xf32>
    %530 = arith.mulf %529, %527 : vector<2x32xf32>
    %531 = arith.mulf %520, %503 : vector<2x32xf32>
    %532 = arith.addf %530, %531 : vector<2x32xf32>
    %cst_83 = arith.constant dense<0.000000e+00> : vector<2x96xf32>
    %533 = tpu.matmul %532, %1, %cst_83 {dimension_numbers = #tpu.dot_dimension_numbers<[1], [0], [0], [1], [0, 0, 1, 1], [], []>} : vector<2x32xf32>, vector<32x96xf32>, vector<2x96xf32> -> vector<2x96xf32>
    %534 = vector.extract_strided_slice %9 {offsets = [0, 0], sizes = [2, 32], strides = [1, 1]} : vector<2x96xf32> to vector<2x32xf32>
    %535 = vector.extract_strided_slice %533 {offsets = [0, 0], sizes = [2, 32], strides = [1, 1]} : vector<2x96xf32> to vector<2x32xf32>
    %536 = arith.addf %534, %535 : vector<2x32xf32>
    %537 = arith.negf %536 : vector<2x32xf32>
    %538 = math.exp %537 : vector<2x32xf32>
    %cst_84 = arith.constant 1.000000e+00 : f32
    %539 = vector.broadcast %cst_84 : f32 to vector<2x32xf32>
    %540 = arith.addf %539, %538 : vector<2x32xf32>
    %541 = arith.divf %539, %540 : vector<2x32xf32>
    %542 = vector.extract_strided_slice %9 {offsets = [0, 32], sizes = [2, 32], strides = [1, 1]} : vector<2x96xf32> to vector<2x32xf32>
    %543 = vector.extract_strided_slice %533 {offsets = [0, 32], sizes = [2, 32], strides = [1, 1]} : vector<2x96xf32> to vector<2x32xf32>
    %544 = arith.addf %542, %543 : vector<2x32xf32>
    %545 = arith.negf %544 : vector<2x32xf32>
    %546 = math.exp %545 : vector<2x32xf32>
    %cst_85 = arith.constant 1.000000e+00 : f32
    %547 = vector.broadcast %cst_85 : f32 to vector<2x32xf32>
    %548 = arith.addf %547, %546 : vector<2x32xf32>
    %549 = arith.divf %547, %548 : vector<2x32xf32>
    %550 = vector.extract_strided_slice %9 {offsets = [0, 64], sizes = [2, 32], strides = [1, 1]} : vector<2x96xf32> to vector<2x32xf32>
    %551 = vector.extract_strided_slice %533 {offsets = [0, 64], sizes = [2, 32], strides = [1, 1]} : vector<2x96xf32> to vector<2x32xf32>
    %552 = vector.broadcast %3 : vector<1x32xf32> to vector<2x32xf32>
    %553 = arith.addf %551, %552 : vector<2x32xf32>
    %554 = arith.mulf %541, %553 : vector<2x32xf32>
    %555 = arith.addf %550, %554 : vector<2x32xf32>
    %556 = math.tanh %555 : vector<2x32xf32>
    %cst_86 = arith.constant 1.000000e+00 : f32
    %557 = vector.broadcast %cst_86 : f32 to vector<2x32xf32>
    %558 = arith.subf %557, %549 : vector<2x32xf32>
    %559 = arith.mulf %558, %556 : vector<2x32xf32>
    %560 = arith.mulf %549, %532 : vector<2x32xf32>
    %561 = arith.addf %559, %560 : vector<2x32xf32>
    %cst_87 = arith.constant dense<0.000000e+00> : vector<2x96xf32>
    %562 = tpu.matmul %561, %1, %cst_87 {dimension_numbers = #tpu.dot_dimension_numbers<[1], [0], [0], [1], [0, 0, 1, 1], [], []>} : vector<2x32xf32>, vector<32x96xf32>, vector<2x96xf32> -> vector<2x96xf32>
    %563 = vector.extract_strided_slice %9 {offsets = [0, 0], sizes = [2, 32], strides = [1, 1]} : vector<2x96xf32> to vector<2x32xf32>
    %564 = vector.extract_strided_slice %562 {offsets = [0, 0], sizes = [2, 32], strides = [1, 1]} : vector<2x96xf32> to vector<2x32xf32>
    %565 = arith.addf %563, %564 : vector<2x32xf32>
    %566 = arith.negf %565 : vector<2x32xf32>
    %567 = math.exp %566 : vector<2x32xf32>
    %cst_88 = arith.constant 1.000000e+00 : f32
    %568 = vector.broadcast %cst_88 : f32 to vector<2x32xf32>
    %569 = arith.addf %568, %567 : vector<2x32xf32>
    %570 = arith.divf %568, %569 : vector<2x32xf32>
    %571 = vector.extract_strided_slice %9 {offsets = [0, 32], sizes = [2, 32], strides = [1, 1]} : vector<2x96xf32> to vector<2x32xf32>
    %572 = vector.extract_strided_slice %562 {offsets = [0, 32], sizes = [2, 32], strides = [1, 1]} : vector<2x96xf32> to vector<2x32xf32>
    %573 = arith.addf %571, %572 : vector<2x32xf32>
    %574 = arith.negf %573 : vector<2x32xf32>
    %575 = math.exp %574 : vector<2x32xf32>
    %cst_89 = arith.constant 1.000000e+00 : f32
    %576 = vector.broadcast %cst_89 : f32 to vector<2x32xf32>
    %577 = arith.addf %576, %575 : vector<2x32xf32>
    %578 = arith.divf %576, %577 : vector<2x32xf32>
    %579 = vector.extract_strided_slice %9 {offsets = [0, 64], sizes = [2, 32], strides = [1, 1]} : vector<2x96xf32> to vector<2x32xf32>
    %580 = vector.extract_strided_slice %562 {offsets = [0, 64], sizes = [2, 32], strides = [1, 1]} : vector<2x96xf32> to vector<2x32xf32>
    %581 = vector.broadcast %3 : vector<1x32xf32> to vector<2x32xf32>
    %582 = arith.addf %580, %581 : vector<2x32xf32>
    %583 = arith.mulf %570, %582 : vector<2x32xf32>
    %584 = arith.addf %579, %583 : vector<2x32xf32>
    %585 = math.tanh %584 : vector<2x32xf32>
    %cst_90 = arith.constant 1.000000e+00 : f32
    %586 = vector.broadcast %cst_90 : f32 to vector<2x32xf32>
    %587 = arith.subf %586, %578 : vector<2x32xf32>
    %588 = arith.mulf %587, %585 : vector<2x32xf32>
    %589 = arith.mulf %578, %561 : vector<2x32xf32>
    %590 = arith.addf %588, %589 : vector<2x32xf32>
    %cst_91 = arith.constant dense<0.000000e+00> : vector<2x96xf32>
    %591 = tpu.matmul %590, %1, %cst_91 {dimension_numbers = #tpu.dot_dimension_numbers<[1], [0], [0], [1], [0, 0, 1, 1], [], []>} : vector<2x32xf32>, vector<32x96xf32>, vector<2x96xf32> -> vector<2x96xf32>
    %592 = vector.extract_strided_slice %9 {offsets = [0, 0], sizes = [2, 32], strides = [1, 1]} : vector<2x96xf32> to vector<2x32xf32>
    %593 = vector.extract_strided_slice %591 {offsets = [0, 0], sizes = [2, 32], strides = [1, 1]} : vector<2x96xf32> to vector<2x32xf32>
    %594 = arith.addf %592, %593 : vector<2x32xf32>
    %595 = arith.negf %594 : vector<2x32xf32>
    %596 = math.exp %595 : vector<2x32xf32>
    %cst_92 = arith.constant 1.000000e+00 : f32
    %597 = vector.broadcast %cst_92 : f32 to vector<2x32xf32>
    %598 = arith.addf %597, %596 : vector<2x32xf32>
    %599 = arith.divf %597, %598 : vector<2x32xf32>
    %600 = vector.extract_strided_slice %9 {offsets = [0, 32], sizes = [2, 32], strides = [1, 1]} : vector<2x96xf32> to vector<2x32xf32>
    %601 = vector.extract_strided_slice %591 {offsets = [0, 32], sizes = [2, 32], strides = [1, 1]} : vector<2x96xf32> to vector<2x32xf32>
    %602 = arith.addf %600, %601 : vector<2x32xf32>
    %603 = arith.negf %602 : vector<2x32xf32>
    %604 = math.exp %603 : vector<2x32xf32>
    %cst_93 = arith.constant 1.000000e+00 : f32
    %605 = vector.broadcast %cst_93 : f32 to vector<2x32xf32>
    %606 = arith.addf %605, %604 : vector<2x32xf32>
    %607 = arith.divf %605, %606 : vector<2x32xf32>
    %608 = vector.extract_strided_slice %9 {offsets = [0, 64], sizes = [2, 32], strides = [1, 1]} : vector<2x96xf32> to vector<2x32xf32>
    %609 = vector.extract_strided_slice %591 {offsets = [0, 64], sizes = [2, 32], strides = [1, 1]} : vector<2x96xf32> to vector<2x32xf32>
    %610 = vector.broadcast %3 : vector<1x32xf32> to vector<2x32xf32>
    %611 = arith.addf %609, %610 : vector<2x32xf32>
    %612 = arith.mulf %599, %611 : vector<2x32xf32>
    %613 = arith.addf %608, %612 : vector<2x32xf32>
    %614 = math.tanh %613 : vector<2x32xf32>
    %cst_94 = arith.constant 1.000000e+00 : f32
    %615 = vector.broadcast %cst_94 : f32 to vector<2x32xf32>
    %616 = arith.subf %615, %607 : vector<2x32xf32>
    %617 = arith.mulf %616, %614 : vector<2x32xf32>
    %618 = arith.mulf %607, %590 : vector<2x32xf32>
    %619 = arith.addf %617, %618 : vector<2x32xf32>
    %cst_95 = arith.constant dense<0.000000e+00> : vector<2x96xf32>
    %620 = tpu.matmul %619, %1, %cst_95 {dimension_numbers = #tpu.dot_dimension_numbers<[1], [0], [0], [1], [0, 0, 1, 1], [], []>} : vector<2x32xf32>, vector<32x96xf32>, vector<2x96xf32> -> vector<2x96xf32>
    %621 = vector.extract_strided_slice %9 {offsets = [0, 0], sizes = [2, 32], strides = [1, 1]} : vector<2x96xf32> to vector<2x32xf32>
    %622 = vector.extract_strided_slice %620 {offsets = [0, 0], sizes = [2, 32], strides = [1, 1]} : vector<2x96xf32> to vector<2x32xf32>
    %623 = arith.addf %621, %622 : vector<2x32xf32>
    %624 = arith.negf %623 : vector<2x32xf32>
    %625 = math.exp %624 : vector<2x32xf32>
    %cst_96 = arith.constant 1.000000e+00 : f32
    %626 = vector.broadcast %cst_96 : f32 to vector<2x32xf32>
    %627 = arith.addf %626, %625 : vector<2x32xf32>
    %628 = arith.divf %626, %627 : vector<2x32xf32>
    %629 = vector.extract_strided_slice %9 {offsets = [0, 32], sizes = [2, 32], strides = [1, 1]} : vector<2x96xf32> to vector<2x32xf32>
    %630 = vector.extract_strided_slice %620 {offsets = [0, 32], sizes = [2, 32], strides = [1, 1]} : vector<2x96xf32> to vector<2x32xf32>
    %631 = arith.addf %629, %630 : vector<2x32xf32>
    %632 = arith.negf %631 : vector<2x32xf32>
    %633 = math.exp %632 : vector<2x32xf32>
    %cst_97 = arith.constant 1.000000e+00 : f32
    %634 = vector.broadcast %cst_97 : f32 to vector<2x32xf32>
    %635 = arith.addf %634, %633 : vector<2x32xf32>
    %636 = arith.divf %634, %635 : vector<2x32xf32>
    %637 = vector.extract_strided_slice %9 {offsets = [0, 64], sizes = [2, 32], strides = [1, 1]} : vector<2x96xf32> to vector<2x32xf32>
    %638 = vector.extract_strided_slice %620 {offsets = [0, 64], sizes = [2, 32], strides = [1, 1]} : vector<2x96xf32> to vector<2x32xf32>
    %639 = vector.broadcast %3 : vector<1x32xf32> to vector<2x32xf32>
    %640 = arith.addf %638, %639 : vector<2x32xf32>
    %641 = arith.mulf %628, %640 : vector<2x32xf32>
    %642 = arith.addf %637, %641 : vector<2x32xf32>
    %643 = math.tanh %642 : vector<2x32xf32>
    %cst_98 = arith.constant 1.000000e+00 : f32
    %644 = vector.broadcast %cst_98 : f32 to vector<2x32xf32>
    %645 = arith.subf %644, %636 : vector<2x32xf32>
    %646 = arith.mulf %645, %643 : vector<2x32xf32>
    %647 = arith.mulf %636, %619 : vector<2x32xf32>
    %648 = arith.addf %646, %647 : vector<2x32xf32>
    %cst_99 = arith.constant dense<0.000000e+00> : vector<2x96xf32>
    %649 = tpu.matmul %648, %1, %cst_99 {dimension_numbers = #tpu.dot_dimension_numbers<[1], [0], [0], [1], [0, 0, 1, 1], [], []>} : vector<2x32xf32>, vector<32x96xf32>, vector<2x96xf32> -> vector<2x96xf32>
    %650 = vector.extract_strided_slice %9 {offsets = [0, 0], sizes = [2, 32], strides = [1, 1]} : vector<2x96xf32> to vector<2x32xf32>
    %651 = vector.extract_strided_slice %649 {offsets = [0, 0], sizes = [2, 32], strides = [1, 1]} : vector<2x96xf32> to vector<2x32xf32>
    %652 = arith.addf %650, %651 : vector<2x32xf32>
    %653 = arith.negf %652 : vector<2x32xf32>
    %654 = math.exp %653 : vector<2x32xf32>
    %cst_100 = arith.constant 1.000000e+00 : f32
    %655 = vector.broadcast %cst_100 : f32 to vector<2x32xf32>
    %656 = arith.addf %655, %654 : vector<2x32xf32>
    %657 = arith.divf %655, %656 : vector<2x32xf32>
    %658 = vector.extract_strided_slice %9 {offsets = [0, 32], sizes = [2, 32], strides = [1, 1]} : vector<2x96xf32> to vector<2x32xf32>
    %659 = vector.extract_strided_slice %649 {offsets = [0, 32], sizes = [2, 32], strides = [1, 1]} : vector<2x96xf32> to vector<2x32xf32>
    %660 = arith.addf %658, %659 : vector<2x32xf32>
    %661 = arith.negf %660 : vector<2x32xf32>
    %662 = math.exp %661 : vector<2x32xf32>
    %cst_101 = arith.constant 1.000000e+00 : f32
    %663 = vector.broadcast %cst_101 : f32 to vector<2x32xf32>
    %664 = arith.addf %663, %662 : vector<2x32xf32>
    %665 = arith.divf %663, %664 : vector<2x32xf32>
    %666 = vector.extract_strided_slice %9 {offsets = [0, 64], sizes = [2, 32], strides = [1, 1]} : vector<2x96xf32> to vector<2x32xf32>
    %667 = vector.extract_strided_slice %649 {offsets = [0, 64], sizes = [2, 32], strides = [1, 1]} : vector<2x96xf32> to vector<2x32xf32>
    %668 = vector.broadcast %3 : vector<1x32xf32> to vector<2x32xf32>
    %669 = arith.addf %667, %668 : vector<2x32xf32>
    %670 = arith.mulf %657, %669 : vector<2x32xf32>
    %671 = arith.addf %666, %670 : vector<2x32xf32>
    %672 = math.tanh %671 : vector<2x32xf32>
    %cst_102 = arith.constant 1.000000e+00 : f32
    %673 = vector.broadcast %cst_102 : f32 to vector<2x32xf32>
    %674 = arith.subf %673, %665 : vector<2x32xf32>
    %675 = arith.mulf %674, %672 : vector<2x32xf32>
    %676 = arith.mulf %665, %648 : vector<2x32xf32>
    %677 = arith.addf %675, %676 : vector<2x32xf32>
    %cst_103 = arith.constant dense<0.000000e+00> : vector<2x96xf32>
    %678 = tpu.matmul %677, %1, %cst_103 {dimension_numbers = #tpu.dot_dimension_numbers<[1], [0], [0], [1], [0, 0, 1, 1], [], []>} : vector<2x32xf32>, vector<32x96xf32>, vector<2x96xf32> -> vector<2x96xf32>
    %679 = vector.extract_strided_slice %9 {offsets = [0, 0], sizes = [2, 32], strides = [1, 1]} : vector<2x96xf32> to vector<2x32xf32>
    %680 = vector.extract_strided_slice %678 {offsets = [0, 0], sizes = [2, 32], strides = [1, 1]} : vector<2x96xf32> to vector<2x32xf32>
    %681 = arith.addf %679, %680 : vector<2x32xf32>
    %682 = arith.negf %681 : vector<2x32xf32>
    %683 = math.exp %682 : vector<2x32xf32>
    %cst_104 = arith.constant 1.000000e+00 : f32
    %684 = vector.broadcast %cst_104 : f32 to vector<2x32xf32>
    %685 = arith.addf %684, %683 : vector<2x32xf32>
    %686 = arith.divf %684, %685 : vector<2x32xf32>
    %687 = vector.extract_strided_slice %9 {offsets = [0, 32], sizes = [2, 32], strides = [1, 1]} : vector<2x96xf32> to vector<2x32xf32>
    %688 = vector.extract_strided_slice %678 {offsets = [0, 32], sizes = [2, 32], strides = [1, 1]} : vector<2x96xf32> to vector<2x32xf32>
    %689 = arith.addf %687, %688 : vector<2x32xf32>
    %690 = arith.negf %689 : vector<2x32xf32>
    %691 = math.exp %690 : vector<2x32xf32>
    %cst_105 = arith.constant 1.000000e+00 : f32
    %692 = vector.broadcast %cst_105 : f32 to vector<2x32xf32>
    %693 = arith.addf %692, %691 : vector<2x32xf32>
    %694 = arith.divf %692, %693 : vector<2x32xf32>
    %695 = vector.extract_strided_slice %9 {offsets = [0, 64], sizes = [2, 32], strides = [1, 1]} : vector<2x96xf32> to vector<2x32xf32>
    %696 = vector.extract_strided_slice %678 {offsets = [0, 64], sizes = [2, 32], strides = [1, 1]} : vector<2x96xf32> to vector<2x32xf32>
    %697 = vector.broadcast %3 : vector<1x32xf32> to vector<2x32xf32>
    %698 = arith.addf %696, %697 : vector<2x32xf32>
    %699 = arith.mulf %686, %698 : vector<2x32xf32>
    %700 = arith.addf %695, %699 : vector<2x32xf32>
    %701 = math.tanh %700 : vector<2x32xf32>
    %cst_106 = arith.constant 1.000000e+00 : f32
    %702 = vector.broadcast %cst_106 : f32 to vector<2x32xf32>
    %703 = arith.subf %702, %694 : vector<2x32xf32>
    %704 = arith.mulf %703, %701 : vector<2x32xf32>
    %705 = arith.mulf %694, %677 : vector<2x32xf32>
    %706 = arith.addf %704, %705 : vector<2x32xf32>
    %707 = vector.extract_strided_slice %8 {offsets = [0, 0], sizes = [2, 96], strides = [1, 1]} : vector<16x96xf32> to vector<2x96xf32>
    %cst_107 = arith.constant dense<0.000000e+00> : vector<2x96xf32>
    %708 = tpu.matmul %706, %1, %cst_107 {dimension_numbers = #tpu.dot_dimension_numbers<[1], [0], [0], [1], [0, 0, 1, 1], [], []>} : vector<2x32xf32>, vector<32x96xf32>, vector<2x96xf32> -> vector<2x96xf32>
    %709 = vector.extract_strided_slice %707 {offsets = [0, 0], sizes = [2, 32], strides = [1, 1]} : vector<2x96xf32> to vector<2x32xf32>
    %710 = vector.extract_strided_slice %708 {offsets = [0, 0], sizes = [2, 32], strides = [1, 1]} : vector<2x96xf32> to vector<2x32xf32>
    %711 = arith.addf %709, %710 : vector<2x32xf32>
    %712 = arith.negf %711 : vector<2x32xf32>
    %713 = math.exp %712 : vector<2x32xf32>
    %cst_108 = arith.constant 1.000000e+00 : f32
    %714 = vector.broadcast %cst_108 : f32 to vector<2x32xf32>
    %715 = arith.addf %714, %713 : vector<2x32xf32>
    %716 = arith.divf %714, %715 : vector<2x32xf32>
    %717 = vector.extract_strided_slice %707 {offsets = [0, 32], sizes = [2, 32], strides = [1, 1]} : vector<2x96xf32> to vector<2x32xf32>
    %718 = vector.extract_strided_slice %708 {offsets = [0, 32], sizes = [2, 32], strides = [1, 1]} : vector<2x96xf32> to vector<2x32xf32>
    %719 = arith.addf %717, %718 : vector<2x32xf32>
    %720 = arith.negf %719 : vector<2x32xf32>
    %721 = math.exp %720 : vector<2x32xf32>
    %cst_109 = arith.constant 1.000000e+00 : f32
    %722 = vector.broadcast %cst_109 : f32 to vector<2x32xf32>
    %723 = arith.addf %722, %721 : vector<2x32xf32>
    %724 = arith.divf %722, %723 : vector<2x32xf32>
    %725 = vector.extract_strided_slice %707 {offsets = [0, 64], sizes = [2, 32], strides = [1, 1]} : vector<2x96xf32> to vector<2x32xf32>
    %726 = vector.extract_strided_slice %708 {offsets = [0, 64], sizes = [2, 32], strides = [1, 1]} : vector<2x96xf32> to vector<2x32xf32>
    %727 = vector.broadcast %3 : vector<1x32xf32> to vector<2x32xf32>
    %728 = arith.addf %726, %727 : vector<2x32xf32>
    %729 = arith.mulf %716, %728 : vector<2x32xf32>
    %730 = arith.addf %725, %729 : vector<2x32xf32>
    %731 = math.tanh %730 : vector<2x32xf32>
    %cst_110 = arith.constant 1.000000e+00 : f32
    %732 = vector.broadcast %cst_110 : f32 to vector<2x32xf32>
    %733 = arith.subf %732, %724 : vector<2x32xf32>
    %734 = arith.mulf %733, %731 : vector<2x32xf32>
    %735 = arith.mulf %724, %706 : vector<2x32xf32>
    %736 = arith.addf %734, %735 : vector<2x32xf32>
    %c0_111 = arith.constant 0 : index
    %c0_112 = arith.constant 0 : index
    %737 = vector.load %arg8[%c0_111, %c0_112] : memref<16x32xf32, #tpu.memory_space<vmem>>, vector<2x32xf32>
    tpu.vector_store %arg8[%c0_111, %c0_112], %736 {strides = array<i32>} : memref<16x32xf32, #tpu.memory_space<vmem>>, vector<2x32xf32>,
    %738 = vector.extract_strided_slice %8 {offsets = [2, 0], sizes = [2, 96], strides = [1, 1]} : vector<16x96xf32> to vector<2x96xf32>
    %cst_113 = arith.constant dense<0.000000e+00> : vector<2x96xf32>
    %739 = tpu.matmul %736, %1, %cst_113 {dimension_numbers = #tpu.dot_dimension_numbers<[1], [0], [0], [1], [0, 0, 1, 1], [], []>} : vector<2x32xf32>, vector<32x96xf32>, vector<2x96xf32> -> vector<2x96xf32>
    %740 = vector.extract_strided_slice %738 {offsets = [0, 0], sizes = [2, 32], strides = [1, 1]} : vector<2x96xf32> to vector<2x32xf32>
    %741 = vector.extract_strided_slice %739 {offsets = [0, 0], sizes = [2, 32], strides = [1, 1]} : vector<2x96xf32> to vector<2x32xf32>
    %742 = arith.addf %740, %741 : vector<2x32xf32>
    %743 = arith.negf %742 : vector<2x32xf32>
    %744 = math.exp %743 : vector<2x32xf32>
    %cst_114 = arith.constant 1.000000e+00 : f32
    %745 = vector.broadcast %cst_114 : f32 to vector<2x32xf32>
    %746 = arith.addf %745, %744 : vector<2x32xf32>
    %747 = arith.divf %745, %746 : vector<2x32xf32>
    %748 = vector.extract_strided_slice %738 {offsets = [0, 32], sizes = [2, 32], strides = [1, 1]} : vector<2x96xf32> to vector<2x32xf32>
    %749 = vector.extract_strided_slice %739 {offsets = [0, 32], sizes = [2, 32], strides = [1, 1]} : vector<2x96xf32> to vector<2x32xf32>
    %750 = arith.addf %748, %749 : vector<2x32xf32>
    %751 = arith.negf %750 : vector<2x32xf32>
    %752 = math.exp %751 : vector<2x32xf32>
    %cst_115 = arith.constant 1.000000e+00 : f32
    %753 = vector.broadcast %cst_115 : f32 to vector<2x32xf32>
    %754 = arith.addf %753, %752 : vector<2x32xf32>
    %755 = arith.divf %753, %754 : vector<2x32xf32>
    %756 = vector.extract_strided_slice %738 {offsets = [0, 64], sizes = [2, 32], strides = [1, 1]} : vector<2x96xf32> to vector<2x32xf32>
    %757 = vector.extract_strided_slice %739 {offsets = [0, 64], sizes = [2, 32], strides = [1, 1]} : vector<2x96xf32> to vector<2x32xf32>
    %758 = vector.broadcast %3 : vector<1x32xf32> to vector<2x32xf32>
    %759 = arith.addf %757, %758 : vector<2x32xf32>
    %760 = arith.mulf %747, %759 : vector<2x32xf32>
    %761 = arith.addf %756, %760 : vector<2x32xf32>
    %762 = math.tanh %761 : vector<2x32xf32>
    %cst_116 = arith.constant 1.000000e+00 : f32
    %763 = vector.broadcast %cst_116 : f32 to vector<2x32xf32>
    %764 = arith.subf %763, %755 : vector<2x32xf32>
    %765 = arith.mulf %764, %762 : vector<2x32xf32>
    %766 = arith.mulf %755, %736 : vector<2x32xf32>
    %767 = arith.addf %765, %766 : vector<2x32xf32>
    %c2 = arith.constant 2 : index
    %c0_117 = arith.constant 0 : index
    %768 = vector.load %arg8[%c2, %c0_117] : memref<16x32xf32, #tpu.memory_space<vmem>>, vector<2x32xf32>
    tpu.vector_store %arg8[%c2, %c0_117], %767 {strides = array<i32>} : memref<16x32xf32, #tpu.memory_space<vmem>>, vector<2x32xf32>,
    %769 = vector.extract_strided_slice %8 {offsets = [4, 0], sizes = [2, 96], strides = [1, 1]} : vector<16x96xf32> to vector<2x96xf32>
    %cst_118 = arith.constant dense<0.000000e+00> : vector<2x96xf32>
    %770 = tpu.matmul %767, %1, %cst_118 {dimension_numbers = #tpu.dot_dimension_numbers<[1], [0], [0], [1], [0, 0, 1, 1], [], []>} : vector<2x32xf32>, vector<32x96xf32>, vector<2x96xf32> -> vector<2x96xf32>
    %771 = vector.extract_strided_slice %769 {offsets = [0, 0], sizes = [2, 32], strides = [1, 1]} : vector<2x96xf32> to vector<2x32xf32>
    %772 = vector.extract_strided_slice %770 {offsets = [0, 0], sizes = [2, 32], strides = [1, 1]} : vector<2x96xf32> to vector<2x32xf32>
    %773 = arith.addf %771, %772 : vector<2x32xf32>
    %774 = arith.negf %773 : vector<2x32xf32>
    %775 = math.exp %774 : vector<2x32xf32>
    %cst_119 = arith.constant 1.000000e+00 : f32
    %776 = vector.broadcast %cst_119 : f32 to vector<2x32xf32>
    %777 = arith.addf %776, %775 : vector<2x32xf32>
    %778 = arith.divf %776, %777 : vector<2x32xf32>
    %779 = vector.extract_strided_slice %769 {offsets = [0, 32], sizes = [2, 32], strides = [1, 1]} : vector<2x96xf32> to vector<2x32xf32>
    %780 = vector.extract_strided_slice %770 {offsets = [0, 32], sizes = [2, 32], strides = [1, 1]} : vector<2x96xf32> to vector<2x32xf32>
    %781 = arith.addf %779, %780 : vector<2x32xf32>
    %782 = arith.negf %781 : vector<2x32xf32>
    %783 = math.exp %782 : vector<2x32xf32>
    %cst_120 = arith.constant 1.000000e+00 : f32
    %784 = vector.broadcast %cst_120 : f32 to vector<2x32xf32>
    %785 = arith.addf %784, %783 : vector<2x32xf32>
    %786 = arith.divf %784, %785 : vector<2x32xf32>
    %787 = vector.extract_strided_slice %769 {offsets = [0, 64], sizes = [2, 32], strides = [1, 1]} : vector<2x96xf32> to vector<2x32xf32>
    %788 = vector.extract_strided_slice %770 {offsets = [0, 64], sizes = [2, 32], strides = [1, 1]} : vector<2x96xf32> to vector<2x32xf32>
    %789 = vector.broadcast %3 : vector<1x32xf32> to vector<2x32xf32>
    %790 = arith.addf %788, %789 : vector<2x32xf32>
    %791 = arith.mulf %778, %790 : vector<2x32xf32>
    %792 = arith.addf %787, %791 : vector<2x32xf32>
    %793 = math.tanh %792 : vector<2x32xf32>
    %cst_121 = arith.constant 1.000000e+00 : f32
    %794 = vector.broadcast %cst_121 : f32 to vector<2x32xf32>
    %795 = arith.subf %794, %786 : vector<2x32xf32>
    %796 = arith.mulf %795, %793 : vector<2x32xf32>
    %797 = arith.mulf %786, %767 : vector<2x32xf32>
    %798 = arith.addf %796, %797 : vector<2x32xf32>
    %c4 = arith.constant 4 : index
    %c0_122 = arith.constant 0 : index
    %799 = vector.load %arg8[%c4, %c0_122] : memref<16x32xf32, #tpu.memory_space<vmem>>, vector<2x32xf32>
    tpu.vector_store %arg8[%c4, %c0_122], %798 {strides = array<i32>} : memref<16x32xf32, #tpu.memory_space<vmem>>, vector<2x32xf32>,
    %800 = vector.extract_strided_slice %8 {offsets = [6, 0], sizes = [2, 96], strides = [1, 1]} : vector<16x96xf32> to vector<2x96xf32>
    %cst_123 = arith.constant dense<0.000000e+00> : vector<2x96xf32>
    %801 = tpu.matmul %798, %1, %cst_123 {dimension_numbers = #tpu.dot_dimension_numbers<[1], [0], [0], [1], [0, 0, 1, 1], [], []>} : vector<2x32xf32>, vector<32x96xf32>, vector<2x96xf32> -> vector<2x96xf32>
    %802 = vector.extract_strided_slice %800 {offsets = [0, 0], sizes = [2, 32], strides = [1, 1]} : vector<2x96xf32> to vector<2x32xf32>
    %803 = vector.extract_strided_slice %801 {offsets = [0, 0], sizes = [2, 32], strides = [1, 1]} : vector<2x96xf32> to vector<2x32xf32>
    %804 = arith.addf %802, %803 : vector<2x32xf32>
    %805 = arith.negf %804 : vector<2x32xf32>
    %806 = math.exp %805 : vector<2x32xf32>
    %cst_124 = arith.constant 1.000000e+00 : f32
    %807 = vector.broadcast %cst_124 : f32 to vector<2x32xf32>
    %808 = arith.addf %807, %806 : vector<2x32xf32>
    %809 = arith.divf %807, %808 : vector<2x32xf32>
    %810 = vector.extract_strided_slice %800 {offsets = [0, 32], sizes = [2, 32], strides = [1, 1]} : vector<2x96xf32> to vector<2x32xf32>
    %811 = vector.extract_strided_slice %801 {offsets = [0, 32], sizes = [2, 32], strides = [1, 1]} : vector<2x96xf32> to vector<2x32xf32>
    %812 = arith.addf %810, %811 : vector<2x32xf32>
    %813 = arith.negf %812 : vector<2x32xf32>
    %814 = math.exp %813 : vector<2x32xf32>
    %cst_125 = arith.constant 1.000000e+00 : f32
    %815 = vector.broadcast %cst_125 : f32 to vector<2x32xf32>
    %816 = arith.addf %815, %814 : vector<2x32xf32>
    %817 = arith.divf %815, %816 : vector<2x32xf32>
    %818 = vector.extract_strided_slice %800 {offsets = [0, 64], sizes = [2, 32], strides = [1, 1]} : vector<2x96xf32> to vector<2x32xf32>
    %819 = vector.extract_strided_slice %801 {offsets = [0, 64], sizes = [2, 32], strides = [1, 1]} : vector<2x96xf32> to vector<2x32xf32>
    %820 = vector.broadcast %3 : vector<1x32xf32> to vector<2x32xf32>
    %821 = arith.addf %819, %820 : vector<2x32xf32>
    %822 = arith.mulf %809, %821 : vector<2x32xf32>
    %823 = arith.addf %818, %822 : vector<2x32xf32>
    %824 = math.tanh %823 : vector<2x32xf32>
    %cst_126 = arith.constant 1.000000e+00 : f32
    %825 = vector.broadcast %cst_126 : f32 to vector<2x32xf32>
    %826 = arith.subf %825, %817 : vector<2x32xf32>
    %827 = arith.mulf %826, %824 : vector<2x32xf32>
    %828 = arith.mulf %817, %798 : vector<2x32xf32>
    %829 = arith.addf %827, %828 : vector<2x32xf32>
    %c6 = arith.constant 6 : index
    %c0_127 = arith.constant 0 : index
    %830 = vector.load %arg8[%c6, %c0_127] : memref<16x32xf32, #tpu.memory_space<vmem>>, vector<2x32xf32>
    tpu.vector_store %arg8[%c6, %c0_127], %829 {strides = array<i32>} : memref<16x32xf32, #tpu.memory_space<vmem>>, vector<2x32xf32>,
    %831 = vector.extract_strided_slice %8 {offsets = [8, 0], sizes = [2, 96], strides = [1, 1]} : vector<16x96xf32> to vector<2x96xf32>
    %cst_128 = arith.constant dense<0.000000e+00> : vector<2x96xf32>
    %832 = tpu.matmul %829, %1, %cst_128 {dimension_numbers = #tpu.dot_dimension_numbers<[1], [0], [0], [1], [0, 0, 1, 1], [], []>} : vector<2x32xf32>, vector<32x96xf32>, vector<2x96xf32> -> vector<2x96xf32>
    %833 = vector.extract_strided_slice %831 {offsets = [0, 0], sizes = [2, 32], strides = [1, 1]} : vector<2x96xf32> to vector<2x32xf32>
    %834 = vector.extract_strided_slice %832 {offsets = [0, 0], sizes = [2, 32], strides = [1, 1]} : vector<2x96xf32> to vector<2x32xf32>
    %835 = arith.addf %833, %834 : vector<2x32xf32>
    %836 = arith.negf %835 : vector<2x32xf32>
    %837 = math.exp %836 : vector<2x32xf32>
    %cst_129 = arith.constant 1.000000e+00 : f32
    %838 = vector.broadcast %cst_129 : f32 to vector<2x32xf32>
    %839 = arith.addf %838, %837 : vector<2x32xf32>
    %840 = arith.divf %838, %839 : vector<2x32xf32>
    %841 = vector.extract_strided_slice %831 {offsets = [0, 32], sizes = [2, 32], strides = [1, 1]} : vector<2x96xf32> to vector<2x32xf32>
    %842 = vector.extract_strided_slice %832 {offsets = [0, 32], sizes = [2, 32], strides = [1, 1]} : vector<2x96xf32> to vector<2x32xf32>
    %843 = arith.addf %841, %842 : vector<2x32xf32>
    %844 = arith.negf %843 : vector<2x32xf32>
    %845 = math.exp %844 : vector<2x32xf32>
    %cst_130 = arith.constant 1.000000e+00 : f32
    %846 = vector.broadcast %cst_130 : f32 to vector<2x32xf32>
    %847 = arith.addf %846, %845 : vector<2x32xf32>
    %848 = arith.divf %846, %847 : vector<2x32xf32>
    %849 = vector.extract_strided_slice %831 {offsets = [0, 64], sizes = [2, 32], strides = [1, 1]} : vector<2x96xf32> to vector<2x32xf32>
    %850 = vector.extract_strided_slice %832 {offsets = [0, 64], sizes = [2, 32], strides = [1, 1]} : vector<2x96xf32> to vector<2x32xf32>
    %851 = vector.broadcast %3 : vector<1x32xf32> to vector<2x32xf32>
    %852 = arith.addf %850, %851 : vector<2x32xf32>
    %853 = arith.mulf %840, %852 : vector<2x32xf32>
    %854 = arith.addf %849, %853 : vector<2x32xf32>
    %855 = math.tanh %854 : vector<2x32xf32>
    %cst_131 = arith.constant 1.000000e+00 : f32
    %856 = vector.broadcast %cst_131 : f32 to vector<2x32xf32>
    %857 = arith.subf %856, %848 : vector<2x32xf32>
    %858 = arith.mulf %857, %855 : vector<2x32xf32>
    %859 = arith.mulf %848, %829 : vector<2x32xf32>
    %860 = arith.addf %858, %859 : vector<2x32xf32>
    %c8 = arith.constant 8 : index
    %c0_132 = arith.constant 0 : index
    %861 = vector.load %arg8[%c8, %c0_132] : memref<16x32xf32, #tpu.memory_space<vmem>>, vector<2x32xf32>
    tpu.vector_store %arg8[%c8, %c0_132], %860 {strides = array<i32>} : memref<16x32xf32, #tpu.memory_space<vmem>>, vector<2x32xf32>,
    %862 = vector.extract_strided_slice %8 {offsets = [10, 0], sizes = [2, 96], strides = [1, 1]} : vector<16x96xf32> to vector<2x96xf32>
    %cst_133 = arith.constant dense<0.000000e+00> : vector<2x96xf32>
    %863 = tpu.matmul %860, %1, %cst_133 {dimension_numbers = #tpu.dot_dimension_numbers<[1], [0], [0], [1], [0, 0, 1, 1], [], []>} : vector<2x32xf32>, vector<32x96xf32>, vector<2x96xf32> -> vector<2x96xf32>
    %864 = vector.extract_strided_slice %862 {offsets = [0, 0], sizes = [2, 32], strides = [1, 1]} : vector<2x96xf32> to vector<2x32xf32>
    %865 = vector.extract_strided_slice %863 {offsets = [0, 0], sizes = [2, 32], strides = [1, 1]} : vector<2x96xf32> to vector<2x32xf32>
    %866 = arith.addf %864, %865 : vector<2x32xf32>
    %867 = arith.negf %866 : vector<2x32xf32>
    %868 = math.exp %867 : vector<2x32xf32>
    %cst_134 = arith.constant 1.000000e+00 : f32
    %869 = vector.broadcast %cst_134 : f32 to vector<2x32xf32>
    %870 = arith.addf %869, %868 : vector<2x32xf32>
    %871 = arith.divf %869, %870 : vector<2x32xf32>
    %872 = vector.extract_strided_slice %862 {offsets = [0, 32], sizes = [2, 32], strides = [1, 1]} : vector<2x96xf32> to vector<2x32xf32>
    %873 = vector.extract_strided_slice %863 {offsets = [0, 32], sizes = [2, 32], strides = [1, 1]} : vector<2x96xf32> to vector<2x32xf32>
    %874 = arith.addf %872, %873 : vector<2x32xf32>
    %875 = arith.negf %874 : vector<2x32xf32>
    %876 = math.exp %875 : vector<2x32xf32>
    %cst_135 = arith.constant 1.000000e+00 : f32
    %877 = vector.broadcast %cst_135 : f32 to vector<2x32xf32>
    %878 = arith.addf %877, %876 : vector<2x32xf32>
    %879 = arith.divf %877, %878 : vector<2x32xf32>
    %880 = vector.extract_strided_slice %862 {offsets = [0, 64], sizes = [2, 32], strides = [1, 1]} : vector<2x96xf32> to vector<2x32xf32>
    %881 = vector.extract_strided_slice %863 {offsets = [0, 64], sizes = [2, 32], strides = [1, 1]} : vector<2x96xf32> to vector<2x32xf32>
    %882 = vector.broadcast %3 : vector<1x32xf32> to vector<2x32xf32>
    %883 = arith.addf %881, %882 : vector<2x32xf32>
    %884 = arith.mulf %871, %883 : vector<2x32xf32>
    %885 = arith.addf %880, %884 : vector<2x32xf32>
    %886 = math.tanh %885 : vector<2x32xf32>
    %cst_136 = arith.constant 1.000000e+00 : f32
    %887 = vector.broadcast %cst_136 : f32 to vector<2x32xf32>
    %888 = arith.subf %887, %879 : vector<2x32xf32>
    %889 = arith.mulf %888, %886 : vector<2x32xf32>
    %890 = arith.mulf %879, %860 : vector<2x32xf32>
    %891 = arith.addf %889, %890 : vector<2x32xf32>
    %c10 = arith.constant 10 : index
    %c0_137 = arith.constant 0 : index
    %892 = vector.load %arg8[%c10, %c0_137] : memref<16x32xf32, #tpu.memory_space<vmem>>, vector<2x32xf32>
    tpu.vector_store %arg8[%c10, %c0_137], %891 {strides = array<i32>} : memref<16x32xf32, #tpu.memory_space<vmem>>, vector<2x32xf32>,
    %893 = vector.extract_strided_slice %8 {offsets = [12, 0], sizes = [2, 96], strides = [1, 1]} : vector<16x96xf32> to vector<2x96xf32>
    %cst_138 = arith.constant dense<0.000000e+00> : vector<2x96xf32>
    %894 = tpu.matmul %891, %1, %cst_138 {dimension_numbers = #tpu.dot_dimension_numbers<[1], [0], [0], [1], [0, 0, 1, 1], [], []>} : vector<2x32xf32>, vector<32x96xf32>, vector<2x96xf32> -> vector<2x96xf32>
    %895 = vector.extract_strided_slice %893 {offsets = [0, 0], sizes = [2, 32], strides = [1, 1]} : vector<2x96xf32> to vector<2x32xf32>
    %896 = vector.extract_strided_slice %894 {offsets = [0, 0], sizes = [2, 32], strides = [1, 1]} : vector<2x96xf32> to vector<2x32xf32>
    %897 = arith.addf %895, %896 : vector<2x32xf32>
    %898 = arith.negf %897 : vector<2x32xf32>
    %899 = math.exp %898 : vector<2x32xf32>
    %cst_139 = arith.constant 1.000000e+00 : f32
    %900 = vector.broadcast %cst_139 : f32 to vector<2x32xf32>
    %901 = arith.addf %900, %899 : vector<2x32xf32>
    %902 = arith.divf %900, %901 : vector<2x32xf32>
    %903 = vector.extract_strided_slice %893 {offsets = [0, 32], sizes = [2, 32], strides = [1, 1]} : vector<2x96xf32> to vector<2x32xf32>
    %904 = vector.extract_strided_slice %894 {offsets = [0, 32], sizes = [2, 32], strides = [1, 1]} : vector<2x96xf32> to vector<2x32xf32>
    %905 = arith.addf %903, %904 : vector<2x32xf32>
    %906 = arith.negf %905 : vector<2x32xf32>
    %907 = math.exp %906 : vector<2x32xf32>
    %cst_140 = arith.constant 1.000000e+00 : f32
    %908 = vector.broadcast %cst_140 : f32 to vector<2x32xf32>
    %909 = arith.addf %908, %907 : vector<2x32xf32>
    %910 = arith.divf %908, %909 : vector<2x32xf32>
    %911 = vector.extract_strided_slice %893 {offsets = [0, 64], sizes = [2, 32], strides = [1, 1]} : vector<2x96xf32> to vector<2x32xf32>
    %912 = vector.extract_strided_slice %894 {offsets = [0, 64], sizes = [2, 32], strides = [1, 1]} : vector<2x96xf32> to vector<2x32xf32>
    %913 = vector.broadcast %3 : vector<1x32xf32> to vector<2x32xf32>
    %914 = arith.addf %912, %913 : vector<2x32xf32>
    %915 = arith.mulf %902, %914 : vector<2x32xf32>
    %916 = arith.addf %911, %915 : vector<2x32xf32>
    %917 = math.tanh %916 : vector<2x32xf32>
    %cst_141 = arith.constant 1.000000e+00 : f32
    %918 = vector.broadcast %cst_141 : f32 to vector<2x32xf32>
    %919 = arith.subf %918, %910 : vector<2x32xf32>
    %920 = arith.mulf %919, %917 : vector<2x32xf32>
    %921 = arith.mulf %910, %891 : vector<2x32xf32>
    %922 = arith.addf %920, %921 : vector<2x32xf32>
    %c12 = arith.constant 12 : index
    %c0_142 = arith.constant 0 : index
    %923 = vector.load %arg8[%c12, %c0_142] : memref<16x32xf32, #tpu.memory_space<vmem>>, vector<2x32xf32>
    tpu.vector_store %arg8[%c12, %c0_142], %922 {strides = array<i32>} : memref<16x32xf32, #tpu.memory_space<vmem>>, vector<2x32xf32>,
    %924 = vector.extract_strided_slice %8 {offsets = [14, 0], sizes = [2, 96], strides = [1, 1]} : vector<16x96xf32> to vector<2x96xf32>
    %cst_143 = arith.constant dense<0.000000e+00> : vector<2x96xf32>
    %925 = tpu.matmul %922, %1, %cst_143 {dimension_numbers = #tpu.dot_dimension_numbers<[1], [0], [0], [1], [0, 0, 1, 1], [], []>} : vector<2x32xf32>, vector<32x96xf32>, vector<2x96xf32> -> vector<2x96xf32>
    %926 = vector.extract_strided_slice %924 {offsets = [0, 0], sizes = [2, 32], strides = [1, 1]} : vector<2x96xf32> to vector<2x32xf32>
    %927 = vector.extract_strided_slice %925 {offsets = [0, 0], sizes = [2, 32], strides = [1, 1]} : vector<2x96xf32> to vector<2x32xf32>
    %928 = arith.addf %926, %927 : vector<2x32xf32>
    %929 = arith.negf %928 : vector<2x32xf32>
    %930 = math.exp %929 : vector<2x32xf32>
    %cst_144 = arith.constant 1.000000e+00 : f32
    %931 = vector.broadcast %cst_144 : f32 to vector<2x32xf32>
    %932 = arith.addf %931, %930 : vector<2x32xf32>
    %933 = arith.divf %931, %932 : vector<2x32xf32>
    %934 = vector.extract_strided_slice %924 {offsets = [0, 32], sizes = [2, 32], strides = [1, 1]} : vector<2x96xf32> to vector<2x32xf32>
    %935 = vector.extract_strided_slice %925 {offsets = [0, 32], sizes = [2, 32], strides = [1, 1]} : vector<2x96xf32> to vector<2x32xf32>
    %936 = arith.addf %934, %935 : vector<2x32xf32>
    %937 = arith.negf %936 : vector<2x32xf32>
    %938 = math.exp %937 : vector<2x32xf32>
    %cst_145 = arith.constant 1.000000e+00 : f32
    %939 = vector.broadcast %cst_145 : f32 to vector<2x32xf32>
    %940 = arith.addf %939, %938 : vector<2x32xf32>
    %941 = arith.divf %939, %940 : vector<2x32xf32>
    %942 = vector.extract_strided_slice %924 {offsets = [0, 64], sizes = [2, 32], strides = [1, 1]} : vector<2x96xf32> to vector<2x32xf32>
    %943 = vector.extract_strided_slice %925 {offsets = [0, 64], sizes = [2, 32], strides = [1, 1]} : vector<2x96xf32> to vector<2x32xf32>
    %944 = vector.broadcast %3 : vector<1x32xf32> to vector<2x32xf32>
    %945 = arith.addf %943, %944 : vector<2x32xf32>
    %946 = arith.mulf %933, %945 : vector<2x32xf32>
    %947 = arith.addf %942, %946 : vector<2x32xf32>
    %948 = math.tanh %947 : vector<2x32xf32>
    %cst_146 = arith.constant 1.000000e+00 : f32
    %949 = vector.broadcast %cst_146 : f32 to vector<2x32xf32>
    %950 = arith.subf %949, %941 : vector<2x32xf32>
    %951 = arith.mulf %950, %948 : vector<2x32xf32>
    %952 = arith.mulf %941, %922 : vector<2x32xf32>
    %953 = arith.addf %951, %952 : vector<2x32xf32>
    %c14 = arith.constant 14 : index
    %c0_147 = arith.constant 0 : index
    %954 = vector.load %arg8[%c14, %c0_147] : memref<16x32xf32, #tpu.memory_space<vmem>>, vector<2x32xf32>
    tpu.vector_store %arg8[%c14, %c0_147], %953 {strides = array<i32>} : memref<16x32xf32, #tpu.memory_space<vmem>>, vector<2x32xf32>,
    %c0_148 = arith.constant 0 : index
    %c0_149 = arith.constant 0 : index
    %955 = vector.load %arg8[%c0_148, %c0_149] : memref<16x32xf32, #tpu.memory_space<vmem>>, vector<16x32xf32>
    %c0_150 = arith.constant 0 : index
    %c0_151 = arith.constant 0 : index
    %956 = vector.load %arg5[%c0_150, %c0_151] : memref<32x8xf32, #tpu.memory_space<vmem>>, vector<32x8xf32>
    %cst_152 = arith.constant dense<0.000000e+00> : vector<16x8xf32>
    %957 = tpu.matmul %955, %956, %cst_152 {dimension_numbers = #tpu.dot_dimension_numbers<[1], [0], [0], [1], [0, 0, 1, 1], [], []>} : vector<16x32xf32>, vector<32x8xf32>, vector<16x8xf32> -> vector<16x8xf32>
    %c0_153 = arith.constant 0 : index
    %c0_154 = arith.constant 0 : index
    %958 = vector.load %arg6[%c0_153, %c0_154] : memref<1x8xf32, #tpu.memory_space<vmem>>, vector<1x8xf32>
    %959 = vector.broadcast %958 : vector<1x8xf32> to vector<16x8xf32>
    %960 = arith.addf %957, %959 : vector<16x8xf32>
    %c0_155 = arith.constant 0 : index
    %c0_156 = arith.constant 0 : index
    %961 = vector.load %arg7[%c0_155, %c0_156] : memref<16x8xf32, #tpu.memory_space<vmem>>, vector<16x8xf32>
    tpu.vector_store %arg7[%c0_155, %c0_156], %960 {strides = array<i32>} : memref<16x8xf32, #tpu.memory_space<vmem>>, vector<16x8xf32>,
    return
  }
}

</mosaic_0001>

<bundles_post_ra>
// kernel: tpu_custom_call.1
= control target key start
LH: loop header
LB: loop body
LE: loop exit
PB: predicated region body
PF: predicated region fallthrough
CT: control target
= control target key end

     0   :  { %vm94_vm0 = vcmask 1043456   ;;  %v4433_v0 = vmov 0.0   ;;  %vm4434_vm1 = vmmov 0   ;;  %v4435_v3 = vmov 1983009808   ;;  %s4436_s28 = smov 64   ;;  %s5211_s2 = inlined_call_operand.vmem [shape: f32[32,96], index: 2, kind: input, shape index: {}]   ;;  %s5212_s1 = inlined_call_operand.vmem [shape: f32[4,96], index: 1, kind: input, shape index: {}]   ;;  %s5213_s0 = inlined_call_operand.vmem [shape: f32[8,2,4], index: 0, kind: input, shape index: {}]   ;;  %s5214_s4 = inlined_call_operand.vmem [shape: f32[1,32], index: 4, kind: input, shape index: {}]   ;;  %s5215_s3 = inlined_call_operand.vmem [shape: f32[1,96], index: 3, kind: input, shape index: {}]   ;;  %s5216_s5 = inlined_call_operand.vmem [shape: f32[32,8], index: 5, kind: input, shape index: {}]   ;;  %s5217_s6 = inlined_call_operand.vmem [shape: f32[1,8], index: 6, kind: input, shape index: {}]   ;;  %s5218_s7 = inlined_call_operand.vmem [shape: f32[16,8], index: 7, kind: output, shape index: {}]  }
   0x1   :  { %3865 = vmatprep.subr.mxu1 %v4433_v0  ;;  %v4482_v1 = vld [vmem:[%s5211_s2 + $0x18] sm:$0xff]  ;;  %v4487_v2 = vld [vmem:[%s5211_s2 + $0x10] sm:$0xff]  ;;  %3873 = vmatprep.mubr.msk.f32.mxu1 %vm4434_vm1, %v4433_v0  ;;  %v58_v4 = vunpack.c.l.s4 %v4435_v3  ;;  %v60_v5 = vlaneseq  ;;  %v4495_v6 = vld [vmem:[%s5211_s2 + $0x8] sm:$0xff]  ;;  %vm89_vm2 = vcmask 31744   ;;  %vm173_vm3 = vcmask 261120  }
   0x2   :  { %3866 = vmatpush3.msra.mxu1 %v4482_v1  ;;  %v26_v7 = vld [vmem:[%s5212_s1] sm:$0xf]  ;;  %v35_v10 = vld [vmem:[%s5213_s0 + $0x4] sm:$0x3]  ;;  %v36_v11 = vld [vmem:[%s5213_s0 + $0x6] sm:$0x3] }
   0x3   :  { %v33_v8 = vld [vmem:[%s5213_s0] sm:$0x3]  ;;  %3867 = vmatprep.subr.mxu1 %v4433_v0  ;;  %3860 = vmatprep.subr.msk.mxu0 %vm94_vm0, %v26_v7  ;;  %v34_v9 = vld [vmem:[%s5213_s0 + $0x2] sm:$0x3]  ;;  %v59_v12 = vunpack.c.0.s8 %v58_v4  ;;  %v56_v15 = vcombine.low %v35_v10, %v36_v11  ;;  %v61_v16 = vshrl.u32 %v60_v5, 7  ;;  %vm2734_vm4 = vcmask 254976  }
   0x4   :  { %3868 = vmatpush3.msra.mxu1 %v4487_v2  ;;  %v4518_v13 = vld [vmem:[%s5211_s2] sm:$0xff]  ;;  %3861 = vmatpush3.msk.msra.mxu0 %vm94_vm0, %v26_v7  ;;  %v55_v14 = vcombine.low %v33_v8, %v34_v9  ;;  %v37_v17 = vld [vmem:[%s5213_s0 + $0x8] sm:$0x3]  ;;  %v38_v18 = vld [vmem:[%s5213_s0 + $0xa] sm:$0x3]  ;;  %vm2845_vm5 = vcmask 257026  }
   0x5   :  { %3869 = vmatprep.subr.mxu1 %v4433_v0  ;;  %v39_v19 = vld [vmem:[%s5213_s0 + $0xc] sm:$0x3]  ;;  %v40_v20 = vld [vmem:[%s5213_s0 + $0xe] sm:$0x3]  ;;  %v72_v21 = vcombine.low %v37_v17, %v38_v18  ;;  %v3625_v22 = vld [vmem:[%s5214_s4] ss:$0 sm:$0xff]  ;;  %3876 = vmatprep.subr.mxu0 %v4433_v0  ;;  %v62_v23 = vsub.s32 %v59_v12, %v61_v16 }
   0x6   :  { %3870 = vmatpush3.msra.mxu1 %v4495_v6  ;;  %v73_v24 = vcombine.low %v39_v19, %v40_v20  ;;  %259 = vrot.lane.b32.xlu0 %v3625_v22, %s4436_s28  ;;  %v3620_v36 = vld [vmem:[%s5215_s3] ss:$0 sm:$0xff]  ;;  %s4437_s3 = smov 96   ;;  %vm3073_vm6 = vcmask 261126   ;;  %vm2959_vm7 = vcmask 259076   ;;  %vm3613_vm8 = vcmask 64512  }
   0x7   :  { %3871 = vmatprep.subr.mxu1 %v4433_v0  ;;  %v63_v25 = vrot.slane %v55_v14, %v62_v23  ;;  %v70_v26 = vrot.slane %v56_v15, %v62_v23  ;;  %v80_v27 = vrot.slane %v72_v21, %v62_v23 }
   0x8   :  { %3872 = vmatpush3.msra.mxu1 %v4518_v13  ;;  %v87_v28 = vrot.slane %v73_v24, %v62_v23 }
   0x9   :  { %3874 = vmatmul.mubr.f32.vlgmr.msra.gmra.mxu1 %v4433_v0  ;;  %3887 = vmatprep.subr.mxu1 %v4433_v0  ;;  %v71_v29 = vcombine.low %v63_v25, %v70_v26 }
   0xa   :  { %v88_v30 = vcombine.low %v80_v27, %v87_v28  ;;  %3888 = vmatpush3.msra.mxu1 %v4482_v1  ;;  %3895 = vmatprep.mubr.msk.f32.mxu1 %vm4434_vm1, %v4433_v0 }
   0xb   :  { %3889 = vmatprep.subr.mxu1 %v4433_v0  ;;  %3862 = vmatprep.mubr.msk.f32.mxu0 %vm89_vm2, %v71_v29 }
   0xc   :  { %3890 = vmatpush3.msra.mxu1 %v4487_v2  ;;  %3863 = vmatmul.mubr.msk.f32.vlgmr.msra.gmra.mxu0 %vm89_vm2, %v88_v30 }
   0xd   :  { %3891 = vmatprep.subr.mxu1 %v4433_v0  ;;  %3877 = vmatpush3.msra.mxu0 %v4482_v1 }
   0xe   :  { %3884 = vmatprep.mubr.msk.f32.mxu0 %vm4434_vm1, %v4433_v0  ;;  %3878 = vmatprep.subr.mxu0 %v4433_v0 }
   0xf   :  { %3892 = vmatpush3.msra.mxu1 %v4495_v6  ;;  %3879 = vmatpush3.msra.mxu0 %v4487_v2 }
  0x10   :  { %3893 = vmatprep.subr.mxu1 %v4433_v0  ;;  %3880 = vmatprep.subr.mxu0 %v4433_v0 }
  0x11   :  { %3894 = vmatpush3.msra.mxu1 %v4518_v13  ;;  %3881 = vmatpush3.msra.mxu0 %v4495_v6 }
  0x12   :  { %3909 = vmatprep.subr.mxu1 %v4433_v0  ;;  %3882 = vmatprep.subr.mxu0 %v4433_v0 }
  0x13   :  { %3883 = vmatpush3.msra.mxu0 %v4518_v13 }
  0x14   :  { %3898 = vmatprep.subr.mxu0 %v4433_v0 }
  0x78   :  { %v4564_v31 = vpop.permute.xlu0 %259 }
  0xc9   :  { %v243_v32 = vpop.f32.mrf.mxu1 }
  0xca   :  { %v262_v33 = vadd.f32 %v4564_v31, %v243_v32 }
  0xcb   :  { %v3875_v34 = vpop.f32.mrf.mxu1 }
  0xcc   :  { %264 = vrot.lane.b32.xlu0 %v262_v33, %s4436_s28  ;;  %v3864_v35 = vpop.f32.mrf.mxu0 }
  0xcd   :  { %v4571_v37 = vadd.f32 %v3864_v35, %v3620_v36 }
  0xce   :  { %v164_v38 = vpop.f32.mrf.mxu0 }
  0xcf   :  { %v4573_v39 = vadd.f32 %v3620_v36, %v164_v38 }
  0xd1   :  { %v247_v40 = vadd.f32 %v243_v32, %v4573_v39 }
  0xd3   :  { %v3624_v41 = vmul.f32 -1.442695, %v247_v40 }
  0xd5   :  { %4233 = vpow2.f32 %v3624_v41 }
  0xe2   :  { %v4234_v42 = vpop.eup %4233 }
  0xe3   :  { %v251_v43 = vadd.f32 1.0, %v4234_v42 }
  0xe5   :  { %4235 = vrcp.f32 %v251_v43 }
  0xf2   :  { %v4236_v44 = vpop.eup %4235 }
  0xf3   :  { %v274_v50 = vsub.f32 1.0, %v4236_v44  ;;  %v280_v52 = vmul.f32 0.0, %v4236_v44 }
 0x13e   :  { %v265_v45 = vpop.permute.xlu0 %264 }
 0x13f   :  { %v267_v46 = vmul.f32 %v4236_v44, %v265_v45 }
 0x141   :  { %269 = vrot.lane.b32.xlu1 %v267_v46, %s4436_s28 }
 0x1b3   :  { %v270_v47 = vpop.permute.xlu1 %269 }
 0x1b4   :  { %v272_v48 = vadd.f32 %v270_v47, %v4573_v39 }
 0x1b6   :  { %4237 = vtanh.f32 %v272_v48 }
 0x1c3   :  { %v4238_v49 = vpop.eup %4237 }
 0x1c4   :  { %276 = vrot.lane.b32.xlu1 %v4238_v49, %s4437_s3 }
 0x236   :  { %v277_v51 = vpop.permute.xlu1 %276 }
 0x237   :  { %v279_v53 = vmul.f32 %v277_v51, %v274_v50 }
 0x239   :  { %v281_v54 = vadd.f32 %v280_v52, %v279_v53 }
 0x23b   :  { %283 = vrot.lane.b32.xlu0 %v281_v54, %s4437_s3 }
 0x2ad   :  { %v284_v55 = vpop.permute.xlu0 %283 }
 0x2ae   :  { %3885 = vmatmul.mubr.msk.f32.vlgmr.msra.gmra.mxu0 %vm173_vm3, %v284_v55 }
 0x2af   :  { %3899 = vmatpush3.msra.mxu0 %v4482_v1  ;;  %3906 = vmatprep.mubr.msk.f32.mxu0 %vm4434_vm1, %v4433_v0 }
 0x2b0   :  { %3900 = vmatprep.subr.mxu0 %v4433_v0 }
 0x2b1   :  { %3901 = vmatpush3.msra.mxu0 %v4487_v2 }
 0x2b2   :  { %3902 = vmatprep.subr.mxu0 %v4433_v0 }
 0x2b3   :  { %3903 = vmatpush3.msra.mxu0 %v4495_v6 }
 0x2b4   :  { %3904 = vmatprep.subr.mxu0 %v4433_v0 }
 0x2b5   :  { %3905 = vmatpush3.msra.mxu0 %v4518_v13 }
 0x2b6   :  { %3920 = vmatprep.subr.mxu0 %v4433_v0 }
 0x36e   :  { %v353_v56 = vpop.f32.mrf.mxu0 }
 0x36f   :  { %v364_v57 = vadd.f32 %v353_v56, %v4564_v31  ;;  %v357_v59 = vadd.f32 %v353_v56, %v4573_v39 }
 0x370   :  { %v3886_v58 = vpop.f32.mrf.mxu0 }
 0x371   :  { %366 = vrot.lane.b32.xlu1 %v364_v57, %s4436_s28  ;;  %v3627_v60 = vmul.f32 -1.442695, %v357_v59 }
 0x373   :  { %4239 = vpow2.f32 %v3627_v60 }
 0x380   :  { %v4240_v61 = vpop.eup %4239 }
 0x381   :  { %v361_v62 = vadd.f32 1.0, %v4240_v61 }
 0x383   :  { %4241 = vrcp.f32 %v361_v62 }
 0x390   :  { %v4242_v63 = vpop.eup %4241 }
 0x391   :  { %v376_v9 = vsub.f32 1.0, %v4242_v63  ;;  %v382_v11 = vmul.f32 %v4242_v63, %v281_v54 }
 0x3e3   :  { %v367_v3 = vpop.permute.xlu1 %366 }
 0x3e4   :  { %v369_v4 = vmul.f32 %v4242_v63, %v367_v3 }
 0x3e6   :  { %371 = vrot.lane.b32.xlu0 %v369_v4, %s4436_s28 }
 0x458   :  { %v372_v5 = vpop.permute.xlu0 %371 }
 0x459   :  { %v374_v7 = vadd.f32 %v372_v5, %v4573_v39 }
 0x45b   :  { %4243 = vtanh.f32 %v374_v7 }
 0x468   :  { %v4244_v8 = vpop.eup %4243 }
 0x469   :  { %378 = vrot.lane.b32.xlu1 %v4244_v8, %s4437_s3 }
 0x4db   :  { %v379_v10 = vpop.permute.xlu1 %378 }
 0x4dc   :  { %v381_v12 = vmul.f32 %v379_v10, %v376_v9 }
 0x4de   :  { %v383_v14 = vadd.f32 %v382_v11, %v381_v12 }
 0x4e0   :  { %385 = vrot.lane.b32.xlu0 %v383_v14, %s4437_s3 }
 0x552   :  { %v386_v15 = vpop.permute.xlu0 %385 }
 0x553   :  { %3896 = vmatmul.mubr.msk.f32.vlgmr.msra.gmra.mxu1 %vm173_vm3, %v386_v15 }
 0x554   :  { %3910 = vmatpush3.msra.mxu1 %v4482_v1  ;;  %3917 = vmatprep.mubr.msk.f32.mxu1 %vm4434_vm1, %v4433_v0 }
 0x555   :  { %3911 = vmatprep.subr.mxu1 %v4433_v0 }
 0x556   :  { %3912 = vmatpush3.msra.mxu1 %v4487_v2 }
 0x557   :  { %3913 = vmatprep.subr.mxu1 %v4433_v0 }
 0x558   :  { %3914 = vmatpush3.msra.mxu1 %v4495_v6 }
 0x559   :  { %3915 = vmatprep.subr.mxu1 %v4433_v0 }
 0x55a   :  { %3916 = vmatpush3.msra.mxu1 %v4518_v13 }
 0x55b   :  { %3931 = vmatprep.subr.mxu1 %v4433_v0 }
 0x613   :  { %v455_v16 = vpop.f32.mrf.mxu1 }
 0x614   :  { %v466_v17 = vadd.f32 %v455_v16, %v4564_v31  ;;  %v459_v19 = vadd.f32 %v455_v16, %v4573_v39 }
 0x615   :  { %v3897_v18 = vpop.f32.mrf.mxu1 }
 0x616   :  { %468 = vrot.lane.b32.xlu1 %v466_v17, %s4436_s28  ;;  %v3629_v20 = vmul.f32 -1.442695, %v459_v19 }
 0x618   :  { %4245 = vpow2.f32 %v3629_v20 }
 0x625   :  { %v4246_v21 = vpop.eup %4245 }
 0x626   :  { %v463_v22 = vadd.f32 1.0, %v4246_v21 }
 0x628   :  { %4247 = vrcp.f32 %v463_v22 }
 0x635   :  { %v4248_v23 = vpop.eup %4247 }
 0x636   :  { %v478_v29 = vsub.f32 1.0, %v4248_v23  ;;  %v484_v32 = vmul.f32 %v4248_v23, %v383_v14 }
 0x688   :  { %v469_v24 = vpop.permute.xlu1 %468 }
 0x689   :  { %v471_v25 = vmul.f32 %v4248_v23, %v469_v24 }
 0x68b   :  { %473 = vrot.lane.b32.xlu0 %v471_v25, %s4436_s28 }
 0x6fd   :  { %v474_v26 = vpop.permute.xlu0 %473 }
 0x6fe   :  { %v476_v27 = vadd.f32 %v474_v26, %v4573_v39 }
 0x700   :  { %4249 = vtanh.f32 %v476_v27 }
 0x70d   :  { %v4250_v28 = vpop.eup %4249 }
 0x70e   :  { %480 = vrot.lane.b32.xlu1 %v4250_v28, %s4437_s3 }
 0x780   :  { %v481_v30 = vpop.permute.xlu1 %480 }
 0x781   :  { %v483_v33 = vmul.f32 %v481_v30, %v478_v29 }
 0x783   :  { %v485_v34 = vadd.f32 %v484_v32, %v483_v33 }
 0x785   :  { %487 = vrot.lane.b32.xlu0 %v485_v34, %s4437_s3 }
 0x7f7   :  { %v488_v35 = vpop.permute.xlu0 %487 }
 0x7f8   :  { %3907 = vmatmul.mubr.msk.f32.vlgmr.msra.gmra.mxu0 %vm173_vm3, %v488_v35 }
 0x7f9   :  { %3921 = vmatpush3.msra.mxu0 %v4482_v1  ;;  %3928 = vmatprep.mubr.msk.f32.mxu0 %vm4434_vm1, %v4433_v0 }
 0x7fa   :  { %3922 = vmatprep.subr.mxu0 %v4433_v0 }
 0x7fb   :  { %3923 = vmatpush3.msra.mxu0 %v4487_v2 }
 0x7fc   :  { %3924 = vmatprep.subr.mxu0 %v4433_v0 }
 0x7fd   :  { %3925 = vmatpush3.msra.mxu0 %v4495_v6 }
 0x7fe   :  { %3926 = vmatprep.subr.mxu0 %v4433_v0 }
 0x7ff   :  { %3927 = vmatpush3.msra.mxu0 %v4518_v13 }
 0x800   :  { %3942 = vmatprep.subr.mxu0 %v4433_v0 }
 0x8b8   :  { %v557_v36 = vpop.f32.mrf.mxu0 }
 0x8b9   :  { %v568_v38 = vadd.f32 %v557_v36, %v4564_v31  ;;  %v561_v41 = vadd.f32 %v557_v36, %v4573_v39 }
 0x8ba   :  { %v3908_v40 = vpop.f32.mrf.mxu0 }
 0x8bb   :  { %570 = vrot.lane.b32.xlu1 %v568_v38, %s4436_s28  ;;  %v3631_v42 = vmul.f32 -1.442695, %v561_v41 }
 0x8bd   :  { %4251 = vpow2.f32 %v3631_v42 }
 0x8ca   :  { %v4252_v43 = vpop.eup %4251 }
 0x8cb   :  { %v565_v44 = vadd.f32 1.0, %v4252_v43 }
 0x8cd   :  { %4253 = vrcp.f32 %v565_v44 }
 0x8da   :  { %v4254_v45 = vpop.eup %4253 }
 0x8db   :  { %v580_v51 = vsub.f32 1.0, %v4254_v45  ;;  %v586_v53 = vmul.f32 %v4254_v45, %v485_v34 }
 0x92d   :  { %v571_v46 = vpop.permute.xlu1 %570 }
 0x92e   :  { %v573_v47 = vmul.f32 %v4254_v45, %v571_v46 }
 0x930   :  { %575 = vrot.lane.b32.xlu0 %v573_v47, %s4436_s28 }
 0x9a2   :  { %v576_v48 = vpop.permute.xlu0 %575 }
 0x9a3   :  { %v578_v49 = vadd.f32 %v576_v48, %v4573_v39 }
 0x9a5   :  { %4255 = vtanh.f32 %v578_v49 }
 0x9b2   :  { %v4256_v50 = vpop.eup %4255 }
 0x9b3   :  { %582 = vrot.lane.b32.xlu1 %v4256_v50, %s4437_s3 }
 0xa25   :  { %v583_v52 = vpop.permute.xlu1 %582 }
 0xa26   :  { %v585_v54 = vmul.f32 %v583_v52, %v580_v51 }
 0xa28   :  { %v587_v55 = vadd.f32 %v586_v53, %v585_v54 }
 0xa2a   :  { %589 = vrot.lane.b32.xlu0 %v587_v55, %s4437_s3 }
 0xa9c   :  { %v590_v56 = vpop.permute.xlu0 %589 }
 0xa9d   :  { %3918 = vmatmul.mubr.msk.f32.vlgmr.msra.gmra.mxu1 %vm173_vm3, %v590_v56 }
 0xa9e   :  { %3932 = vmatpush3.msra.mxu1 %v4482_v1  ;;  %3939 = vmatprep.mubr.msk.f32.mxu1 %vm4434_vm1, %v4433_v0 }
 0xa9f   :  { %3933 = vmatprep.subr.mxu1 %v4433_v0 }
 0xaa0   :  { %3934 = vmatpush3.msra.mxu1 %v4487_v2 }
 0xaa1   :  { %3935 = vmatprep.subr.mxu1 %v4433_v0 }
 0xaa2   :  { %3936 = vmatpush3.msra.mxu1 %v4495_v6 }
 0xaa3   :  { %3937 = vmatprep.subr.mxu1 %v4433_v0 }
 0xaa4   :  { %3938 = vmatpush3.msra.mxu1 %v4518_v13 }
 0xaa5   :  { %3953 = vmatprep.subr.mxu1 %v4433_v0 }
 0xb5d   :  { %v659_v57 = vpop.f32.mrf.mxu1 }
 0xb5e   :  { %v670_v58 = vadd.f32 %v659_v57, %v4564_v31  ;;  %v663_v60 = vadd.f32 %v659_v57, %v4573_v39 }
 0xb5f   :  { %v3919_v59 = vpop.f32.mrf.mxu1 }
 0xb60   :  { %672 = vrot.lane.b32.xlu1 %v670_v58, %s4436_s28  ;;  %v3633_v61 = vmul.f32 -1.442695, %v663_v60 }
 0xb62   :  { %4257 = vpow2.f32 %v3633_v61 }
 0xb6f   :  { %v4258_v62 = vpop.eup %4257 }
 0xb70   :  { %v667_v63 = vadd.f32 1.0, %v4258_v62 }
 0xb72   :  { %4259 = vrcp.f32 %v667_v63 }
 0xb7f   :  { %v4260_v3 = vpop.eup %4259 }
 0xb80   :  { %v682_v10 = vsub.f32 1.0, %v4260_v3  ;;  %v688_v12 = vmul.f32 %v4260_v3, %v587_v55 }
 0xbd2   :  { %v673_v4 = vpop.permute.xlu1 %672 }
 0xbd3   :  { %v675_v5 = vmul.f32 %v4260_v3, %v673_v4 }
 0xbd5   :  { %677 = vrot.lane.b32.xlu0 %v675_v5, %s4436_s28 }
 0xc47   :  { %v678_v7 = vpop.permute.xlu0 %677 }
 0xc48   :  { %v680_v8 = vadd.f32 %v678_v7, %v4573_v39 }
 0xc4a   :  { %4261 = vtanh.f32 %v680_v8 }
 0xc57   :  { %v4262_v9 = vpop.eup %4261 }
 0xc58   :  { %684 = vrot.lane.b32.xlu1 %v4262_v9, %s4437_s3 }
 0xcca   :  { %v685_v11 = vpop.permute.xlu1 %684 }
 0xccb   :  { %v687_v14 = vmul.f32 %v685_v11, %v682_v10 }
 0xccd   :  { %v689_v15 = vadd.f32 %v688_v12, %v687_v14 }
 0xccf   :  { %691 = vrot.lane.b32.xlu0 %v689_v15, %s4437_s3 }
 0xd41   :  { %v692_v16 = vpop.permute.xlu0 %691 }
 0xd42   :  { %3929 = vmatmul.mubr.msk.f32.vlgmr.msra.gmra.mxu0 %vm173_vm3, %v692_v16 }
 0xd43   :  { %3943 = vmatpush3.msra.mxu0 %v4482_v1  ;;  %3950 = vmatprep.mubr.msk.f32.mxu0 %vm4434_vm1, %v4433_v0 }
 0xd44   :  { %3944 = vmatprep.subr.mxu0 %v4433_v0 }
 0xd45   :  { %3945 = vmatpush3.msra.mxu0 %v4487_v2 }
 0xd46   :  { %3946 = vmatprep.subr.mxu0 %v4433_v0 }
 0xd47   :  { %3947 = vmatpush3.msra.mxu0 %v4495_v6 }
 0xd48   :  { %3948 = vmatprep.subr.mxu0 %v4433_v0 }
 0xd49   :  { %3949 = vmatpush3.msra.mxu0 %v4518_v13 }
 0xd4a   :  { %3964 = vmatprep.subr.mxu0 %v4433_v0 }
 0xe02   :  { %v761_v17 = vpop.f32.mrf.mxu0 }
 0xe03   :  { %v772_v18 = vadd.f32 %v761_v17, %v4564_v31  ;;  %v765_v20 = vadd.f32 %v761_v17, %v4573_v39 }
 0xe04   :  { %v3930_v19 = vpop.f32.mrf.mxu0 }
 0xe05   :  { %774 = vrot.lane.b32.xlu1 %v772_v18, %s4436_s28  ;;  %v3635_v21 = vmul.f32 -1.442695, %v765_v20 }
 0xe07   :  { %4263 = vpow2.f32 %v3635_v21 }
 0xe14   :  { %v4264_v22 = vpop.eup %4263 }
 0xe15   :  { %v769_v23 = vadd.f32 1.0, %v4264_v22 }
 0xe17   :  { %4265 = vrcp.f32 %v769_v23 }
 0xe24   :  { %v4266_v24 = vpop.eup %4265 }
 0xe25   :  { %v784_v30 = vsub.f32 1.0, %v4266_v24  ;;  %v790_v33 = vmul.f32 %v4266_v24, %v689_v15 }
 0xe77   :  { %v775_v25 = vpop.permute.xlu1 %774 }
 0xe78   :  { %v777_v26 = vmul.f32 %v4266_v24, %v775_v25 }
 0xe7a   :  { %779 = vrot.lane.b32.xlu0 %v777_v26, %s4436_s28 }
 0xeec   :  { %v780_v27 = vpop.permute.xlu0 %779 }
 0xeed   :  { %v782_v28 = vadd.f32 %v780_v27, %v4573_v39 }
 0xeef   :  { %4267 = vtanh.f32 %v782_v28 }
 0xefc   :  { %v4268_v29 = vpop.eup %4267 }
 0xefd   :  { %786 = vrot.lane.b32.xlu1 %v4268_v29, %s4437_s3 }
 0xf6f   :  { %v787_v32 = vpop.permute.xlu1 %786 }
 0xf70   :  { %v789_v34 = vmul.f32 %v787_v32, %v784_v30 }
 0xf72   :  { %v791_v35 = vadd.f32 %v790_v33, %v789_v34 }
 0xf74   :  { %793 = vrot.lane.b32.xlu0 %v791_v35, %s4437_s3 }
 0xfe6   :  { %v794_v36 = vpop.permute.xlu0 %793 }
 0xfe7   :  { %3940 = vmatmul.mubr.msk.f32.vlgmr.msra.gmra.mxu1 %vm173_vm3, %v794_v36 }
 0xfe8   :  { %3954 = vmatpush3.msra.mxu1 %v4482_v1  ;;  %3961 = vmatprep.mubr.msk.f32.mxu1 %vm4434_vm1, %v4433_v0 }
 0xfe9   :  { %3955 = vmatprep.subr.mxu1 %v4433_v0 }
 0xfea   :  { %3956 = vmatpush3.msra.mxu1 %v4487_v2 }
 0xfeb   :  { %3957 = vmatprep.subr.mxu1 %v4433_v0 }
 0xfec   :  { %3958 = vmatpush3.msra.mxu1 %v4495_v6 }
 0xfed   :  { %3959 = vmatprep.subr.mxu1 %v4433_v0 }
 0xfee   :  { %3960 = vmatpush3.msra.mxu1 %v4518_v13 }
 0xfef   :  { %3975 = vmatprep.subr.mxu1 %v4433_v0 }
0x10a7   :  { %v863_v38 = vpop.f32.mrf.mxu1 }
0x10a8   :  { %v874_v40 = vadd.f32 %v863_v38, %v4564_v31  ;;  %v867_v42 = vadd.f32 %v863_v38, %v4573_v39 }
0x10a9   :  { %v3941_v41 = vpop.f32.mrf.mxu1 }
0x10aa   :  { %876 = vrot.lane.b32.xlu1 %v874_v40, %s4436_s28  ;;  %v3637_v43 = vmul.f32 -1.442695, %v867_v42 }
0x10ac   :  { %4269 = vpow2.f32 %v3637_v43 }
0x10b9   :  { %v4270_v44 = vpop.eup %4269 }
0x10ba   :  { %v871_v45 = vadd.f32 1.0, %v4270_v44 }
0x10bc   :  { %4271 = vrcp.f32 %v871_v45 }
0x10c9   :  { %v4272_v46 = vpop.eup %4271 }
0x10ca   :  { %v886_v52 = vsub.f32 1.0, %v4272_v46  ;;  %v892_v54 = vmul.f32 %v4272_v46, %v791_v35 }
0x111c   :  { %v877_v47 = vpop.permute.xlu1 %876 }
0x111d   :  { %v879_v48 = vmul.f32 %v4272_v46, %v877_v47 }
0x111f   :  { %881 = vrot.lane.b32.xlu0 %v879_v48, %s4436_s28 }
0x1191   :  { %v882_v49 = vpop.permute.xlu0 %881 }
0x1192   :  { %v884_v50 = vadd.f32 %v882_v49, %v4573_v39 }
0x1194   :  { %4273 = vtanh.f32 %v884_v50 }
0x11a1   :  { %v4274_v51 = vpop.eup %4273 }
0x11a2   :  { %888 = vrot.lane.b32.xlu1 %v4274_v51, %s4437_s3 }
0x1214   :  { %v889_v53 = vpop.permute.xlu1 %888 }
0x1215   :  { %v891_v55 = vmul.f32 %v889_v53, %v886_v52 }
0x1217   :  { %v893_v56 = vadd.f32 %v892_v54, %v891_v55 }
0x1219   :  { %895 = vrot.lane.b32.xlu0 %v893_v56, %s4437_s3 }
0x128b   :  { %v896_v57 = vpop.permute.xlu0 %895 }
0x128c   :  { %3951 = vmatmul.mubr.msk.f32.vlgmr.msra.gmra.mxu0 %vm173_vm3, %v896_v57 }
0x128d   :  { %3965 = vmatpush3.msra.mxu0 %v4482_v1  ;;  %3972 = vmatprep.mubr.msk.f32.mxu0 %vm4434_vm1, %v4433_v0 }
0x128e   :  { %3966 = vmatprep.subr.mxu0 %v4433_v0 }
0x128f   :  { %3967 = vmatpush3.msra.mxu0 %v4487_v2 }
0x1290   :  { %3968 = vmatprep.subr.mxu0 %v4433_v0 }
0x1291   :  { %3969 = vmatpush3.msra.mxu0 %v4495_v6 }
0x1292   :  { %3970 = vmatprep.subr.mxu0 %v4433_v0 }
0x1293   :  { %3971 = vmatpush3.msra.mxu0 %v4518_v13 }
0x1294   :  { %3986 = vmatprep.subr.mxu0 %v4433_v0 }
0x134c   :  { %v965_v58 = vpop.f32.mrf.mxu0 }
0x134d   :  { %v976_v59 = vadd.f32 %v965_v58, %v4564_v31  ;;  %v969_v61 = vadd.f32 %v965_v58, %v4573_v39 }
0x134e   :  { %v3952_v60 = vpop.f32.mrf.mxu0 }
0x134f   :  { %978 = vrot.lane.b32.xlu1 %v976_v59, %s4436_s28  ;;  %v3639_v62 = vmul.f32 -1.442695, %v969_v61 }
0x1351   :  { %4275 = vpow2.f32 %v3639_v62 }
0x135e   :  { %v4276_v63 = vpop.eup %4275 }
0x135f   :  { %v973_v3 = vadd.f32 1.0, %v4276_v63 }
0x1361   :  { %4277 = vrcp.f32 %v973_v3 }
0x136e   :  { %v4278_v4 = vpop.eup %4277 }
0x136f   :  { %v988_v11 = vsub.f32 1.0, %v4278_v4  ;;  %v994_v14 = vmul.f32 %v4278_v4, %v893_v56 }
0x13c1   :  { %v979_v5 = vpop.permute.xlu1 %978 }
0x13c2   :  { %v981_v7 = vmul.f32 %v4278_v4, %v979_v5 }
0x13c4   :  { %983 = vrot.lane.b32.xlu0 %v981_v7, %s4436_s28 }
0x1436   :  { %v984_v8 = vpop.permute.xlu0 %983 }
0x1437   :  { %v986_v9 = vadd.f32 %v984_v8, %v4573_v39 }
0x1439   :  { %4279 = vtanh.f32 %v986_v9 }
0x1446   :  { %v4280_v10 = vpop.eup %4279 }
0x1447   :  { %990 = vrot.lane.b32.xlu1 %v4280_v10, %s4437_s3 }
0x14b9   :  { %v991_v12 = vpop.permute.xlu1 %990 }
0x14ba   :  { %v993_v15 = vmul.f32 %v991_v12, %v988_v11 }
0x14bc   :  { %v995_v16 = vadd.f32 %v994_v14, %v993_v15 }
0x14be   :  { %997 = vrot.lane.b32.xlu0 %v995_v16, %s4437_s3 }
0x1530   :  { %v998_v17 = vpop.permute.xlu0 %997 }
0x1531   :  { %3962 = vmatmul.mubr.msk.f32.vlgmr.msra.gmra.mxu1 %vm173_vm3, %v998_v17 }
0x1532   :  { %3976 = vmatpush3.msra.mxu1 %v4482_v1  ;;  %3983 = vmatprep.mubr.msk.f32.mxu1 %vm4434_vm1, %v4433_v0 }
0x1533   :  { %3977 = vmatprep.subr.mxu1 %v4433_v0 }
0x1534   :  { %3978 = vmatpush3.msra.mxu1 %v4487_v2 }
0x1535   :  { %3979 = vmatprep.subr.mxu1 %v4433_v0 }
0x1536   :  { %3980 = vmatpush3.msra.mxu1 %v4495_v6 }
0x1537   :  { %3981 = vmatprep.subr.mxu1 %v4433_v0 }
0x1538   :  { %3982 = vmatpush3.msra.mxu1 %v4518_v13 }
0x1539   :  { %3997 = vmatprep.subr.mxu1 %v4433_v0 }
0x15f1   :  { %v1067_v18 = vpop.f32.mrf.mxu1 }
0x15f2   :  { %v1078_v19 = vadd.f32 %v1067_v18, %v4564_v31  ;;  %v1071_v21 = vadd.f32 %v1067_v18, %v4573_v39 }
0x15f3   :  { %v3963_v20 = vpop.f32.mrf.mxu1 }
0x15f4   :  { %1080 = vrot.lane.b32.xlu1 %v1078_v19, %s4436_s28  ;;  %v3641_v22 = vmul.f32 -1.442695, %v1071_v21 }
0x15f6   :  { %4281 = vpow2.f32 %v3641_v22 }
0x1603   :  { %v4282_v23 = vpop.eup %4281 }
0x1604   :  { %v1075_v24 = vadd.f32 1.0, %v4282_v23 }
0x1606   :  { %4283 = vrcp.f32 %v1075_v24 }
0x1613   :  { %v4284_v25 = vpop.eup %4283 }
0x1614   :  { %v1090_v32 = vsub.f32 1.0, %v4284_v25  ;;  %v1096_v34 = vmul.f32 %v4284_v25, %v995_v16 }
0x1666   :  { %v1081_v26 = vpop.permute.xlu1 %1080 }
0x1667   :  { %v1083_v27 = vmul.f32 %v4284_v25, %v1081_v26 }
0x1669   :  { %1085 = vrot.lane.b32.xlu0 %v1083_v27, %s4436_s28 }
0x16db   :  { %v1086_v28 = vpop.permute.xlu0 %1085 }
0x16dc   :  { %v1088_v29 = vadd.f32 %v1086_v28, %v4573_v39 }
0x16de   :  { %4285 = vtanh.f32 %v1088_v29 }
0x16eb   :  { %v4286_v30 = vpop.eup %4285 }
0x16ec   :  { %1092 = vrot.lane.b32.xlu1 %v4286_v30, %s4437_s3 }
0x175e   :  { %v1093_v33 = vpop.permute.xlu1 %1092 }
0x175f   :  { %v1095_v35 = vmul.f32 %v1093_v33, %v1090_v32 }
0x1761   :  { %v1097_v36 = vadd.f32 %v1096_v34, %v1095_v35 }
0x1763   :  { %1099 = vrot.lane.b32.xlu0 %v1097_v36, %s4437_s3 }
0x17d5   :  { %v1100_v38 = vpop.permute.xlu0 %1099 }
0x17d6   :  { %3973 = vmatmul.mubr.msk.f32.vlgmr.msra.gmra.mxu0 %vm173_vm3, %v1100_v38 }
0x17d7   :  { %3987 = vmatpush3.msra.mxu0 %v4482_v1  ;;  %3994 = vmatprep.mubr.msk.f32.mxu0 %vm4434_vm1, %v4433_v0 }
0x17d8   :  { %3988 = vmatprep.subr.mxu0 %v4433_v0 }
0x17d9   :  { %3989 = vmatpush3.msra.mxu0 %v4487_v2 }
0x17da   :  { %3990 = vmatprep.subr.mxu0 %v4433_v0 }
0x17db   :  { %3991 = vmatpush3.msra.mxu0 %v4495_v6 }
0x17dc   :  { %3992 = vmatprep.subr.mxu0 %v4433_v0 }
0x17dd   :  { %3993 = vmatpush3.msra.mxu0 %v4518_v13 }
0x17de   :  { %4008 = vmatprep.subr.mxu0 %v4433_v0 }
0x1896   :  { %v1169_v40 = vpop.f32.mrf.mxu0 }
0x1897   :  { %v1180_v41 = vadd.f32 %v1169_v40, %v4564_v31  ;;  %v1173_v43 = vadd.f32 %v1169_v40, %v4573_v39 }
0x1898   :  { %v3974_v42 = vpop.f32.mrf.mxu0 }
0x1899   :  { %1182 = vrot.lane.b32.xlu1 %v1180_v41, %s4436_s28  ;;  %v3643_v44 = vmul.f32 -1.442695, %v1173_v43 }
0x189b   :  { %4287 = vpow2.f32 %v3643_v44 }
0x18a8   :  { %v4288_v45 = vpop.eup %4287 }
0x18a9   :  { %v1177_v46 = vadd.f32 1.0, %v4288_v45 }
0x18ab   :  { %4289 = vrcp.f32 %v1177_v46 }
0x18b8   :  { %v4290_v47 = vpop.eup %4289 }
0x18b9   :  { %v1192_v53 = vsub.f32 1.0, %v4290_v47  ;;  %v1198_v55 = vmul.f32 %v4290_v47, %v1097_v36 }
0x190b   :  { %v1183_v48 = vpop.permute.xlu1 %1182 }
0x190c   :  { %v1185_v49 = vmul.f32 %v4290_v47, %v1183_v48 }
0x190e   :  { %1187 = vrot.lane.b32.xlu0 %v1185_v49, %s4436_s28 }
0x1980   :  { %v1188_v50 = vpop.permute.xlu0 %1187 }
0x1981   :  { %v1190_v51 = vadd.f32 %v1188_v50, %v4573_v39 }
0x1983   :  { %4291 = vtanh.f32 %v1190_v51 }
0x1990   :  { %v4292_v52 = vpop.eup %4291 }
0x1991   :  { %1194 = vrot.lane.b32.xlu1 %v4292_v52, %s4437_s3 }
0x1a03   :  { %v1195_v54 = vpop.permute.xlu1 %1194 }
0x1a04   :  { %v1197_v56 = vmul.f32 %v1195_v54, %v1192_v53 }
0x1a06   :  { %v1199_v57 = vadd.f32 %v1198_v55, %v1197_v56  ;;  %v4800_v56 = vld [vmem:[%s5211_s2 + $0x18] sm:$0xff] }
0x1a08   :  { %1201 = vrot.lane.b32.xlu0 %v1199_v57, %s4437_s3 }
0x1a7a   :  { %v1202_v58 = vpop.permute.xlu0 %1201 }
0x1a7b   :  { %3984 = vmatmul.mubr.msk.f32.vlgmr.msra.gmra.mxu1 %vm173_vm3, %v1202_v58  ;;  %v4816_v58 = vld [vmem:[%s5211_s2 + $0x8] sm:$0xff] }
0x1a7c   :  { %3998 = vmatpush3.msra.mxu1 %v4482_v1  ;;  %4005 = vmatprep.mubr.msk.f32.mxu1 %vm4434_vm1, %v4433_v0 }
0x1a7d   :  { %3999 = vmatprep.subr.mxu1 %v4433_v0 }
0x1a7e   :  { %4000 = vmatpush3.msra.mxu1 %v4487_v2 }
0x1a7f   :  { %4001 = vmatprep.subr.mxu1 %v4433_v0 }
0x1a80   :  { %4002 = vmatpush3.msra.mxu1 %v4495_v6 }
0x1a81   :  { %4003 = vmatprep.subr.mxu1 %v4433_v0 }
0x1a82   :  { %4004 = vmatpush3.msra.mxu1 %v4518_v13 }
0x1a83   :  { %4019 = vmatprep.subr.mxu1 %v4433_v0 }
0x1b3b   :  { %v1271_v59 = vpop.f32.mrf.mxu1 }
0x1b3c   :  { %v1282_v60 = vadd.f32 %v1271_v59, %v4564_v31  ;;  %v1275_v62 = vadd.f32 %v1271_v59, %v4573_v39  ;;  %v4823_v59 = vld [vmem:[%s5211_s2] sm:$0xff] }
0x1b3d   :  { %v3985_v61 = vpop.f32.mrf.mxu1 }
0x1b3e   :  { %1284 = vrot.lane.b32.xlu1 %v1282_v60, %s4436_s28  ;;  %v3645_v63 = vmul.f32 -1.442695, %v1275_v62 }
0x1b40   :  { %4293 = vpow2.f32 %v3645_v63 }
0x1b4d   :  { %v4294_v3 = vpop.eup %4293 }
0x1b4e   :  { %v1279_v4 = vadd.f32 1.0, %v4294_v3 }
0x1b50   :  { %4295 = vrcp.f32 %v1279_v4 }
0x1b5d   :  { %v4296_v5 = vpop.eup %4295 }
0x1b5e   :  { %v1294_v12 = vsub.f32 1.0, %v4296_v5  ;;  %v1300_v15 = vmul.f32 %v4296_v5, %v1199_v57  ;;  %v4809_v57 = vld [vmem:[%s5211_s2 + $0x10] sm:$0xff] }
0x1bb0   :  { %v1285_v7 = vpop.permute.xlu1 %1284 }
0x1bb1   :  { %v1287_v8 = vmul.f32 %v4296_v5, %v1285_v7 }
0x1bb3   :  { %1289 = vrot.lane.b32.xlu0 %v1287_v8, %s4436_s28 }
0x1c25   :  { %v1290_v9 = vpop.permute.xlu0 %1289 }
0x1c26   :  { %v1292_v10 = vadd.f32 %v1290_v9, %v4573_v39 }
0x1c28   :  { %4297 = vtanh.f32 %v1292_v10 }
0x1c35   :  { %v4298_v11 = vpop.eup %4297 }
0x1c36   :  { %1296 = vrot.lane.b32.xlu1 %v4298_v11, %s4437_s3 }
0x1ca8   :  { %v1297_v14 = vpop.permute.xlu1 %1296 }
0x1ca9   :  { %v1299_v16 = vmul.f32 %v1297_v14, %v1294_v12 }
0x1cab   :  { %v1301_v17 = vadd.f32 %v1300_v15, %v1299_v16 }
0x1cad   :  { %1303 = vrot.lane.b32.xlu0 %v1301_v17, %s4437_s3 }
0x1d1f   :  { %v1304_v18 = vpop.permute.xlu0 %1303 }
0x1d20   :  { %3995 = vmatmul.mubr.msk.f32.vlgmr.msra.gmra.mxu0 %vm173_vm3, %v1304_v18 }
0x1d21   :  { %4009 = vmatpush3.msra.mxu0 %v4482_v1  ;;  %4016 = vmatprep.mubr.msk.f32.mxu0 %vm4434_vm1, %v4433_v0 }
0x1d22   :  { %4010 = vmatprep.subr.mxu0 %v4433_v0 }
0x1d23   :  { %4011 = vmatpush3.msra.mxu0 %v4487_v2 }
0x1d24   :  { %4012 = vmatprep.subr.mxu0 %v4433_v0 }
0x1d25   :  { %4013 = vmatpush3.msra.mxu0 %v4495_v6 }
0x1d26   :  { %4014 = vmatprep.subr.mxu0 %v4433_v0 }
0x1d27   :  { %4015 = vmatpush3.msra.mxu0 %v4518_v13 }
0x1d28   :  { %4030 = vmatprep.subr.mxu0 %v4433_v0 }
0x1de0   :  { %v1373_v19 = vpop.f32.mrf.mxu0 }
0x1de1   :  { %v1384_v20 = vadd.f32 %v1373_v19, %v4564_v31  ;;  %v1377_v22 = vadd.f32 %v1373_v19, %v4573_v39 }
0x1de2   :  { %v3996_v21 = vpop.f32.mrf.mxu0 }
0x1de3   :  { %1386 = vrot.lane.b32.xlu1 %v1384_v20, %s4436_s28  ;;  %v3647_v23 = vmul.f32 -1.442695, %v1377_v22 }
0x1de5   :  { %4299 = vpow2.f32 %v3647_v23 }
0x1df2   :  { %v4300_v24 = vpop.eup %4299 }
0x1df3   :  { %v1381_v25 = vadd.f32 1.0, %v4300_v24 }
0x1df5   :  { %4301 = vrcp.f32 %v1381_v25 }
0x1e02   :  { %v4302_v26 = vpop.eup %4301 }
0x1e03   :  { %v1396_v33 = vsub.f32 1.0, %v4302_v26  ;;  %v1402_v35 = vmul.f32 %v4302_v26, %v1301_v17 }
0x1e55   :  { %v1387_v27 = vpop.permute.xlu1 %1386 }
0x1e56   :  { %v1389_v28 = vmul.f32 %v4302_v26, %v1387_v27 }
0x1e58   :  { %1391 = vrot.lane.b32.xlu0 %v1389_v28, %s4436_s28 }
0x1eca   :  { %v1392_v29 = vpop.permute.xlu0 %1391 }
0x1ecb   :  { %v1394_v30 = vadd.f32 %v1392_v29, %v4573_v39 }
0x1ecd   :  { %4303 = vtanh.f32 %v1394_v30 }
0x1eda   :  { %v4304_v32 = vpop.eup %4303 }
0x1edb   :  { %1398 = vrot.lane.b32.xlu1 %v4304_v32, %s4437_s3 }
0x1f4d   :  { %v1399_v34 = vpop.permute.xlu1 %1398 }
0x1f4e   :  { %v1401_v36 = vmul.f32 %v1399_v34, %v1396_v33 }
0x1f50   :  { %v1403_v38 = vadd.f32 %v1402_v35, %v1401_v36 }
0x1f52   :  { %1405 = vrot.lane.b32.xlu0 %v1403_v38, %s4437_s3 }
0x1fc4   :  { %v1406_v40 = vpop.permute.xlu0 %1405 }
0x1fc5   :  { %4006 = vmatmul.mubr.msk.f32.vlgmr.msra.gmra.mxu1 %vm173_vm3, %v1406_v40 }
0x1fc6   :  { %4020 = vmatpush3.msra.mxu1 %v4482_v1  ;;  %4027 = vmatprep.mubr.msk.f32.mxu1 %vm4434_vm1, %v4433_v0 }
0x1fc7   :  { %4021 = vmatprep.subr.mxu1 %v4433_v0 }
0x1fc8   :  { %4022 = vmatpush3.msra.mxu1 %v4487_v2 }
0x1fc9   :  { %4023 = vmatprep.subr.mxu1 %v4433_v0 }
0x1fca   :  { %4024 = vmatpush3.msra.mxu1 %v4495_v6 }
0x1fcb   :  { %4025 = vmatprep.subr.mxu1 %v4433_v0 }
0x1fcc   :  { %4026 = vmatpush3.msra.mxu1 %v4518_v13 }
0x1fcd   :  { %4041 = vmatprep.subr.mxu1 %v4433_v0 }
0x2085   :  { %v1475_v41 = vpop.f32.mrf.mxu1 }
0x2086   :  { %v1486_v1 = vadd.f32 %v1475_v41, %v4564_v31  ;;  %v1479_v43 = vadd.f32 %v1475_v41, %v4573_v39 }
0x2087   :  { %v4007_v42 = vpop.f32.mrf.mxu1 }
0x2088   :  { %1488 = vrot.lane.b32.xlu1 %v1486_v1, %s4436_s28  ;;  %v3649_v44 = vmul.f32 -1.442695, %v1479_v43 }
0x208a   :  { %4305 = vpow2.f32 %v3649_v44 }
0x2097   :  { %v4306_v2 = vpop.eup %4305 }
0x2098   :  { %v1483_v45 = vadd.f32 1.0, %v4306_v2 }
0x209a   :  { %4307 = vrcp.f32 %v1483_v45 }
0x20a7   :  { %v4308_v6 = vpop.eup %4307 }
0x20a8   :  { %v1498_v50 = vsub.f32 1.0, %v4308_v6  ;;  %v1504_v52 = vmul.f32 %v4308_v6, %v1403_v38 }
0x20fa   :  { %v1489_v46 = vpop.permute.xlu1 %1488 }
0x20fb   :  { %v1491_v47 = vmul.f32 %v4308_v6, %v1489_v46 }
0x20fd   :  { %1493 = vrot.lane.b32.xlu0 %v1491_v47, %s4436_s28 }
0x216f   :  { %v1494_v13 = vpop.permute.xlu0 %1493 }
0x2170   :  { %v1496_v48 = vadd.f32 %v1494_v13, %v4573_v39 }
0x2172   :  { %4309 = vtanh.f32 %v1496_v48 }
0x217f   :  { %v4310_v49 = vpop.eup %4309 }
0x2180   :  { %1500 = vrot.lane.b32.xlu1 %v4310_v49, %s4437_s3 }
0x21f2   :  { %v1501_v51 = vpop.permute.xlu1 %1500 }
0x21f3   :  { %v1503_v53 = vmul.f32 %v1501_v51, %v1498_v50 }
0x21f5   :  { %v1505_v54 = vadd.f32 %v1504_v52, %v1503_v53 }
0x21f7   :  { %1507 = vrot.lane.b32.xlu0 %v1505_v54, %s4437_s3 }
0x2269   :  { %v1508_v55 = vpop.permute.xlu0 %1507 }
0x226a   :  { %4017 = vmatmul.mubr.msk.f32.vlgmr.msra.gmra.mxu0 %vm173_vm3, %v1508_v55 }
0x226b   :  { %4031 = vmatpush3.msra.mxu0 %v4800_v56  ;;  %4038 = vmatprep.mubr.msk.f32.mxu0 %vm4434_vm1, %v4433_v0 }
0x226c   :  { %4032 = vmatprep.subr.mxu0 %v4433_v0 }
0x226d   :  { %4033 = vmatpush3.msra.mxu0 %v4809_v57 }
0x226e   :  { %4034 = vmatprep.subr.mxu0 %v4433_v0 }
0x226f   :  { %4035 = vmatpush3.msra.mxu0 %v4816_v58 }
0x2270   :  { %4036 = vmatprep.subr.mxu0 %v4433_v0 }
0x2271   :  { %4037 = vmatpush3.msra.mxu0 %v4823_v59 }
0x2272   :  { %4052 = vmatprep.subr.mxu0 %v4433_v0 }
0x232a   :  { %v1577_v60 = vpop.f32.mrf.mxu0 }
0x232b   :  { %v1588_v61 = vadd.f32 %v1577_v60, %v4564_v31  ;;  %v1581_v63 = vadd.f32 %v1577_v60, %v4573_v39 }
0x232c   :  { %v4018_v62 = vpop.f32.mrf.mxu0 }
0x232d   :  { %1590 = vrot.lane.b32.xlu1 %v1588_v61, %s4436_s28  ;;  %v3651_v3 = vmul.f32 -1.442695, %v1581_v63 }
0x232f   :  { %4311 = vpow2.f32 %v3651_v3 }
0x233c   :  { %v4312_v4 = vpop.eup %4311 }
0x233d   :  { %v1585_v5 = vadd.f32 1.0, %v4312_v4 }
0x233f   :  { %4313 = vrcp.f32 %v1585_v5 }
0x234c   :  { %v4314_v7 = vpop.eup %4313 }
0x234d   :  { %v1600_v14 = vsub.f32 1.0, %v4314_v7  ;;  %v1606_v16 = vmul.f32 %v4314_v7, %v1505_v54 }
0x239f   :  { %v1591_v8 = vpop.permute.xlu1 %1590 }
0x23a0   :  { %v1593_v9 = vmul.f32 %v4314_v7, %v1591_v8 }
0x23a2   :  { %1595 = vrot.lane.b32.xlu0 %v1593_v9, %s4436_s28 }
0x2414   :  { %v1596_v10 = vpop.permute.xlu0 %1595 }
0x2415   :  { %v1598_v11 = vadd.f32 %v1596_v10, %v4573_v39 }
0x2417   :  { %4315 = vtanh.f32 %v1598_v11 }
0x2424   :  { %v4316_v12 = vpop.eup %4315 }
0x2425   :  { %1602 = vrot.lane.b32.xlu1 %v4316_v12, %s4437_s3 }
0x2497   :  { %v1603_v15 = vpop.permute.xlu1 %1602 }
0x2498   :  { %v1605_v17 = vmul.f32 %v1603_v15, %v1600_v14 }
0x249a   :  { %v1607_v18 = vadd.f32 %v1606_v16, %v1605_v17 }
0x249c   :  { %1609 = vrot.lane.b32.xlu0 %v1607_v18, %s4437_s3 }
0x250e   :  { %v1610_v19 = vpop.permute.xlu0 %1609 }
0x250f   :  { %4028 = vmatmul.mubr.msk.f32.vlgmr.msra.gmra.mxu1 %vm173_vm3, %v1610_v19 }
0x2510   :  { %4042 = vmatpush3.msra.mxu1 %v4800_v56  ;;  %4049 = vmatprep.mubr.msk.f32.mxu1 %vm4434_vm1, %v4433_v0 }
0x2511   :  { %4043 = vmatprep.subr.mxu1 %v4433_v0 }
0x2512   :  { %4044 = vmatpush3.msra.mxu1 %v4809_v57 }
0x2513   :  { %4045 = vmatprep.subr.mxu1 %v4433_v0 }
0x2514   :  { %4046 = vmatpush3.msra.mxu1 %v4816_v58 }
0x2515   :  { %4047 = vmatprep.subr.mxu1 %v4433_v0 }
0x2516   :  { %4048 = vmatpush3.msra.mxu1 %v4823_v59 }
0x2517   :  { %4063 = vmatprep.subr.mxu1 %v4433_v0 }
0x25cf   :  { %v1679_v20 = vpop.f32.mrf.mxu1 }
0x25d0   :  { %v1690_v21 = vadd.f32 %v1679_v20, %v4564_v31  ;;  %v1683_v23 = vadd.f32 %v1679_v20, %v4573_v39 }
0x25d1   :  { %v4029_v22 = vpop.f32.mrf.mxu1 }
0x25d2   :  { %1692 = vrot.lane.b32.xlu1 %v1690_v21, %s4436_s28  ;;  %v3653_v24 = vmul.f32 -1.442695, %v1683_v23 }
0x25d4   :  { %4317 = vpow2.f32 %v3653_v24 }
0x25e1   :  { %v4318_v25 = vpop.eup %4317 }
0x25e2   :  { %v1687_v26 = vadd.f32 1.0, %v4318_v25 }
0x25e4   :  { %4319 = vrcp.f32 %v1687_v26 }
0x25f1   :  { %v4320_v27 = vpop.eup %4319 }
0x25f2   :  { %v1702_v34 = vsub.f32 1.0, %v4320_v27  ;;  %v1708_v36 = vmul.f32 %v4320_v27, %v1607_v18 }
0x2644   :  { %v1693_v28 = vpop.permute.xlu1 %1692 }
0x2645   :  { %v1695_v29 = vmul.f32 %v4320_v27, %v1693_v28 }
0x2647   :  { %1697 = vrot.lane.b32.xlu0 %v1695_v29, %s4436_s28 }
0x26b9   :  { %v1698_v30 = vpop.permute.xlu0 %1697 }
0x26ba   :  { %v1700_v32 = vadd.f32 %v1698_v30, %v4573_v39 }
0x26bc   :  { %4321 = vtanh.f32 %v1700_v32 }
0x26c9   :  { %v4322_v33 = vpop.eup %4321 }
0x26ca   :  { %1704 = vrot.lane.b32.xlu1 %v4322_v33, %s4437_s3 }
0x273c   :  { %v1705_v35 = vpop.permute.xlu1 %1704 }
0x273d   :  { %v1707_v38 = vmul.f32 %v1705_v35, %v1702_v34 }
0x273f   :  { %v1709_v40 = vadd.f32 %v1708_v36, %v1707_v38 }
0x2741   :  { %1711 = vrot.lane.b32.xlu0 %v1709_v40, %s4437_s3 }
0x27b3   :  { %v1712_v41 = vpop.permute.xlu0 %1711 }
0x27b4   :  { %4039 = vmatmul.mubr.msk.f32.vlgmr.msra.gmra.mxu0 %vm173_vm3, %v1712_v41 }
0x27b5   :  { %4053 = vmatpush3.msra.mxu0 %v4800_v56  ;;  %4060 = vmatprep.mubr.msk.f32.mxu0 %vm4434_vm1, %v4433_v0 }
0x27b6   :  { %4054 = vmatprep.subr.mxu0 %v4433_v0 }
0x27b7   :  { %4055 = vmatpush3.msra.mxu0 %v4809_v57 }
0x27b8   :  { %4056 = vmatprep.subr.mxu0 %v4433_v0 }
0x27b9   :  { %4057 = vmatpush3.msra.mxu0 %v4816_v58 }
0x27ba   :  { %4058 = vmatprep.subr.mxu0 %v4433_v0 }
0x27bb   :  { %4059 = vmatpush3.msra.mxu0 %v4823_v59 }
0x27bc   :  { %4074 = vmatprep.subr.mxu0 %v4433_v0 }
0x2874   :  { %v1781_v1 = vpop.f32.mrf.mxu0 }
0x2875   :  { %v1792_v42 = vadd.f32 %v1781_v1, %v4564_v31  ;;  %v1785_v44 = vadd.f32 %v1781_v1, %v4573_v39 }
0x2876   :  { %v4040_v43 = vpop.f32.mrf.mxu0 }
0x2877   :  { %1794 = vrot.lane.b32.xlu1 %v1792_v42, %s4436_s28  ;;  %v3655_v2 = vmul.f32 -1.442695, %v1785_v44 }
0x2879   :  { %4323 = vpow2.f32 %v3655_v2 }
0x2886   :  { %v4324_v45 = vpop.eup %4323 }
0x2887   :  { %v1789_v6 = vadd.f32 1.0, %v4324_v45 }
0x2889   :  { %4325 = vrcp.f32 %v1789_v6 }
0x2896   :  { %v4326_v46 = vpop.eup %4325 }
0x2897   :  { %v1804_v51 = vsub.f32 1.0, %v4326_v46  ;;  %v1810_v53 = vmul.f32 %v4326_v46, %v1709_v40 }
0x28e9   :  { %v1795_v47 = vpop.permute.xlu1 %1794 }
0x28ea   :  { %v1797_v13 = vmul.f32 %v4326_v46, %v1795_v47 }
0x28ec   :  { %1799 = vrot.lane.b32.xlu0 %v1797_v13, %s4436_s28 }
0x295e   :  { %v1800_v48 = vpop.permute.xlu0 %1799 }
0x295f   :  { %v1802_v49 = vadd.f32 %v1800_v48, %v4573_v39 }
0x2961   :  { %4327 = vtanh.f32 %v1802_v49 }
0x296e   :  { %v4328_v50 = vpop.eup %4327 }
0x296f   :  { %1806 = vrot.lane.b32.xlu1 %v4328_v50, %s4437_s3 }
0x29e1   :  { %v1807_v52 = vpop.permute.xlu1 %1806 }
0x29e2   :  { %v1809_v54 = vmul.f32 %v1807_v52, %v1804_v51 }
0x29e4   :  { %v1811_v55 = vadd.f32 %v1810_v53, %v1809_v54 }
0x29e6   :  { %1813 = vrot.lane.b32.xlu0 %v1811_v55, %s4437_s3 }
0x2a58   :  { %v1814_v60 = vpop.permute.xlu0 %1813 }
0x2a59   :  { %4050 = vmatmul.mubr.msk.f32.vlgmr.msra.gmra.mxu1 %vm173_vm3, %v1814_v60 }
0x2a5a   :  { %4064 = vmatpush3.msra.mxu1 %v4800_v56  ;;  %4071 = vmatprep.mubr.msk.f32.mxu1 %vm4434_vm1, %v4433_v0 }
0x2a5b   :  { %4065 = vmatprep.subr.mxu1 %v4433_v0 }
0x2a5c   :  { %4066 = vmatpush3.msra.mxu1 %v4809_v57 }
0x2a5d   :  { %4067 = vmatprep.subr.mxu1 %v4433_v0 }
0x2a5e   :  { %4068 = vmatpush3.msra.mxu1 %v4816_v58 }
0x2a5f   :  { %4069 = vmatprep.subr.mxu1 %v4433_v0 }
0x2a60   :  { %4070 = vmatpush3.msra.mxu1 %v4823_v59 }
0x2a61   :  { %4085 = vmatprep.subr.mxu1 %v4433_v0 }
0x2b19   :  { %v1883_v61 = vpop.f32.mrf.mxu1 }
0x2b1a   :  { %v1894_v62 = vadd.f32 %v1883_v61, %v4564_v31  ;;  %v1887_v3 = vadd.f32 %v1883_v61, %v4573_v39 }
0x2b1b   :  { %v4051_v63 = vpop.f32.mrf.mxu1 }
0x2b1c   :  { %1896 = vrot.lane.b32.xlu1 %v1894_v62, %s4436_s28  ;;  %v3657_v4 = vmul.f32 -1.442695, %v1887_v3 }
0x2b1e   :  { %4329 = vpow2.f32 %v3657_v4 }
0x2b2b   :  { %v4330_v5 = vpop.eup %4329 }
0x2b2c   :  { %v1891_v7 = vadd.f32 1.0, %v4330_v5 }
0x2b2e   :  { %4331 = vrcp.f32 %v1891_v7 }
0x2b3b   :  { %v4332_v8 = vpop.eup %4331 }
0x2b3c   :  { %v1906_v15 = vsub.f32 1.0, %v4332_v8  ;;  %v1912_v17 = vmul.f32 %v4332_v8, %v1811_v55 }
0x2b8e   :  { %v1897_v9 = vpop.permute.xlu1 %1896 }
0x2b8f   :  { %v1899_v10 = vmul.f32 %v4332_v8, %v1897_v9 }
0x2b91   :  { %1901 = vrot.lane.b32.xlu0 %v1899_v10, %s4436_s28 }
0x2c03   :  { %v1902_v11 = vpop.permute.xlu0 %1901 }
0x2c04   :  { %v1904_v12 = vadd.f32 %v1902_v11, %v4573_v39 }
0x2c06   :  { %4333 = vtanh.f32 %v1904_v12 }
0x2c13   :  { %v4334_v14 = vpop.eup %4333 }
0x2c14   :  { %1908 = vrot.lane.b32.xlu1 %v4334_v14, %s4437_s3 }
0x2c86   :  { %v1909_v16 = vpop.permute.xlu1 %1908 }
0x2c87   :  { %v1911_v18 = vmul.f32 %v1909_v16, %v1906_v15 }
0x2c89   :  { %v1913_v19 = vadd.f32 %v1912_v17, %v1911_v18 }
0x2c8b   :  { %1915 = vrot.lane.b32.xlu0 %v1913_v19, %s4437_s3 }
0x2cfd   :  { %v1916_v20 = vpop.permute.xlu0 %1915 }
0x2cfe   :  { %4061 = vmatmul.mubr.msk.f32.vlgmr.msra.gmra.mxu0 %vm173_vm3, %v1916_v20 }
0x2cff   :  { %4075 = vmatpush3.msra.mxu0 %v4800_v56  ;;  %4082 = vmatprep.mubr.msk.f32.mxu0 %vm4434_vm1, %v4433_v0 }
0x2d00   :  { %4076 = vmatprep.subr.mxu0 %v4433_v0 }
0x2d01   :  { %4077 = vmatpush3.msra.mxu0 %v4809_v57 }
0x2d02   :  { %4078 = vmatprep.subr.mxu0 %v4433_v0 }
0x2d03   :  { %4079 = vmatpush3.msra.mxu0 %v4816_v58 }
0x2d04   :  { %4080 = vmatprep.subr.mxu0 %v4433_v0 }
0x2d05   :  { %4081 = vmatpush3.msra.mxu0 %v4823_v59 }
0x2d06   :  { %4096 = vmatprep.subr.mxu0 %v4433_v0 }
0x2dbe   :  { %v1985_v21 = vpop.f32.mrf.mxu0 }
0x2dbf   :  { %v1996_v22 = vadd.f32 %v1985_v21, %v4564_v31  ;;  %v1989_v24 = vadd.f32 %v1985_v21, %v4573_v39 }
0x2dc0   :  { %v4062_v23 = vpop.f32.mrf.mxu0 }
0x2dc1   :  { %1998 = vrot.lane.b32.xlu1 %v1996_v22, %s4436_s28  ;;  %v3659_v25 = vmul.f32 -1.442695, %v1989_v24 }
0x2dc3   :  { %4335 = vpow2.f32 %v3659_v25 }
0x2dd0   :  { %v4336_v26 = vpop.eup %4335 }
0x2dd1   :  { %v1993_v27 = vadd.f32 1.0, %v4336_v26 }
0x2dd3   :  { %4337 = vrcp.f32 %v1993_v27 }
0x2de0   :  { %v4338_v28 = vpop.eup %4337 }
0x2de1   :  { %v2008_v35 = vsub.f32 1.0, %v4338_v28  ;;  %v2014_v38 = vmul.f32 %v4338_v28, %v1913_v19 }
0x2e33   :  { %v1999_v29 = vpop.permute.xlu1 %1998 }
0x2e34   :  { %v2001_v30 = vmul.f32 %v4338_v28, %v1999_v29 }
0x2e36   :  { %2003 = vrot.lane.b32.xlu0 %v2001_v30, %s4436_s28 }
0x2ea8   :  { %v2004_v32 = vpop.permute.xlu0 %2003 }
0x2ea9   :  { %v2006_v33 = vadd.f32 %v2004_v32, %v4573_v39 }
0x2eab   :  { %4339 = vtanh.f32 %v2006_v33 }
0x2eb8   :  { %v4340_v34 = vpop.eup %4339 }
0x2eb9   :  { %2010 = vrot.lane.b32.xlu1 %v4340_v34, %s4437_s3 }
0x2f2b   :  { %v2011_v36 = vpop.permute.xlu1 %2010 }
0x2f2c   :  { %v2013_v40 = vmul.f32 %v2011_v36, %v2008_v35 }
0x2f2e   :  { %v2015_v41 = vadd.f32 %v2014_v38, %v2013_v40 }
0x2f30   :  { %2017 = vrot.lane.b32.xlu0 %v2015_v41, %s4437_s3 }
0x2fa2   :  { %v2018_v1 = vpop.permute.xlu0 %2017 }
0x2fa3   :  { %4072 = vmatmul.mubr.msk.f32.vlgmr.msra.gmra.mxu1 %vm173_vm3, %v2018_v1 }
0x2fa4   :  { %4086 = vmatpush3.msra.mxu1 %v4800_v56  ;;  %4093 = vmatprep.mubr.msk.f32.mxu1 %vm4434_vm1, %v4433_v0 }
0x2fa5   :  { %4087 = vmatprep.subr.mxu1 %v4433_v0 }
0x2fa6   :  { %4088 = vmatpush3.msra.mxu1 %v4809_v57 }
0x2fa7   :  { %4089 = vmatprep.subr.mxu1 %v4433_v0 }
0x2fa8   :  { %4090 = vmatpush3.msra.mxu1 %v4816_v58 }
0x2fa9   :  { %4091 = vmatprep.subr.mxu1 %v4433_v0 }
0x2faa   :  { %4092 = vmatpush3.msra.mxu1 %v4823_v59 }
0x2fab   :  { %4107 = vmatprep.subr.mxu1 %v4433_v0 }
0x3063   :  { %v2087_v42 = vpop.f32.mrf.mxu1 }
0x3064   :  { %v2098_v43 = vadd.f32 %v2087_v42, %v4564_v31  ;;  %v2091_v2 = vadd.f32 %v2087_v42, %v4573_v39 }
0x3065   :  { %v4073_v44 = vpop.f32.mrf.mxu1 }
0x3066   :  { %2100 = vrot.lane.b32.xlu1 %v2098_v43, %s4436_s28  ;;  %v3661_v45 = vmul.f32 -1.442695, %v2091_v2 }
0x3068   :  { %4341 = vpow2.f32 %v3661_v45 }
0x3075   :  { %v4342_v6 = vpop.eup %4341 }
0x3076   :  { %v2095_v46 = vadd.f32 1.0, %v4342_v6 }
0x3078   :  { %4343 = vrcp.f32 %v2095_v46 }
0x3085   :  { %v4344_v47 = vpop.eup %4343 }
0x3086   :  { %v2110_v52 = vsub.f32 1.0, %v4344_v47  ;;  %v2116_v54 = vmul.f32 %v4344_v47, %v2015_v41 }
0x30d8   :  { %v2101_v13 = vpop.permute.xlu1 %2100 }
0x30d9   :  { %v2103_v48 = vmul.f32 %v4344_v47, %v2101_v13 }
0x30db   :  { %2105 = vrot.lane.b32.xlu0 %v2103_v48, %s4436_s28 }
0x314d   :  { %v2106_v49 = vpop.permute.xlu0 %2105 }
0x314e   :  { %v2108_v50 = vadd.f32 %v2106_v49, %v4573_v39 }
0x3150   :  { %4345 = vtanh.f32 %v2108_v50 }
0x315d   :  { %v4346_v51 = vpop.eup %4345 }
0x315e   :  { %2112 = vrot.lane.b32.xlu1 %v4346_v51, %s4437_s3 }
0x31d0   :  { %v2113_v53 = vpop.permute.xlu1 %2112 }
0x31d1   :  { %v2115_v55 = vmul.f32 %v2113_v53, %v2110_v52 }
0x31d3   :  { %v2117_v60 = vadd.f32 %v2116_v54, %v2115_v55 }
0x31d5   :  { %2119 = vrot.lane.b32.xlu0 %v2117_v60, %s4437_s3 }
0x3247   :  { %v2120_v61 = vpop.permute.xlu0 %2119 }
0x3248   :  { %4083 = vmatmul.mubr.msk.f32.vlgmr.msra.gmra.mxu0 %vm173_vm3, %v2120_v61 }
0x3249   :  { %4097 = vmatpush3.msra.mxu0 %v4800_v56  ;;  %4104 = vmatprep.mubr.msk.f32.mxu0 %vm4434_vm1, %v4433_v0 }
0x324a   :  { %4098 = vmatprep.subr.mxu0 %v4433_v0 }
0x324b   :  { %4099 = vmatpush3.msra.mxu0 %v4809_v57 }
0x324c   :  { %4100 = vmatprep.subr.mxu0 %v4433_v0 }
0x324d   :  { %4101 = vmatpush3.msra.mxu0 %v4816_v58 }
0x324e   :  { %4102 = vmatprep.subr.mxu0 %v4433_v0 }
0x324f   :  { %4103 = vmatpush3.msra.mxu0 %v4823_v59 }
0x3250   :  { %4118 = vmatprep.subr.mxu0 %v4433_v0 }
0x3308   :  { %v2189_v62 = vpop.f32.mrf.mxu0 }
0x3309   :  { %v2200_v63 = vadd.f32 %v2189_v62, %v4564_v31  ;;  %v2193_v4 = vadd.f32 %v2189_v62, %v4573_v39 }
0x330a   :  { %v4084_v3 = vpop.f32.mrf.mxu0 }
0x330b   :  { %2202 = vrot.lane.b32.xlu1 %v2200_v63, %s4436_s28  ;;  %v3663_v5 = vmul.f32 -1.442695, %v2193_v4 }
0x330d   :  { %4347 = vpow2.f32 %v3663_v5 }
0x331a   :  { %v4348_v7 = vpop.eup %4347 }
0x331b   :  { %v2197_v8 = vadd.f32 1.0, %v4348_v7 }
0x331d   :  { %4349 = vrcp.f32 %v2197_v8 }
0x332a   :  { %v4350_v9 = vpop.eup %4349 }
0x332b   :  { %v2212_v16 = vsub.f32 1.0, %v4350_v9  ;;  %v2218_v18 = vmul.f32 %v4350_v9, %v2117_v60 }
0x337d   :  { %v2203_v10 = vpop.permute.xlu1 %2202 }
0x337e   :  { %v2205_v11 = vmul.f32 %v4350_v9, %v2203_v10 }
0x3380   :  { %2207 = vrot.lane.b32.xlu0 %v2205_v11, %s4436_s28 }
0x33f2   :  { %v2208_v12 = vpop.permute.xlu0 %2207 }
0x33f3   :  { %v2210_v14 = vadd.f32 %v2208_v12, %v4573_v39 }
0x33f5   :  { %4351 = vtanh.f32 %v2210_v14 }
0x3402   :  { %v4352_v15 = vpop.eup %4351 }
0x3403   :  { %2214 = vrot.lane.b32.xlu1 %v4352_v15, %s4437_s3 }
0x3475   :  { %v2215_v17 = vpop.permute.xlu1 %2214 }
0x3476   :  { %v2217_v19 = vmul.f32 %v2215_v17, %v2212_v16 }
0x3478   :  { %v2219_v20 = vadd.f32 %v2218_v18, %v2217_v19 }
0x347a   :  { %2221 = vrot.lane.b32.xlu0 %v2219_v20, %s4437_s3 }
0x34ec   :  { %v2222_v21 = vpop.permute.xlu0 %2221 }
0x34ed   :  { %4094 = vmatmul.mubr.msk.f32.vlgmr.msra.gmra.mxu1 %vm173_vm3, %v2222_v21 }
0x34ee   :  { %4108 = vmatpush3.msra.mxu1 %v4800_v56  ;;  %4115 = vmatprep.mubr.msk.f32.mxu1 %vm4434_vm1, %v4433_v0 }
0x34ef   :  { %4109 = vmatprep.subr.mxu1 %v4433_v0 }
0x34f0   :  { %4110 = vmatpush3.msra.mxu1 %v4809_v57 }
0x34f1   :  { %4111 = vmatprep.subr.mxu1 %v4433_v0 }
0x34f2   :  { %4112 = vmatpush3.msra.mxu1 %v4816_v58 }
0x34f3   :  { %4113 = vmatprep.subr.mxu1 %v4433_v0 }
0x34f4   :  { %4114 = vmatpush3.msra.mxu1 %v4823_v59 }
0x34f5   :  { %4129 = vmatprep.subr.mxu1 %v4433_v0 }
0x35ad   :  { %v2291_v22 = vpop.f32.mrf.mxu1 }
0x35ae   :  { %v2302_v23 = vadd.f32 %v2291_v22, %v4564_v31  ;;  %v2295_v25 = vadd.f32 %v2291_v22, %v4573_v39 }
0x35af   :  { %v4095_v24 = vpop.f32.mrf.mxu1 }
0x35b0   :  { %2304 = vrot.lane.b32.xlu1 %v2302_v23, %s4436_s28  ;;  %v3665_v26 = vmul.f32 -1.442695, %v2295_v25 }
0x35b2   :  { %4353 = vpow2.f32 %v3665_v26 }
0x35bf   :  { %v4354_v27 = vpop.eup %4353 }
0x35c0   :  { %v2299_v28 = vadd.f32 1.0, %v4354_v27 }
0x35c2   :  { %4355 = vrcp.f32 %v2299_v28 }
0x35cf   :  { %v4356_v29 = vpop.eup %4355 }
0x35d0   :  { %v2314_v36 = vsub.f32 1.0, %v4356_v29  ;;  %v2320_v40 = vmul.f32 %v4356_v29, %v2219_v20 }
0x3622   :  { %v2305_v30 = vpop.permute.xlu1 %2304 }
0x3623   :  { %v2307_v32 = vmul.f32 %v4356_v29, %v2305_v30 }
0x3625   :  { %2309 = vrot.lane.b32.xlu0 %v2307_v32, %s4436_s28 }
0x3697   :  { %v2310_v33 = vpop.permute.xlu0 %2309 }
0x3698   :  { %v2312_v34 = vadd.f32 %v2310_v33, %v4573_v39 }
0x369a   :  { %4357 = vtanh.f32 %v2312_v34 }
0x36a7   :  { %v4358_v35 = vpop.eup %4357 }
0x36a8   :  { %2316 = vrot.lane.b32.xlu1 %v4358_v35, %s4437_s3 }
0x371a   :  { %v2317_v38 = vpop.permute.xlu1 %2316 }
0x371b   :  { %v2319_v41 = vmul.f32 %v2317_v38, %v2314_v36 }
0x371d   :  { %v2321_v1 = vadd.f32 %v2320_v40, %v2319_v41 }
0x371f   :  { %2323 = vrot.lane.b32.xlu0 %v2321_v1, %s4437_s3 }
0x3791   :  { %v2324_v42 = vpop.permute.xlu0 %2323 }
0x3792   :  { %4105 = vmatmul.mubr.msk.f32.vlgmr.msra.gmra.mxu0 %vm173_vm3, %v2324_v42 }
0x3793   :  { %4119 = vmatpush3.msra.mxu0 %v4800_v56  ;;  %4126 = vmatprep.mubr.msk.f32.mxu0 %vm4434_vm1, %v4433_v0 }
0x3794   :  { %4120 = vmatprep.subr.mxu0 %v4433_v0 }
0x3795   :  { %4121 = vmatpush3.msra.mxu0 %v4809_v57 }
0x3796   :  { %4122 = vmatprep.subr.mxu0 %v4433_v0 }
0x3797   :  { %4123 = vmatpush3.msra.mxu0 %v4816_v58 }
0x3798   :  { %4124 = vmatprep.subr.mxu0 %v4433_v0 }
0x3799   :  { %4125 = vmatpush3.msra.mxu0 %v4823_v59 }
0x379a   :  { %4140 = vmatprep.subr.mxu0 %v4433_v0 }
0x3852   :  { %v2393_v43 = vpop.f32.mrf.mxu0 }
0x3853   :  { %v2404_v44 = vadd.f32 %v2393_v43, %v4564_v31  ;;  %v2397_v45 = vadd.f32 %v2393_v43, %v4573_v39 }
0x3854   :  { %v4106_v2 = vpop.f32.mrf.mxu0 }
0x3855   :  { %2406 = vrot.lane.b32.xlu1 %v2404_v44, %s4436_s28  ;;  %v3667_v6 = vmul.f32 -1.442695, %v2397_v45 }
0x3857   :  { %4359 = vpow2.f32 %v3667_v6 }
0x3864   :  { %v4360_v46 = vpop.eup %4359 }
0x3865   :  { %v2401_v47 = vadd.f32 1.0, %v4360_v46 }
0x3867   :  { %4361 = vrcp.f32 %v2401_v47 }
0x3874   :  { %v4362_v13 = vpop.eup %4361 }
0x3875   :  { %v2416_v53 = vsub.f32 1.0, %v4362_v13  ;;  %v2422_v55 = vmul.f32 %v4362_v13, %v2321_v1 }
0x38c7   :  { %v2407_v48 = vpop.permute.xlu1 %2406 }
0x38c8   :  { %v2409_v49 = vmul.f32 %v4362_v13, %v2407_v48 }
0x38ca   :  { %2411 = vrot.lane.b32.xlu0 %v2409_v49, %s4436_s28 }
0x393c   :  { %v2412_v50 = vpop.permute.xlu0 %2411 }
0x393d   :  { %v2414_v51 = vadd.f32 %v2412_v50, %v4573_v39 }
0x393f   :  { %4363 = vtanh.f32 %v2414_v51 }
0x394c   :  { %v4364_v52 = vpop.eup %4363 }
0x394d   :  { %2418 = vrot.lane.b32.xlu1 %v4364_v52, %s4437_s3 }
0x39bf   :  { %v2419_v54 = vpop.permute.xlu1 %2418 }
0x39c0   :  { %v2421_v60 = vmul.f32 %v2419_v54, %v2416_v53 }
0x39c2   :  { %v2423_v61 = vadd.f32 %v2422_v55, %v2421_v60 }
0x39c4   :  { %2425 = vrot.lane.b32.xlu0 %v2423_v61, %s4437_s3 }
0x3a36   :  { %v2426_v62 = vpop.permute.xlu0 %2425 }
0x3a37   :  { %4116 = vmatmul.mubr.msk.f32.vlgmr.msra.gmra.mxu1 %vm173_vm3, %v2426_v62 }
0x3a38   :  { %4130 = vmatpush3.msra.mxu1 %v4800_v56  ;;  %4137 = vmatprep.mubr.msk.f32.mxu1 %vm4434_vm1, %v4433_v0 }
0x3a39   :  { %4131 = vmatprep.subr.mxu1 %v4433_v0 }
0x3a3a   :  { %4132 = vmatpush3.msra.mxu1 %v4809_v57 }
0x3a3b   :  { %4133 = vmatprep.subr.mxu1 %v4433_v0 }
0x3a3c   :  { %4134 = vmatpush3.msra.mxu1 %v4816_v58 }
0x3a3d   :  { %4135 = vmatprep.subr.mxu1 %v4433_v0 }
0x3a3e   :  { %4136 = vmatpush3.msra.mxu1 %v4823_v59 }
0x3a3f   :  { %4151 = vmatprep.subr.mxu1 %v4433_v0 }
0x3af7   :  { %v2495_v63 = vpop.f32.mrf.mxu1 }
0x3af8   :  { %v2506_v3 = vadd.f32 %v2495_v63, %v4564_v31  ;;  %v2499_v5 = vadd.f32 %v2495_v63, %v4573_v39 }
0x3af9   :  { %v4117_v4 = vpop.f32.mrf.mxu1 }
0x3afa   :  { %2508 = vrot.lane.b32.xlu1 %v2506_v3, %s4436_s28  ;;  %v3669_v7 = vmul.f32 -1.442695, %v2499_v5 }
0x3afc   :  { %4365 = vpow2.f32 %v3669_v7 }
0x3b09   :  { %v4366_v8 = vpop.eup %4365 }
0x3b0a   :  { %v2503_v9 = vadd.f32 1.0, %v4366_v8 }
0x3b0c   :  { %4367 = vrcp.f32 %v2503_v9 }
0x3b19   :  { %v4368_v10 = vpop.eup %4367 }
0x3b1a   :  { %v2518_v17 = vsub.f32 1.0, %v4368_v10  ;;  %v2524_v19 = vmul.f32 %v4368_v10, %v2423_v61 }
0x3b6c   :  { %v2509_v11 = vpop.permute.xlu1 %2508 }
0x3b6d   :  { %v2511_v12 = vmul.f32 %v4368_v10, %v2509_v11 }
0x3b6f   :  { %2513 = vrot.lane.b32.xlu0 %v2511_v12, %s4436_s28 }
0x3be1   :  { %v2514_v14 = vpop.permute.xlu0 %2513 }
0x3be2   :  { %v2516_v15 = vadd.f32 %v2514_v14, %v4573_v39 }
0x3be4   :  { %4369 = vtanh.f32 %v2516_v15 }
0x3bf1   :  { %v4370_v16 = vpop.eup %4369 }
0x3bf2   :  { %2520 = vrot.lane.b32.xlu1 %v4370_v16, %s4437_s3 }
0x3c64   :  { %v2521_v18 = vpop.permute.xlu1 %2520 }
0x3c65   :  { %v2523_v20 = vmul.f32 %v2521_v18, %v2518_v17 }
0x3c67   :  { %v2525_v21 = vadd.f32 %v2524_v19, %v2523_v20 }
0x3c69   :  { %2527 = vrot.lane.b32.xlu0 %v2525_v21, %s4437_s3 }
0x3cdb   :  { %v2528_v22 = vpop.permute.xlu0 %2527 }
0x3cdc   :  { %4127 = vmatmul.mubr.msk.f32.vlgmr.msra.gmra.mxu0 %vm173_vm3, %v2528_v22 }
0x3cdd   :  { %4141 = vmatpush3.msra.mxu0 %v4800_v56  ;;  %4148 = vmatprep.mubr.msk.f32.mxu0 %vm4434_vm1, %v4433_v0 }
0x3cde   :  { %4142 = vmatprep.subr.mxu0 %v4433_v0 }
0x3cdf   :  { %4143 = vmatpush3.msra.mxu0 %v4809_v57 }
0x3ce0   :  { %4144 = vmatprep.subr.mxu0 %v4433_v0 }
0x3ce1   :  { %4145 = vmatpush3.msra.mxu0 %v4816_v58 }
0x3ce2   :  { %4146 = vmatprep.subr.mxu0 %v4433_v0 }
0x3ce3   :  { %4147 = vmatpush3.msra.mxu0 %v4823_v59 }
0x3ce4   :  { %4162 = vmatprep.subr.mxu0 %v4433_v0 }
0x3d9c   :  { %v2597_v23 = vpop.f32.mrf.mxu0 }
0x3d9d   :  { %v2608_v24 = vadd.f32 %v2597_v23, %v4564_v31  ;;  %v2601_v26 = vadd.f32 %v2597_v23, %v4573_v39 }
0x3d9e   :  { %v4128_v25 = vpop.f32.mrf.mxu0 }
0x3d9f   :  { %2610 = vrot.lane.b32.xlu1 %v2608_v24, %s4436_s28  ;;  %v3671_v27 = vmul.f32 -1.442695, %v2601_v26 }
0x3da1   :  { %4371 = vpow2.f32 %v3671_v27 }
0x3dae   :  { %v4372_v28 = vpop.eup %4371 }
0x3daf   :  { %v2605_v29 = vadd.f32 1.0, %v4372_v28 }
0x3db1   :  { %4373 = vrcp.f32 %v2605_v29 }
0x3dbe   :  { %v4374_v30 = vpop.eup %4373 }
0x3dbf   :  { %v2620_v38 = vsub.f32 1.0, %v4374_v30  ;;  %v2626_v41 = vmul.f32 %v4374_v30, %v2525_v21 }
0x3e11   :  { %v2611_v32 = vpop.permute.xlu1 %2610 }
0x3e12   :  { %v2613_v33 = vmul.f32 %v4374_v30, %v2611_v32 }
0x3e14   :  { %2615 = vrot.lane.b32.xlu0 %v2613_v33, %s4436_s28 }
0x3e86   :  { %v2616_v34 = vpop.permute.xlu0 %2615 }
0x3e87   :  { %v2618_v35 = vadd.f32 %v2616_v34, %v4573_v39 }
0x3e89   :  { %4375 = vtanh.f32 %v2618_v35 }
0x3e96   :  { %v4376_v36 = vpop.eup %4375 }
0x3e97   :  { %2622 = vrot.lane.b32.xlu1 %v4376_v36, %s4437_s3 }
0x3f09   :  { %v2623_v40 = vpop.permute.xlu1 %2622 }
0x3f0a   :  { %v2625_v1 = vmul.f32 %v2623_v40, %v2620_v38 }
0x3f0c   :  { %v2627_v42 = vadd.f32 %v2626_v41, %v2625_v1 }
0x3f0e   :  { %2629 = vrot.lane.b32.xlu0 %v2627_v42, %s4437_s3 }
0x3f80   :  { %v2630_v43 = vpop.permute.xlu0 %2629 }
0x3f81   :  { %4138 = vmatmul.mubr.msk.f32.vlgmr.msra.gmra.mxu1 %vm173_vm3, %v2630_v43 }
0x3f82   :  { %4152 = vmatpush3.msra.mxu1 %v4800_v56  ;;  %4159 = vmatprep.mubr.msk.f32.mxu1 %vm4434_vm1, %v4433_v0 }
0x3f83   :  { %4153 = vmatprep.subr.mxu1 %v4433_v0 }
0x3f84   :  { %4154 = vmatpush3.msra.mxu1 %v4809_v57 }
0x3f85   :  { %4155 = vmatprep.subr.mxu1 %v4433_v0 }
0x3f86   :  { %4156 = vmatpush3.msra.mxu1 %v4816_v58 }
0x3f87   :  { %4157 = vmatprep.subr.mxu1 %v4433_v0 }
0x3f88   :  { %4158 = vmatpush3.msra.mxu1 %v4823_v59 }
0x3f89   :  { %4173 = vmatprep.subr.mxu1 %v4433_v0 }
0x4041   :  { %v2699_v44 = vpop.f32.mrf.mxu1 }
0x4042   :  { %v2710_v2 = vadd.f32 %v2699_v44, %v4564_v31  ;;  %v2703_v6 = vadd.f32 %v2699_v44, %v4573_v39 }
0x4043   :  { %v4139_v45 = vpop.f32.mrf.mxu1 }
0x4044   :  { %2712 = vrot.lane.b32.xlu1 %v2710_v2, %s4436_s28  ;;  %v3673_v46 = vmul.f32 -1.442695, %v2703_v6 }
0x4046   :  { %4377 = vpow2.f32 %v3673_v46 }
0x4053   :  { %v4378_v47 = vpop.eup %4377 }
0x4054   :  { %v2707_v13 = vadd.f32 1.0, %v4378_v47  ;;  %v5080_v47 = vld [vmem:[%s5211_s2 + $0x18] sm:$0xff] }
0x4056   :  { %4379 = vrcp.f32 %v2707_v13  ;;  %v5089_v13 = vld [vmem:[%s5211_s2 + $0x10] sm:$0xff] }
0x4063   :  { %v4380_v48 = vpop.eup %4379 }
0x4064   :  { %v2722_v54 = vsub.f32 1.0, %v4380_v48  ;;  %v2728_v60 = vmul.f32 %v4380_v48, %v2627_v42 }
0x40b6   :  { %v2713_v49 = vpop.permute.xlu1 %2712 }
0x40b7   :  { %v2715_v50 = vmul.f32 %v4380_v48, %v2713_v49  ;;  %v5096_v48 = vld [vmem:[%s5211_s2 + $0x8] sm:$0xff]  ;;  %v5103_v49 = vld [vmem:[%s5211_s2] sm:$0xff] }
0x40b9   :  { %2717 = vrot.lane.b32.xlu0 %v2715_v50, %s4436_s28 }
0x412b   :  { %v2718_v51 = vpop.permute.xlu0 %2717 }
0x412c   :  { %v2720_v52 = vadd.f32 %v2718_v51, %v4573_v39 }
0x412e   :  { %4381 = vtanh.f32 %v2720_v52 }
0x413b   :  { %v4382_v53 = vpop.eup %4381 }
0x413c   :  { %2724 = vrot.lane.b32.xlu1 %v4382_v53, %s4437_s3 }
0x41ae   :  { %v2725_v55 = vpop.permute.xlu1 %2724 }
0x41af   :  { %v2727_v61 = vmul.f32 %v2725_v55, %v2722_v54 }
0x41b1   :  { %v2729_v62 = vadd.f32 %v2728_v60, %v2727_v61 }
0x41b3   :  { %2731 = vrot.lane.b32.xlu0 %v2729_v62, %s4437_s3  ;;  %v2837_v20 = vrot.slane %v2729_v62, 6 }
0x4225   :  { %v2732_v63 = vpop.permute.xlu0 %2731 }
0x4226   :  { %2735 = vst.msk [vmem:[#allocation2] sm:$0x3] %vm2734_vm4, %v2732_v63  ;;  %4149 = vmatmul.mubr.msk.f32.vlgmr.msra.gmra.mxu0 %vm173_vm3, %v2732_v63 }
0x4227   :  { %4163 = vmatpush3.msra.mxu0 %v4800_v56  ;;  %4170 = vmatprep.mubr.msk.f32.mxu0 %vm4434_vm1, %v4433_v0 }
0x4228   :  { %4164 = vmatprep.subr.mxu0 %v4433_v0 }
0x4229   :  { %4165 = vmatpush3.msra.mxu0 %v4809_v57 }
0x422a   :  { %4166 = vmatprep.subr.mxu0 %v4433_v0 }
0x422b   :  { %4167 = vmatpush3.msra.mxu0 %v4816_v58 }
0x422c   :  { %4168 = vmatprep.subr.mxu0 %v4433_v0 }
0x422d   :  { %4169 = vmatpush3.msra.mxu0 %v4823_v59 }
0x422e   :  { %4184 = vmatprep.subr.mxu0 %v4433_v0 }
0x42e6   :  { %v2804_v3 = vpop.f32.mrf.mxu0 }
0x42e7   :  { %v2818_v4 = vadd.f32 %v2804_v3, %v4564_v31  ;;  %v2809_v8 = vrot.slane %v2804_v3, 6 }
0x42e8   :  { %v4150_v5 = vpop.f32.mrf.mxu0 }
0x42e9   :  { %v2820_v7 = vrot.slane %v2818_v4, 6  ;;  %v2811_v9 = vadd.f32 %v2809_v8, %v4573_v39 }
0x42eb   :  { %2821 = vrot.lane.b32.xlu1 %v2820_v7, %s4436_s28  ;;  %v3675_v10 = vmul.f32 -1.442695, %v2811_v9 }
0x42ed   :  { %4383 = vpow2.f32 %v3675_v10 }
0x42fa   :  { %v4384_v11 = vpop.eup %4383 }
0x42fb   :  { %v2815_v12 = vadd.f32 1.0, %v4384_v11 }
0x42fd   :  { %4385 = vrcp.f32 %v2815_v12 }
0x430a   :  { %v4386_v14 = vpop.eup %4385 }
0x430b   :  { %v2831_v21 = vsub.f32 1.0, %v4386_v14  ;;  %v2839_v23 = vmul.f32 %v4386_v14, %v2837_v20 }
0x435d   :  { %v2822_v15 = vpop.permute.xlu1 %2821 }
0x435e   :  { %v2824_v16 = vmul.f32 %v4386_v14, %v2822_v15 }
0x4360   :  { %2826 = vrot.lane.b32.xlu0 %v2824_v16, %s4436_s28 }
0x43d2   :  { %v2827_v17 = vpop.permute.xlu0 %2826 }
0x43d3   :  { %v2829_v18 = vadd.f32 %v2827_v17, %v4573_v39 }
0x43d5   :  { %4387 = vtanh.f32 %v2829_v18 }
0x43e2   :  { %v4388_v19 = vpop.eup %4387 }
0x43e3   :  { %2833 = vrot.lane.b32.xlu1 %v4388_v19, %s4437_s3 }
0x4455   :  { %v2834_v22 = vpop.permute.xlu1 %2833 }
0x4456   :  { %v2836_v24 = vmul.f32 %v2834_v22, %v2831_v21 }
0x4458   :  { %v5050_v25 = vadd.f32 %v2839_v23, %v2836_v24 }
0x445a   :  { %v2847_v26 = vrot.slane %v5050_v25, 2  ;;  %v2951_v42 = vrot.slane %v5050_v25, 6 }
0x445c   :  { %2848 = vrot.lane.b32.xlu0 %v2847_v26, %s4437_s3 }
0x44ce   :  { %v2849_v27 = vpop.permute.xlu0 %2848 }
0x44cf   :  { %4160 = vmatmul.mubr.msk.f32.vlgmr.msra.gmra.mxu1 %vm173_vm3, %v2849_v27 }
0x44d0   :  { %4174 = vmatpush3.msra.mxu1 %v4800_v56  ;;  %4181 = vmatprep.mubr.msk.f32.mxu1 %vm4434_vm1, %v4433_v0 }
0x44d1   :  { %4175 = vmatprep.subr.mxu1 %v4433_v0 }
0x44d2   :  { %4176 = vmatpush3.msra.mxu1 %v4809_v57 }
0x44d3   :  { %4177 = vmatprep.subr.mxu1 %v4433_v0 }
0x44d4   :  { %4178 = vmatpush3.msra.mxu1 %v4816_v58 }
0x44d5   :  { %4179 = vmatprep.subr.mxu1 %v4433_v0 }
0x44d6   :  { %4180 = vmatpush3.msra.mxu1 %v4823_v59 }
0x44d7   :  { %4195 = vmatprep.subr.mxu1 %v4433_v0 }
0x458f   :  { %v2918_v28 = vpop.f32.mrf.mxu1 }
0x4590   :  { %v2932_v56 = vadd.f32 %v2918_v28, %v4564_v31  ;;  %v2923_v32 = vrot.slane %v2918_v28, 4 }
0x4591   :  { %v4161_v29 = vpop.f32.mrf.mxu1 }
0x4592   :  { %v2934_v30 = vrot.slane %v2932_v56, 4  ;;  %v2925_v57 = vadd.f32 %v2923_v32, %v4573_v39 }
0x4594   :  { %2935 = vrot.lane.b32.xlu1 %v2934_v30, %s4436_s28  ;;  %v3677_v33 = vmul.f32 -1.442695, %v2925_v57 }
0x4596   :  { %4389 = vpow2.f32 %v3677_v33 }
0x45a3   :  { %v4390_v34 = vpop.eup %4389 }
0x45a4   :  { %v2929_v58 = vadd.f32 1.0, %v4390_v34 }
0x45a6   :  { %4391 = vrcp.f32 %v2929_v58 }
0x45b3   :  { %v4392_v35 = vpop.eup %4391 }
0x45b4   :  { %v2945_v1 = vsub.f32 1.0, %v4392_v35  ;;  %v2953_v44 = vmul.f32 %v4392_v35, %v2951_v42 }
0x4606   :  { %v2936_v36 = vpop.permute.xlu1 %2935 }
0x4607   :  { %v2938_v59 = vmul.f32 %v4392_v35, %v2936_v36 }
0x4609   :  { %2940 = vrot.lane.b32.xlu0 %v2938_v59, %s4436_s28 }
0x467b   :  { %v2941_v38 = vpop.permute.xlu0 %2940 }
0x467c   :  { %v2943_v40 = vadd.f32 %v2941_v38, %v4573_v39 }
0x467e   :  { %4393 = vtanh.f32 %v2943_v40 }
0x468b   :  { %v4394_v41 = vpop.eup %4393 }
0x468c   :  { %2947 = vrot.lane.b32.xlu1 %v4394_v41, %s4437_s3 }
0x46fe   :  { %v2948_v43 = vpop.permute.xlu1 %2947 }
0x46ff   :  { %v2950_v2 = vmul.f32 %v2948_v43, %v2945_v1 }
0x4701   :  { %v5072_v45 = vadd.f32 %v2953_v44, %v2950_v2 }
0x4703   :  { %v2961_v6 = vrot.slane %v5072_v45, 4  ;;  %v3065_v10 = vrot.slane %v5072_v45, 6 }
0x4705   :  { %2962 = vrot.lane.b32.xlu0 %v2961_v6, %s4437_s3 }
0x4777   :  { %v2963_v46 = vpop.permute.xlu0 %2962 }
0x4778   :  { %4171 = vmatmul.mubr.msk.f32.vlgmr.msra.gmra.mxu0 %vm173_vm3, %v2963_v46 }
0x4779   :  { %4185 = vmatpush3.msra.mxu0 %v5080_v47  ;;  %4192 = vmatprep.mubr.msk.f32.mxu0 %vm4434_vm1, %v4433_v0 }
0x477a   :  { %4186 = vmatprep.subr.mxu0 %v4433_v0 }
0x477b   :  { %4187 = vmatpush3.msra.mxu0 %v5089_v13 }
0x477c   :  { %4188 = vmatprep.subr.mxu0 %v4433_v0 }
0x477d   :  { %4189 = vmatpush3.msra.mxu0 %v5096_v48 }
0x477e   :  { %4190 = vmatprep.subr.mxu0 %v4433_v0 }
0x477f   :  { %4191 = vmatpush3.msra.mxu0 %v5103_v49 }
0x4780   :  { %4206 = vmatprep.subr.mxu0 %v4433_v0 }
0x4838   :  { %v3032_v50 = vpop.f32.mrf.mxu0 }
0x4839   :  { %v3046_v51 = vadd.f32 %v3032_v50, %v4564_v31  ;;  %v3037_v54 = vrot.slane %v3032_v50, 2 }
0x483a   :  { %v4172_v52 = vpop.f32.mrf.mxu0 }
0x483b   :  { %v3048_v53 = vrot.slane %v3046_v51, 2  ;;  %v3039_v55 = vadd.f32 %v3037_v54, %v4573_v39 }
0x483d   :  { %3049 = vrot.lane.b32.xlu1 %v3048_v53, %s4436_s28  ;;  %v3679_v60 = vmul.f32 -1.442695, %v3039_v55 }
0x483f   :  { %4395 = vpow2.f32 %v3679_v60 }
0x484c   :  { %v4396_v61 = vpop.eup %4395 }
0x484d   :  { %v3043_v62 = vadd.f32 1.0, %v4396_v61 }
0x484f   :  { %4397 = vrcp.f32 %v3043_v62 }
0x485c   :  { %v4398_v63 = vpop.eup %4397 }
0x485d   :  { %v3059_v9 = vsub.f32 1.0, %v4398_v63  ;;  %v3067_v12 = vmul.f32 %v4398_v63, %v3065_v10 }
0x48af   :  { %v3050_v3 = vpop.permute.xlu1 %3049 }
0x48b0   :  { %v3052_v4 = vmul.f32 %v4398_v63, %v3050_v3 }
0x48b2   :  { %3054 = vrot.lane.b32.xlu0 %v3052_v4, %s4436_s28 }
0x4924   :  { %v3055_v5 = vpop.permute.xlu0 %3054 }
0x4925   :  { %v3057_v7 = vadd.f32 %v3055_v5, %v4573_v39 }
0x4927   :  { %4399 = vtanh.f32 %v3057_v7 }
0x4934   :  { %v4400_v8 = vpop.eup %4399 }
0x4935   :  { %3061 = vrot.lane.b32.xlu1 %v4400_v8, %s4437_s3 }
0x49a7   :  { %v3062_v11 = vpop.permute.xlu1 %3061 }
0x49a8   :  { %v3064_v14 = vmul.f32 %v3062_v11, %v3059_v9 }
0x49aa   :  { %v5114_v15 = vadd.f32 %v3067_v12, %v3064_v14 }
0x49ac   :  { %v3075_v16 = vrot.slane %v5114_v15, 6 }
0x49ae   :  { %3076 = vrot.lane.b32.xlu0 %v3075_v16, %s4437_s3 }
0x4a20   :  { %v3077_v17 = vpop.permute.xlu0 %3076 }
0x4a21   :  { %4182 = vmatmul.mubr.msk.f32.vlgmr.msra.gmra.mxu1 %vm173_vm3, %v3077_v17 }
0x4a22   :  { %4196 = vmatpush3.msra.mxu1 %v5080_v47  ;;  %4203 = vmatprep.mubr.msk.f32.mxu1 %vm4434_vm1, %v4433_v0 }
0x4a23   :  { %4197 = vmatprep.subr.mxu1 %v4433_v0 }
0x4a24   :  { %4198 = vmatpush3.msra.mxu1 %v5089_v13 }
0x4a25   :  { %4199 = vmatprep.subr.mxu1 %v4433_v0 }
0x4a26   :  { %4200 = vmatpush3.msra.mxu1 %v5096_v48 }
0x4a27   :  { %4201 = vmatprep.subr.mxu1 %v4433_v0 }
0x4a28   :  { %4202 = vmatpush3.msra.mxu1 %v5103_v49 }
0x4ae1   :  { %v3146_v39 = vpop.f32.mrf.mxu1 }
0x4ae2   :  { %v3157_v18 = vadd.f32 %v3146_v39, %v4564_v31  ;;  %v3150_v20 = vadd.f32 %v3146_v39, %v4571_v37 }
0x4ae3   :  { %v4183_v19 = vpop.f32.mrf.mxu1 }
0x4ae4   :  { %3159 = vrot.lane.b32.xlu1 %v3157_v18, %s4436_s28  ;;  %v3681_v21 = vmul.f32 -1.442695, %v3150_v20 }
0x4ae6   :  { %4401 = vpow2.f32 %v3681_v21 }
0x4af3   :  { %v4402_v22 = vpop.eup %4401 }
0x4af4   :  { %v3154_v23 = vadd.f32 1.0, %v4402_v22 }
0x4af6   :  { %4403 = vrcp.f32 %v3154_v23 }
0x4b03   :  { %v4404_v24 = vpop.eup %4403 }
0x4b04   :  { %v3169_v30 = vsub.f32 1.0, %v4404_v24  ;;  %v3176_v57 = vmul.f32 %v4404_v24, %v3075_v16 }
0x4b56   :  { %v3160_v26 = vpop.permute.xlu1 %3159 }
0x4b57   :  { %v3162_v27 = vmul.f32 %v4404_v24, %v3160_v26 }
0x4b59   :  { %3164 = vrot.lane.b32.xlu0 %v3162_v27, %s4436_s28 }
0x4bcb   :  { %v3165_v28 = vpop.permute.xlu0 %3164 }
0x4bcc   :  { %v3167_v56 = vadd.f32 %v3165_v28, %v4571_v37 }
0x4bce   :  { %4405 = vtanh.f32 %v3167_v56 }
0x4bdb   :  { %v4406_v29 = vpop.eup %4405 }
0x4bdc   :  { %3171 = vrot.lane.b32.xlu1 %v4406_v29, %s4437_s3 }
0x4c4e   :  { %v3172_v32 = vpop.permute.xlu1 %3171 }
0x4c4f   :  { %v3174_v33 = vmul.f32 %v3172_v32, %v3169_v30 }
0x4c51   :  { %v3177_v34 = vadd.f32 %v3176_v57, %v3174_v33 }
0x4c53   :  { %3179 = vrot.lane.b32.xlu0 %v3177_v34, %s4437_s3 }
0x4cc5   :  { %v3180_v58 = vpop.permute.xlu0 %3179 }
0x4cc6   :  { %3182 = vst.msk [vmem:[#allocation2 + $0x8] sm:$0x3] %vm2734_vm4, %v3180_v58  ;;  %4193 = vmatmul.mubr.msk.f32.vlgmr.msra.gmra.mxu0 %vm173_vm3, %v3180_v58 }
0x4cc7   :  { %4207 = vmatpush3.msra.mxu0 %v5080_v47  ;;  %4214 = vmatprep.mubr.msk.f32.mxu0 %vm4434_vm1, %v4433_v0 }
0x4cc8   :  { %4208 = vmatprep.subr.mxu0 %v4433_v0 }
0x4cc9   :  { %4209 = vmatpush3.msra.mxu0 %v5089_v13  ;;  %v3284_v13 = vrot.slane %v3177_v34, 6 }
0x4cca   :  { %4210 = vmatprep.subr.mxu0 %v4433_v0 }
0x4ccb   :  { %4211 = vmatpush3.msra.mxu0 %v5096_v48 }
0x4ccc   :  { %4212 = vmatprep.subr.mxu0 %v4433_v0 }
0x4ccd   :  { %4213 = vmatpush3.msra.mxu0 %v5103_v49 }
0x4d86   :  { %v3251_v35 = vpop.f32.mrf.mxu0 }
0x4d87   :  { %v3265_v36 = vadd.f32 %v3251_v35, %v4564_v31  ;;  %v3256_v40 = vrot.slane %v3251_v35, 6 }
0x4d88   :  { %v4194_v59 = vpop.f32.mrf.mxu0 }
0x4d89   :  { %v3267_v38 = vrot.slane %v3265_v36, 6  ;;  %v3258_v41 = vadd.f32 %v3256_v40, %v4571_v37 }
0x4d8b   :  { %3268 = vrot.lane.b32.xlu1 %v3267_v38, %s4436_s28  ;;  %v3683_v1 = vmul.f32 -1.442695, %v3258_v41  ;;  %v3522_v38 = vld [vmem:[%s5216_s5 + $0x8] sm:$0xff] }
0x4d8d   :  { %4407 = vpow2.f32 %v3683_v1 }
0x4d9a   :  { %v4408_v42 = vpop.eup %4407 }
0x4d9b   :  { %v3262_v43 = vadd.f32 1.0, %v4408_v42 }
0x4d9d   :  { %4409 = vrcp.f32 %v3262_v43 }
0x4daa   :  { %v4410_v44 = vpop.eup %4409 }
0x4dab   :  { %v3278_v48 = vsub.f32 1.0, %v4410_v44  ;;  %v3286_v50 = vmul.f32 %v4410_v44, %v3284_v13  ;;  %v3688_v13 = vld [vmem:[%s5217_s6] ss:$0 sm:$0xff] }
0x4dfd   :  { %v3269_v2 = vpop.permute.xlu1 %3268 }
0x4dfe   :  { %v3271_v0 = vmul.f32 %v4410_v44, %v3269_v2 }
0x4e00   :  { %3273 = vrot.lane.b32.xlu0 %v3271_v0, %s4436_s28 }
0x4e72   :  { %v3274_v6 = vpop.permute.xlu0 %3273 }
0x4e73   :  { %v3276_v46 = vadd.f32 %v3274_v6, %v4571_v37 }
0x4e75   :  { %4411 = vtanh.f32 %v3276_v46 }
0x4e82   :  { %v4412_v47 = vpop.eup %4411 }
0x4e83   :  { %3280 = vrot.lane.b32.xlu1 %v4412_v47, %s4437_s3 }
0x4ef5   :  { %v3281_v49 = vpop.permute.xlu1 %3280 }
0x4ef6   :  { %v3283_v51 = vmul.f32 %v3281_v49, %v3278_v48 }
0x4ef8   :  { %v5152_v52 = vadd.f32 %v3286_v50, %v3283_v51 }
0x4efa   :  { %v3293_v53 = vrot.slane %v5152_v52, 2  ;;  %v3397_v17 = vrot.slane %v5152_v52, 6 }
0x4efc   :  { %3294 = vrot.lane.b32.xlu0 %v3293_v53, %s4437_s3 }
0x4f6e   :  { %v3295_v54 = vpop.permute.xlu0 %3294 }
0x4f6f   :  { %4204 = vmatmul.mubr.msk.f32.vlgmr.msra.gmra.mxu1 %vm173_vm3, %v3295_v54 }
0x502f   :  { %v3364_v55 = vpop.f32.mrf.mxu1 }
0x5030   :  { %v3378_v60 = vadd.f32 %v3364_v55, %v4564_v31  ;;  %v3369_v63 = vrot.slane %v3364_v55, 4 }
0x5031   :  { %v4205_v61 = vpop.f32.mrf.mxu1 }
0x5032   :  { %v3380_v62 = vrot.slane %v3378_v60, 4  ;;  %v3371_v3 = vadd.f32 %v3369_v63, %v4571_v37 }
0x5034   :  { %3381 = vrot.lane.b32.xlu1 %v3380_v62, %s4436_s28  ;;  %v3685_v4 = vmul.f32 -1.442695, %v3371_v3 }
0x5036   :  { %4413 = vpow2.f32 %v3685_v4 }
0x5043   :  { %v4414_v5 = vpop.eup %4413 }
0x5044   :  { %v3375_v7 = vadd.f32 1.0, %v4414_v5 }
0x5046   :  { %4415 = vrcp.f32 %v3375_v7 }
0x5053   :  { %v4416_v8 = vpop.eup %4415 }
0x5054   :  { %v3391_v16 = vsub.f32 1.0, %v4416_v8  ;;  %v3399_v18 = vmul.f32 %v4416_v8, %v3397_v17 }
0x50a6   :  { %v3382_v9 = vpop.permute.xlu1 %3381 }
0x50a7   :  { %v3384_v10 = vmul.f32 %v4416_v8, %v3382_v9 }
0x50a9   :  { %3386 = vrot.lane.b32.xlu0 %v3384_v10, %s4436_s28 }
0x511b   :  { %v3387_v11 = vpop.permute.xlu0 %3386 }
0x511c   :  { %v3389_v12 = vadd.f32 %v3387_v11, %v4571_v37 }
0x511e   :  { %4417 = vtanh.f32 %v3389_v12 }
0x512b   :  { %v4418_v14 = vpop.eup %4417 }
0x512c   :  { %3393 = vrot.lane.b32.xlu1 %v4418_v14, %s4437_s3 }
0x519e   :  { %v3394_v39 = vpop.permute.xlu1 %3393 }
0x519f   :  { %v3396_v19 = vmul.f32 %v3394_v39, %v3391_v16 }
0x51a1   :  { %v3400_v20 = vadd.f32 %v3399_v18, %v3396_v19 }
0x51a3   :  { %v3406_v21 = vrot.slane %v3400_v20, 4  ;;  %v3510_v41 = vrot.slane %v3400_v20, 6 }
0x51a5   :  { %3407 = vrot.lane.b32.xlu0 %v3406_v21, %s4437_s3 }
0x5217   :  { %v3408_v22 = vpop.permute.xlu0 %3407 }
0x5218   :  { %4215 = vmatmul.mubr.msk.f32.vlgmr.msra.gmra.mxu0 %vm173_vm3, %v3408_v22 }
0x52d8   :  { %v3477_v23 = vpop.f32.mrf.mxu0 }
0x52d9   :  { %v3491_v24 = vadd.f32 %v3477_v23, %v4564_v31  ;;  %v3482_v28 = vrot.slane %v3477_v23, 2 }
0x52da   :  { %v4216_v26 = vpop.f32.mrf.mxu0 }
0x52db   :  { %v3493_v27 = vrot.slane %v3491_v24, 2  ;;  %v3484_v56 = vadd.f32 %v3482_v28, %v4571_v37 }
0x52dd   :  { %3494 = vrot.lane.b32.xlu1 %v3493_v27, %s4436_s28  ;;  %v3687_v29 = vmul.f32 -1.442695, %v3484_v56 }
0x52df   :  { %4419 = vpow2.f32 %v3687_v29 }
0x52ec   :  { %v4420_v30 = vpop.eup %4419 }
0x52ed   :  { %v3488_v32 = vadd.f32 1.0, %v4420_v30 }
0x52ef   :  { %4421 = vrcp.f32 %v3488_v32 }
0x52fc   :  { %v4422_v57 = vpop.eup %4421 }
0x52fd   :  { %v3504_v40 = vsub.f32 1.0, %v4422_v57  ;;  %v3512_v42 = vmul.f32 %v4422_v57, %v3510_v41 }
0x534f   :  { %v3495_v33 = vpop.permute.xlu1 %3494 }
0x5350   :  { %v3497_v34 = vmul.f32 %v4422_v57, %v3495_v33 }
0x5352   :  { %3499 = vrot.lane.b32.xlu0 %v3497_v34, %s4436_s28 }
0x5356   :  { %2842 = vrot.lane.b32.xlu0 %v5050_v25, %s4437_s3 }
0x535a   :  { %3070 = vrot.lane.b32.xlu0 %v5114_v15, %s4437_s3  ;;  %v3523_v15 = vld [vmem:[%s5216_s5 + $0x10] sm:$0xff] }
0x535e   :  { %3402 = vrot.lane.b32.xlu0 %v3400_v20, %s4437_s3 }
0x53c4   :  { %v3500_v31 = vpop.permute.xlu0 %3499 }
0x53c5   :  { %v3502_v58 = vadd.f32 %v3500_v31, %v4571_v37  ;;  %v3524_v37 = vld [vmem:[%s5216_s5 + $0x18] sm:$0xff] }
0x53c6   :  { %4217 = vmatprep.subr.mxu1 %v3524_v37 }
0x53c7   :  { %4423 = vtanh.f32 %v3502_v58  ;;  %4218 = vmatpush3.msra.mxu1 %v3524_v37 }
0x53c8   :  { %v2843_v35 = vpop.permute.xlu0 %2842  ;;  %4219 = vmatprep.subr.mxu1 %v3523_v15 }
0x53c9   :  { %2846 = vst.msk [vmem:[#allocation2] sm:$0xc] %vm2845_vm5, %v2843_v35  ;;  %4220 = vmatpush3.msra.mxu1 %v3523_v15 }
0x53ca   :  { %4221 = vmatprep.subr.mxu1 %v3522_v38 }
0x53cb   :  { %4222 = vmatpush3.msra.mxu1 %v3522_v38 }
0x53cc   :  { %v3071_v36 = vpop.permute.xlu0 %3070 }
0x53cd   :  { %3074 = vst.msk [vmem:[#allocation2] sm:$0xc0] %vm3073_vm6, %v3071_v36 }
0x53d0   :  { %v3403_v59 = vpop.permute.xlu0 %3402 }
0x53d1   :  { %3405 = vst.msk [vmem:[#allocation2 + $0x8] sm:$0x30] %vm2959_vm7, %v3403_v59 }
0x53d4   :  { %v4424_v25 = vpop.eup %4423 }
0x53d5   :  { %3506 = vrot.lane.b32.xlu1 %v4424_v25, %s4437_s3 }
0x53d9   :  { %2956 = vrot.lane.b32.xlu1 %v5072_v45, %s4437_s3  ;;  %v3521_v45 = vld [vmem:[%s5216_s5] sm:$0xff] }
0x53da   :  { %4223 = vmatprep.subr.mxu1 %v3521_v45 }
0x53db   :  { %4224 = vmatpush3.msra.mxu1 %v3521_v45 }
0x53dd   :  { %3289 = vrot.lane.b32.xlu1 %v5152_v52, %s4437_s3 }
0x5447   :  { %v3507_v1 = vpop.permute.xlu1 %3506 }
0x5448   :  { %v3509_v43 = vmul.f32 %v3507_v1, %v3504_v40 }
0x544a   :  { %v3513_v44 = vadd.f32 %v3512_v42, %v3509_v43 }
0x544b   :  { %v2957_v2 = vpop.permute.xlu1 %2956 }
0x544c   :  { %2960 = vst.msk [vmem:[#allocation2] sm:$0x30] %vm2959_vm7, %v2957_v2  ;;  %3515 = vrot.lane.b32.xlu1 %v3513_v44, %s4437_s3 }
0x544f   :  { %v3290_v0 = vpop.permute.xlu1 %3289 }
0x5450   :  { %3292 = vst.msk [vmem:[#allocation2 + $0x8] sm:$0xc] %vm2845_vm5, %v3290_v0 }
0x5453   :  { %v3519_v6 = vld [vmem:[#allocation2] sm:$0xff] }
0x5454   :  { %4225 = vmatprep.mubr.msk.f32.mxu1 %vm173_vm3, %v3519_v6 }
0x54be   :  { %v3516_v46 = vpop.permute.xlu1 %3515 }
0x54bf   :  { %3518 = vst.msk [vmem:[#allocation2 + $0x8] sm:$0xc0] %vm3073_vm6, %v3516_v46 }
0x54c6   :  { %v3520_v47 = vld [vmem:[#allocation2 + $0x8] sm:$0xff] }
0x54c7   :  { %4226 = vmatmul.mubr.msk.f32.vlgmr.msra.gmra.mxu1 %vm173_vm3, %v3520_v47 }
0x5587   :  { %v4227_v48 = vpop.f32.mrf.mxu1 }
0x5588   :  { %v3610_v49 = vadd.f32 %v4227_v48, %v3688_v13 }
0x5589   :  { %v3604_v50 = vpop.f32.mrf.mxu1 }
0x558a   :  { %3615 = vst.msk [vmem:[%s5218_s7 + $0x8] sm:$0xff] %vm3613_vm8, %v3610_v49  ;;  %v3605_v51 = vadd.f32 %v3688_v13, %v3604_v50 }
0x558c   :  { %3614 = vst.msk [vmem:[%s5218_s7] sm:$0xff] %vm3613_vm8, %v3605_v51 }

</bundles_post_ra>
